<compile_context>
chip_gen: v6e
topology: v6e:2x2x1
jax: 0.10.0
libtpu: 0.0.40
codegen_flags: <defaults>
</compile_context>

<pallas_src>
import functools

import jax
import jax.numpy as jnp
from jax.experimental import pallas as pl
from jax.experimental.pallas import tpu as pltpu

LRELU_SLOPE = 0.1
HALO = 8  # >= total receptive-field radius (2 + 2 + 2 + 1 = 7), rounded to a sublane multiple


def _round_up(v, m):
    return ((v + m - 1) // m) * m


def _leaky_relu(x, slope=LRELU_SLOPE):
    return jnp.where(x >= 0, x, slope * x)


def _conv_im2col(h, w_ref, b_ref, pad):
    """'Same' Conv1d on an (L, Cin) f32 tile as ONE MXU matmul.

    The K taps of the layer *input* are realigned with XLU sublane rolls and
    lane-concatenated (Cin is padded to a multiple of 128 by the wrapper, so
    concat offsets are vreg-aligned); the wrapper pre-reshapes the weight to
    (K*Cin, Cout).  Rows within `pad` of the tile edge pick up roll
    wrap-around; they lie inside the recomputed halo and are never used.
    """
    L = h.shape[0]
    K = 2 * pad + 1
    taps = []
    for k in range(K):  # static unroll, K == 5
        s = (pad - k) % L
        taps.append(pltpu.roll(h, shift=s, axis=0) if s else h)
    him = jnp.concatenate(taps, axis=1).astype(jnp.bfloat16)   # (L, K*Cin) bf16
    return jnp.dot(him, w_ref[...], preferred_element_type=jnp.float32) + b_ref[...]


def wavlm_disc_kernel(xc_ref, halo_ref, wpre_ref, bpre_ref, w1_ref, b1_ref,
                      w2_ref, b2_ref, w3_ref, b3_ref, wpost_ref, bpost_ref,
                      out_ref, *, seq_len):
    tT = xc_ref.shape[1]
    L = tT + 2 * HALO
    t = pl.program_id(1)

    # Absolute sequence position of every row (halo + center); emulates the
    # zero padding each Conv1d applies at the true sequence boundaries.
    pos = t * tT - HALO + jax.lax.broadcasted_iota(jnp.int32, (L, 1), 0)
    valid = jnp.logical_and(pos >= 0, pos < seq_len)

    # pre: Conv1d(kernel_size=1) == pointwise matmul (bf16 x bf16 -> f32).  The
    # left-halo / center / right-halo pieces are multiplied separately so the
    # big f32 x tile is never copied into a concatenated VMEM buffer.
    wp = wpre_ref[...]
    hl = halo_ref[0, 0]
    h = jnp.concatenate(
        [jnp.dot(hl[:HALO].astype(jnp.bfloat16), wp,
                 preferred_element_type=jnp.float32),
         jnp.dot(xc_ref[0].astype(jnp.bfloat16), wp,
                 preferred_element_type=jnp.float32),
         jnp.dot(hl[HALO:].astype(jnp.bfloat16), wp,
                 preferred_element_type=jnp.float32)],
        axis=0) + bpre_ref[...]
    h = jnp.where(valid, h, 0.0)

    # three k=5, pad=2 convs + leaky_relu.  Masking *before* the activation
    # (leaky(0) == 0) keeps rows outside [0, T) exactly zero so they serve as
    # the next conv's zero padding.
    for w_ref, b_ref in ((w1_ref, b1_ref), (w2_ref, b2_ref), (w3_ref, b3_ref)):
        h = _leaky_relu(jnp.where(valid, _conv_im2col(h, w_ref, b_ref, pad=2), 0.0))

    # conv_post: k=3, pad=1, C_out=1 -> VPU multiplies + ONE lane reduction (an
    # MXU matmul with a single output column would waste a whole MXU drain).
    wq = wpost_ref[...]                                        # (3, C) f32
    acc = pltpu.roll(h, shift=1, axis=0) * wq[0:1, :]
    acc = acc + h * wq[1:2, :]
    acc = acc + pltpu.roll(h, shift=L - 1, axis=0) * wq[2:3, :]
    col = jnp.sum(acc, axis=-1, keepdims=True) + bpost_ref[...]   # (L, 1)

    # Keep the tile_t center rows (sublane-aligned slice at HALO) and store
    # them lane-dense as a single (1, tile_t) row.
    out_ref[0] = jnp.transpose(col[HALO:HALO + tT, :])         # (1, tT)


def _pick_defaults(tile_t, vmem_limit_bytes):
    if tile_t is not None and vmem_limit_bytes is not None:
        return tile_t, vmem_limit_bytes
    big_vmem = False
    try:
        big_vmem = pltpu.get_tpu_info().vmem_capacity_bytes >= (100 << 20)
    except Exception:
        big_vmem = False
    if tile_t is None:
        tile_t = 512 if big_vmem else 256      # v5e/v6e: 128 MiB VMEM; v7x: 64 MiB per TC
    if vmem_limit_bytes is None:
        vmem_limit_bytes = (96 << 20) if big_vmem else (48 << 20)
    return tile_t, vmem_limit_bytes


def _pad_lanes(a, n):
    return jnp.pad(a, ((0, 0), (0, n - a.shape[1])))


def _im2col_weight(w, cin_p, cout_p):
    """(K, Cin, Cout) conv weight -> zero-padded, im2col-reshaped (K*cin_p, cout_p) bf16."""
    K, cin, cout = w.shape
    w = jnp.pad(w, ((0, 0), (0, cin_p - cin), (0, cout_p - cout)))
    return w.reshape(K * cin_p, cout_p).astype(jnp.bfloat16)


def wavlm_discriminator(x, params, *, tile_t=None, vmem_limit_bytes=None,
                        single_buffer_weights=True):
    """x: (B, T, C_in) channels-last.  Returns (B, T) == torch.flatten(conv_post(...), 1, -1)."""
    B, T, Cin = x.shape
    (wpre, bpre), (w1, b1), (w2, b2), (w3, b3), (wpost, bpost) = params
    C0 = wpre.shape[1]

    tile_t, vmem_limit_bytes = _pick_defaults(tile_t, vmem_limit_bytes)

    # tile_t output rows per grid step, recomputing a 2*HALO-row halo.  The tile
    # is either the whole (8-rounded) sequence or a multiple of 128 so the
    # lane-dense output block stays unmasked.
    if _round_up(T, 8) <= tile_t:
        tT = _round_up(T, 8)
    else:
        tT = _round_up(tile_t, 128)
    nT = pl.cdiv(T, tT)
    T_pad = nT * tT

    # Halo strips are the only re-read part of x (2*HALO/tT ~ 3-6%); x itself
    # reaches the kernel untouched (no cast / pad / window copy).
    starts = jnp.arange(nT) * tT
    idx = jnp.concatenate(
        [starts[:, None] - HALO + jnp.arange(HALO)[None, :],
         starts[:, None] + tT + jnp.arange(HALO)[None, :]], axis=1)
    idx = jnp.clip(idx, 0, T - 1)      # clamped rows are zeroed in-kernel by the position mask
    halo = x[:, idx, :]                # (B, nT, 2*HALO, Cin)

    # Zero-pad every channel dim to a multiple of 128 lanes (keeps all in-kernel
    # lane concatenations vreg-aligned; padded weights/biases are zero so the
    # math is unchanged), reshape conv weights for im2col, cast MXU weights bf16.
    c1 = _round_up(C0, 128)
    c2 = _round_up(2 * C0, 128)
    c3 = _round_up(4 * C0, 128)
    c4 = _round_up(4 * C0, 128)

    wpre_b = _pad_lanes(wpre, c1).astype(jnp.bfloat16)            # (Cin, c1)
    bpre_f = _pad_lanes(bpre.astype(jnp.float32), c1)             # (1, c1)
    w1_b = _im2col_weight(w1, c1, c2)                             # (5*c1, c2)
    b1_f = _pad_lanes(b1.astype(jnp.float32), c2)
    w2_b = _im2col_weight(w2, c2, c3)                             # (5*c2, c3)
    b2_f = _pad_lanes(b2.astype(jnp.float32), c3)
    w3_b = _im2col_weight(w3, c3, c4)                             # (5*c3, c4)
    b3_f = _pad_lanes(b3.astype(jnp.float32), c4)
    wpost2 = _pad_lanes(wpost[:, :, 0].astype(jnp.float32), c4)   # (3, c4), stays f32 on the VPU
    bpost_f = bpost.astype(jnp.float32)                           # (1, 1)

    weights = (wpre_b, bpre_f, w1_b, b1_f, w2_b, b2_f, w3_b, b3_f, wpost2, bpost_f)
    kernel = functools.partial(wavlm_disc_kernel, seq_len=T)

    def build_and_call(single_buf):
        def wspec(a):
            nd = a.ndim
            if single_buf:
                # Constant index map -> one resident copy is enough; frees a few
                # MB of VMEM headroom (matters most on v7x's 64 MiB/TC).
                return pl.BlockSpec(a.shape, lambda b, t, _nd=nd: (0,) * _nd,
                                    pipeline_mode=pl.Buffered(1))
            return pl.BlockSpec(a.shape, lambda b, t, _nd=nd: (0,) * _nd)

        grid_spec = pltpu.PrefetchScalarGridSpec(
            num_scalar_prefetch=0,
            grid=(B, nT),
            in_specs=[
                pl.BlockSpec((1, tT, Cin), lambda b, t: (b, t, 0)),              # x center tile
                pl.BlockSpec((1, 1, 2 * HALO, Cin), lambda b, t: (b, t, 0, 0)),  # halo strip
            ] + [wspec(a) for a in weights],
            out_specs=pl.BlockSpec((1, 1, tT), lambda b, t: (b, 0, t)),          # lane-dense rows
        )
        return pl.pallas_call(
            kernel,
            out_shape=jax.ShapeDtypeStruct((B, 1, T_pad), jnp.float32),
            grid_spec=grid_spec,
            compiler_params=pltpu.CompilerParams(
                dimension_semantics=("parallel", "parallel"),
                vmem_limit_bytes=vmem_limit_bytes,
            ),
        )(x, halo, *weights)

    if single_buffer_weights:
        try:
            out = build_and_call(True)
        except Exception:   # pipeline_mode=Buffered(1) unsupported -> plain double buffering
            out = build_and_call(False)
    else:
        out = build_and_call(False)

    # torch.flatten(x, 1, -1) with out_channels == 1  -> (B, T)
    return out.reshape(B, T_pad)[:, :T]


# --------------------------- pure-JAX reference ---------------------------

def _conv1d_ref(h, w, b, pad, cast_bf16=True):
    """Reference Conv1d (channels-last, weight (K, Cin, Cout), bias (1, Cout))."""
    K, _, Cout = w.shape
    Bb, T, _ = h.shape
    hp = jnp.pad(h, ((0, 0), (pad, pad), (0, 0)))
    if cast_bf16:
        hp = hp.astype(jnp.bfloat16)
        w = w.astype(jnp.bfloat16)
    o = jnp.zeros((Bb, T, Cout), jnp.float32) + b
    for k in range(K):
        o = o + jnp.einsum('btc,cd->btd', hp[:, k:k + T, :], w[k],
                           preferred_element_type=jnp.float32)
    return o


def wavlm_discriminator_ref(x, params):
    (wpre, bpre), (w1, b1), (w2, b2), (w3, b3), (wpost, bpost) = params
    h = jnp.einsum('btc,cd->btd', x.astype(jnp.bfloat16), wpre.astype(jnp.bfloat16),
                   preferred_element_type=jnp.float32) + bpre
    h = _leaky_relu(_conv1d_ref(h, w1, b1, 2))
    h = _leaky_relu(_conv1d_ref(h, w2, b2, 2))
    h = _leaky_relu(_conv1d_ref(h, w3, b3, 2))
    return _conv1d_ref(h, wpost, bpost, 1, cast_bf16=False)[:, :, 0]


if __name__ == "__main__":
    # Small, self-consistent hyperparameters (module default is slm_hidden=768,
    # slm_layers=13, initial_channel=64 -- shrunk for a quick synthetic run).
    slm_hidden, slm_layers, C0 = 32, 4, 16
    Cin = slm_hidden * slm_layers   # 128

    key = jax.random.PRNGKey(0)
    keys = jax.random.split(key, 12)
    s = 0.05
    wpre = jax.random.normal(keys[0], (Cin, C0), jnp.float32) * s
    bpre = jax.random.normal(keys[1], (1, C0), jnp.float32) * s
    w1 = jax.random.normal(keys[2], (5, C0, 2 * C0), jnp.float32) * s
    b1 = jax.random.normal(keys[3], (1, 2 * C0), jnp.float32) * s
    w2 = jax.random.normal(keys[4], (5, 2 * C0, 4 * C0), jnp.float32) * s
    b2 = jax.random.normal(keys[5], (1, 4 * C0), jnp.float32) * s
    w3 = jax.random.normal(keys[6], (5, 4 * C0, 4 * C0), jnp.float32) * s
    b3 = jax.random.normal(keys[7], (1, 4 * C0), jnp.float32) * s
    wpost = jax.random.normal(keys[8], (3, 4 * C0, 1), jnp.float32) * s
    bpost = jax.random.normal(keys[9], (1, 1), jnp.float32) * s
    params = ((wpre, bpre), (w1, b1), (w2, b2), (w3, b3), (wpost, bpost))

    # Case 1: single-tile path (whole sequence fits in one tile).
    B, T = 2, 32
    x = jax.random.normal(keys[10], (B, T, Cin), jnp.float32)
    out = jax.block_until_ready(wavlm_discriminator(x, params))
    assert out.shape == (B, T)
    ref = wavlm_discriminator_ref(x, params)
    err = jnp.max(jnp.abs(out - ref))
    assert jnp.allclose(out, ref, atol=2e-2, rtol=2e-2), f"single-tile max abs err = {err}"

    # Case 2: multi-tile path with a ragged tail (T=160, tile_t=128 -> 2 tiles,
    # partial last x block, halo stitching across the tile boundary).
    B2, T2 = 2, 160
    x2 = jax.random.normal(keys[11], (B2, T2, Cin), jnp.float32)
    out2 = jax.block_until_ready(wavlm_discriminator(x2, params, tile_t=128))
    assert out2.shape == (B2, T2)
    ref2 = wavlm_discriminator_ref(x2, params)
    err2 = jnp.max(jnp.abs(out2 - ref2))
    assert jnp.allclose(out2, ref2, atol=2e-2, rtol=2e-2), f"multi-tile max abs err = {err2}"

    print("KERNEL_OK")
</pallas_src>

<mosaic_0001>
module attributes {stable_mosaic.version = 11 : i64} {
  func.func @wavlm_disc_kernel(%arg0: i32, %arg1: i32, %arg2: memref<1x32x128xf32, #tpu.memory_space<vmem>>, %arg3: memref<1x1x16x128xf32, #tpu.memory_space<vmem>>, %arg4: memref<128x128xbf16, #tpu.memory_space<vmem>>, %arg5: memref<1x128xf32, #tpu.memory_space<vmem>>, %arg6: memref<640x128xbf16, #tpu.memory_space<vmem>>, %arg7: memref<1x128xf32, #tpu.memory_space<vmem>>, %arg8: memref<640x128xbf16, #tpu.memory_space<vmem>>, %arg9: memref<1x128xf32, #tpu.memory_space<vmem>>, %arg10: memref<640x128xbf16, #tpu.memory_space<vmem>>, %arg11: memref<1x128xf32, #tpu.memory_space<vmem>>, %arg12: memref<3x128xf32, #tpu.memory_space<vmem>>, %arg13: memref<1x1xf32, #tpu.memory_space<vmem>>, %arg14: memref<1x1x32xf32, #tpu.memory_space<vmem>>) attributes {dimension_semantics = [#tpu.dimension_semantics<parallel>, #tpu.dimension_semantics<parallel>], iteration_bounds = array<i64: 2, 1>, scalar_prefetch = 0 : i64, scratch_operands = 0 : i64, tpu.core_type = #tpu.core_type<tc>, window_params = [{transform_indices = @transform_0, window_bounds = array<i64: 1, 32, 128>}, {transform_indices = @transform_1, window_bounds = array<i64: 1, 1, 16, 128>}, {pipeline_mode = #tpu.pipeline_mode<synchronous>, transform_indices = @transform_2, window_bounds = array<i64: 128, 128>}, {pipeline_mode = #tpu.pipeline_mode<synchronous>, transform_indices = @transform_3, window_bounds = array<i64: 1, 128>}, {pipeline_mode = #tpu.pipeline_mode<synchronous>, transform_indices = @transform_4, window_bounds = array<i64: 640, 128>}, {pipeline_mode = #tpu.pipeline_mode<synchronous>, transform_indices = @transform_5, window_bounds = array<i64: 1, 128>}, {pipeline_mode = #tpu.pipeline_mode<synchronous>, transform_indices = @transform_6, window_bounds = array<i64: 640, 128>}, {pipeline_mode = #tpu.pipeline_mode<synchronous>, transform_indices = @transform_7, window_bounds = array<i64: 1, 128>}, {pipeline_mode = #tpu.pipeline_mode<synchronous>, transform_indices = @transform_8, window_bounds = array<i64: 640, 128>}, {pipeline_mode = #tpu.pipeline_mode<synchronous>, transform_indices = @transform_9, window_bounds = array<i64: 1, 128>}, {pipeline_mode = #tpu.pipeline_mode<synchronous>, transform_indices = @transform_10, window_bounds = array<i64: 3, 128>}, {pipeline_mode = #tpu.pipeline_mode<synchronous>, transform_indices = @transform_11, window_bounds = array<i64: 1, 1>}, {transform_indices = @transform_12, window_bounds = array<i64: 1, 1, 32>}]} {
    %c32_i32 = arith.constant 32 : i32
    %0 = arith.muli %arg1, %c32_i32 : i32
    %c8_i32 = arith.constant 8 : i32
    %1 = arith.subi %0, %c8_i32 : i32
    %2 = tpu.iota {dimensions = array<i32: 0>} : vector<48x1xi32>
    %3 = vector.broadcast %1 : i32 to vector<48x1xi32>
    %4 = arith.addi %3, %2 : vector<48x1xi32>
    %c0_i32 = arith.constant 0 : i32
    %5 = vector.broadcast %c0_i32 : i32 to vector<48x1xi32>
    %6 = arith.cmpi sge, %4, %5 : vector<48x1xi32>
    %c32_i32_0 = arith.constant 32 : i32
    %7 = vector.broadcast %c32_i32_0 : i32 to vector<48x1xi32>
    %8 = arith.cmpi slt, %4, %7 : vector<48x1xi32>
    %9 = arith.andi %6, %8 : vector<48x1xi1>
    %c0 = arith.constant 0 : index
    %c0_1 = arith.constant 0 : index
    %10 = vector.load %arg4[%c0, %c0_1] : memref<128x128xbf16, #tpu.memory_space<vmem>>, vector<128x128xbf16>
    %c0_2 = arith.constant 0 : index
    %c0_3 = arith.constant 0 : index
    %c0_4 = arith.constant 0 : index
    %c0_5 = arith.constant 0 : index
    %11 = vector.load %arg3[%c0_2, %c0_3, %c0_4, %c0_5] : memref<1x1x16x128xf32, #tpu.memory_space<vmem>>, vector<1x1x16x128xf32>
    %12 = vector.shape_cast %11 : vector<1x1x16x128xf32> to vector<16x128xf32>
    %13 = vector.extract_strided_slice %12 {offsets = [0, 0], sizes = [8, 128], strides = [1, 1]} : vector<16x128xf32> to vector<8x128xf32>
    %14 = arith.truncf %13 : vector<8x128xf32> to vector<8x128xbf16>
    %cst = arith.constant dense<0.000000e+00> : vector<8x128xf32>
    %15 = tpu.matmul %14, %10, %cst {dimension_numbers = #tpu.dot_dimension_numbers<[1], [0], [0], [1], [0, 0, 1, 1], [], []>} : vector<8x128xbf16>, vector<128x128xbf16>, vector<8x128xf32> -> vector<8x128xf32>
    %c0_6 = arith.constant 0 : index
    %c0_7 = arith.constant 0 : index
    %c0_8 = arith.constant 0 : index
    %16 = vector.load %arg2[%c0_6, %c0_7, %c0_8] : memref<1x32x128xf32, #tpu.memory_space<vmem>>, vector<1x32x128xf32>
    %17 = vector.shape_cast %16 : vector<1x32x128xf32> to vector<32x128xf32>
    %18 = arith.truncf %17 : vector<32x128xf32> to vector<32x128xbf16>
    %cst_9 = arith.constant dense<0.000000e+00> : vector<32x128xf32>
    %19 = tpu.matmul %18, %10, %cst_9 {dimension_numbers = #tpu.dot_dimension_numbers<[1], [0], [0], [1], [0, 0, 1, 1], [], []>} : vector<32x128xbf16>, vector<128x128xbf16>, vector<32x128xf32> -> vector<32x128xf32>
    %20 = vector.extract_strided_slice %12 {offsets = [8, 0], sizes = [8, 128], strides = [1, 1]} : vector<16x128xf32> to vector<8x128xf32>
    %21 = arith.truncf %20 : vector<8x128xf32> to vector<8x128xbf16>
    %cst_10 = arith.constant dense<0.000000e+00> : vector<8x128xf32>
    %22 = tpu.matmul %21, %10, %cst_10 {dimension_numbers = #tpu.dot_dimension_numbers<[1], [0], [0], [1], [0, 0, 1, 1], [], []>} : vector<8x128xbf16>, vector<128x128xbf16>, vector<8x128xf32> -> vector<8x128xf32>
    %23 = tpu.concatenate %15, %19, %22 in 0 : vector<8x128xf32>, vector<32x128xf32>, vector<8x128xf32> -> vector<48x128xf32>
    %c0_11 = arith.constant 0 : index
    %c0_12 = arith.constant 0 : index
    %24 = vector.load %arg5[%c0_11, %c0_12] : memref<1x128xf32, #tpu.memory_space<vmem>>, vector<1x128xf32>
    %25 = vector.broadcast %24 : vector<1x128xf32> to vector<48x128xf32>
    %26 = arith.addf %23, %25 : vector<48x128xf32>
    %cst_13 = arith.constant 0.000000e+00 : f32
    %27 = vector.shape_cast %9 : vector<48x1xi1> to vector<48x1xi1>
    %28 = vector.broadcast %27 : vector<48x1xi1> to vector<48x128xi1>
    %29 = vector.broadcast %cst_13 : f32 to vector<48x128xf32>
    %30 = arith.select %28, %26, %29 : vector<48x128xi1>, vector<48x128xf32>
    %c2_i32 = arith.constant 2 : i32
    %31 = tpu.dynamic_rotate %30 by %c2_i32 dim 0 : vector<48x128xf32>, i32 -> vector<48x128xf32>
    %c1_i32 = arith.constant 1 : i32
    %32 = tpu.dynamic_rotate %30 by %c1_i32 dim 0 : vector<48x128xf32>, i32 -> vector<48x128xf32>
    %c47_i32 = arith.constant 47 : i32
    %33 = tpu.dynamic_rotate %30 by %c47_i32 dim 0 : vector<48x128xf32>, i32 -> vector<48x128xf32>
    %c46_i32 = arith.constant 46 : i32
    %34 = tpu.dynamic_rotate %30 by %c46_i32 dim 0 : vector<48x128xf32>, i32 -> vector<48x128xf32>
    %35 = tpu.concatenate %31, %32, %30, %33, %34 in 1 : vector<48x128xf32>, vector<48x128xf32>, vector<48x128xf32>, vector<48x128xf32>, vector<48x128xf32> -> vector<48x640xf32>
    %36 = arith.truncf %35 : vector<48x640xf32> to vector<48x640xbf16>
    %c0_14 = arith.constant 0 : index
    %c0_15 = arith.constant 0 : index
    %37 = vector.load %arg6[%c0_14, %c0_15] : memref<640x128xbf16, #tpu.memory_space<vmem>>, vector<640x128xbf16>
    %cst_16 = arith.constant dense<0.000000e+00> : vector<48x128xf32>
    %38 = tpu.matmul %36, %37, %cst_16 {dimension_numbers = #tpu.dot_dimension_numbers<[1], [0], [0], [1], [0, 0, 1, 1], [], []>} : vector<48x640xbf16>, vector<640x128xbf16>, vector<48x128xf32> -> vector<48x128xf32>
    %c0_17 = arith.constant 0 : index
    %c0_18 = arith.constant 0 : index
    %39 = vector.load %arg7[%c0_17, %c0_18] : memref<1x128xf32, #tpu.memory_space<vmem>>, vector<1x128xf32>
    %40 = vector.broadcast %39 : vector<1x128xf32> to vector<48x128xf32>
    %41 = arith.addf %38, %40 : vector<48x128xf32>
    %cst_19 = arith.constant 0.000000e+00 : f32
    %42 = vector.shape_cast %9 : vector<48x1xi1> to vector<48x1xi1>
    %43 = vector.broadcast %42 : vector<48x1xi1> to vector<48x128xi1>
    %44 = vector.broadcast %cst_19 : f32 to vector<48x128xf32>
    %45 = arith.select %43, %41, %44 : vector<48x128xi1>, vector<48x128xf32>
    %cst_20 = arith.constant 0.000000e+00 : f32
    %46 = vector.broadcast %cst_20 : f32 to vector<48x128xf32>
    %47 = arith.cmpf oge, %45, %46 : vector<48x128xf32>
    %cst_21 = arith.constant 1.000000e-01 : f32
    %48 = vector.broadcast %cst_21 : f32 to vector<48x128xf32>
    %49 = arith.mulf %48, %45 : vector<48x128xf32>
    %50 = arith.select %47, %45, %49 : vector<48x128xi1>, vector<48x128xf32>
    %c2_i32_22 = arith.constant 2 : i32
    %51 = tpu.dynamic_rotate %50 by %c2_i32_22 dim 0 : vector<48x128xf32>, i32 -> vector<48x128xf32>
    %c1_i32_23 = arith.constant 1 : i32
    %52 = tpu.dynamic_rotate %50 by %c1_i32_23 dim 0 : vector<48x128xf32>, i32 -> vector<48x128xf32>
    %c47_i32_24 = arith.constant 47 : i32
    %53 = tpu.dynamic_rotate %50 by %c47_i32_24 dim 0 : vector<48x128xf32>, i32 -> vector<48x128xf32>
    %c46_i32_25 = arith.constant 46 : i32
    %54 = tpu.dynamic_rotate %50 by %c46_i32_25 dim 0 : vector<48x128xf32>, i32 -> vector<48x128xf32>
    %55 = tpu.concatenate %51, %52, %50, %53, %54 in 1 : vector<48x128xf32>, vector<48x128xf32>, vector<48x128xf32>, vector<48x128xf32>, vector<48x128xf32> -> vector<48x640xf32>
    %56 = arith.truncf %55 : vector<48x640xf32> to vector<48x640xbf16>
    %c0_26 = arith.constant 0 : index
    %c0_27 = arith.constant 0 : index
    %57 = vector.load %arg8[%c0_26, %c0_27] : memref<640x128xbf16, #tpu.memory_space<vmem>>, vector<640x128xbf16>
    %cst_28 = arith.constant dense<0.000000e+00> : vector<48x128xf32>
    %58 = tpu.matmul %56, %57, %cst_28 {dimension_numbers = #tpu.dot_dimension_numbers<[1], [0], [0], [1], [0, 0, 1, 1], [], []>} : vector<48x640xbf16>, vector<640x128xbf16>, vector<48x128xf32> -> vector<48x128xf32>
    %c0_29 = arith.constant 0 : index
    %c0_30 = arith.constant 0 : index
    %59 = vector.load %arg9[%c0_29, %c0_30] : memref<1x128xf32, #tpu.memory_space<vmem>>, vector<1x128xf32>
    %60 = vector.broadcast %59 : vector<1x128xf32> to vector<48x128xf32>
    %61 = arith.addf %58, %60 : vector<48x128xf32>
    %cst_31 = arith.constant 0.000000e+00 : f32
    %62 = vector.shape_cast %9 : vector<48x1xi1> to vector<48x1xi1>
    %63 = vector.broadcast %62 : vector<48x1xi1> to vector<48x128xi1>
    %64 = vector.broadcast %cst_31 : f32 to vector<48x128xf32>
    %65 = arith.select %63, %61, %64 : vector<48x128xi1>, vector<48x128xf32>
    %cst_32 = arith.constant 0.000000e+00 : f32
    %66 = vector.broadcast %cst_32 : f32 to vector<48x128xf32>
    %67 = arith.cmpf oge, %65, %66 : vector<48x128xf32>
    %cst_33 = arith.constant 1.000000e-01 : f32
    %68 = vector.broadcast %cst_33 : f32 to vector<48x128xf32>
    %69 = arith.mulf %68, %65 : vector<48x128xf32>
    %70 = arith.select %67, %65, %69 : vector<48x128xi1>, vector<48x128xf32>
    %c2_i32_34 = arith.constant 2 : i32
    %71 = tpu.dynamic_rotate %70 by %c2_i32_34 dim 0 : vector<48x128xf32>, i32 -> vector<48x128xf32>
    %c1_i32_35 = arith.constant 1 : i32
    %72 = tpu.dynamic_rotate %70 by %c1_i32_35 dim 0 : vector<48x128xf32>, i32 -> vector<48x128xf32>
    %c47_i32_36 = arith.constant 47 : i32
    %73 = tpu.dynamic_rotate %70 by %c47_i32_36 dim 0 : vector<48x128xf32>, i32 -> vector<48x128xf32>
    %c46_i32_37 = arith.constant 46 : i32
    %74 = tpu.dynamic_rotate %70 by %c46_i32_37 dim 0 : vector<48x128xf32>, i32 -> vector<48x128xf32>
    %75 = tpu.concatenate %71, %72, %70, %73, %74 in 1 : vector<48x128xf32>, vector<48x128xf32>, vector<48x128xf32>, vector<48x128xf32>, vector<48x128xf32> -> vector<48x640xf32>
    %76 = arith.truncf %75 : vector<48x640xf32> to vector<48x640xbf16>
    %c0_38 = arith.constant 0 : index
    %c0_39 = arith.constant 0 : index
    %77 = vector.load %arg10[%c0_38, %c0_39] : memref<640x128xbf16, #tpu.memory_space<vmem>>, vector<640x128xbf16>
    %cst_40 = arith.constant dense<0.000000e+00> : vector<48x128xf32>
    %78 = tpu.matmul %76, %77, %cst_40 {dimension_numbers = #tpu.dot_dimension_numbers<[1], [0], [0], [1], [0, 0, 1, 1], [], []>} : vector<48x640xbf16>, vector<640x128xbf16>, vector<48x128xf32> -> vector<48x128xf32>
    %c0_41 = arith.constant 0 : index
    %c0_42 = arith.constant 0 : index
    %79 = vector.load %arg11[%c0_41, %c0_42] : memref<1x128xf32, #tpu.memory_space<vmem>>, vector<1x128xf32>
    %80 = vector.broadcast %79 : vector<1x128xf32> to vector<48x128xf32>
    %81 = arith.addf %78, %80 : vector<48x128xf32>
    %cst_43 = arith.constant 0.000000e+00 : f32
    %82 = vector.shape_cast %9 : vector<48x1xi1> to vector<48x1xi1>
    %83 = vector.broadcast %82 : vector<48x1xi1> to vector<48x128xi1>
    %84 = vector.broadcast %cst_43 : f32 to vector<48x128xf32>
    %85 = arith.select %83, %81, %84 : vector<48x128xi1>, vector<48x128xf32>
    %cst_44 = arith.constant 0.000000e+00 : f32
    %86 = vector.broadcast %cst_44 : f32 to vector<48x128xf32>
    %87 = arith.cmpf oge, %85, %86 : vector<48x128xf32>
    %cst_45 = arith.constant 1.000000e-01 : f32
    %88 = vector.broadcast %cst_45 : f32 to vector<48x128xf32>
    %89 = arith.mulf %88, %85 : vector<48x128xf32>
    %90 = arith.select %87, %85, %89 : vector<48x128xi1>, vector<48x128xf32>
    %c0_46 = arith.constant 0 : index
    %c0_47 = arith.constant 0 : index
    %91 = vector.load %arg12[%c0_46, %c0_47] : memref<3x128xf32, #tpu.memory_space<vmem>>, vector<3x128xf32>
    %c1_i32_48 = arith.constant 1 : i32
    %92 = tpu.dynamic_rotate %90 by %c1_i32_48 dim 0 : vector<48x128xf32>, i32 -> vector<48x128xf32>
    %93 = vector.extract_strided_slice %91 {offsets = [0, 0], sizes = [1, 128], strides = [1, 1]} : vector<3x128xf32> to vector<1x128xf32>
    %94 = vector.broadcast %93 : vector<1x128xf32> to vector<48x128xf32>
    %95 = arith.mulf %92, %94 : vector<48x128xf32>
    %96 = vector.extract_strided_slice %91 {offsets = [1, 0], sizes = [1, 128], strides = [1, 1]} : vector<3x128xf32> to vector<1x128xf32>
    %97 = vector.broadcast %96 : vector<1x128xf32> to vector<48x128xf32>
    %98 = arith.mulf %90, %97 : vector<48x128xf32>
    %99 = arith.addf %95, %98 : vector<48x128xf32>
    %c47_i32_49 = arith.constant 47 : i32
    %100 = tpu.dynamic_rotate %90 by %c47_i32_49 dim 0 : vector<48x128xf32>, i32 -> vector<48x128xf32>
    %101 = vector.extract_strided_slice %91 {offsets = [2, 0], sizes = [1, 128], strides = [1, 1]} : vector<3x128xf32> to vector<1x128xf32>
    %102 = vector.broadcast %101 : vector<1x128xf32> to vector<48x128xf32>
    %103 = arith.mulf %100, %102 : vector<48x128xf32>
    %104 = arith.addf %99, %103 : vector<48x128xf32>
    %cst_50 = arith.constant dense<0.000000e+00> : vector<48xf32>
    %105 = vector.multi_reduction <add>, %104, %cst_50 [1] : vector<48x128xf32> to vector<48xf32>
    %106 = vector.shape_cast %105 : vector<48xf32> to vector<48x1xf32>
    %c0_51 = arith.constant 0 : index
    %c0_52 = arith.constant 0 : index
    %107 = vector.load %arg13[%c0_51, %c0_52] : memref<1x1xf32, #tpu.memory_space<vmem>>, vector<1x1xf32>
    %108 = vector.broadcast %107 : vector<1x1xf32> to vector<48x1xf32>
    %109 = arith.addf %106, %108 : vector<48x1xf32>
    %110 = vector.extract_strided_slice %109 {offsets = [8, 0], sizes = [32, 1], strides = [1, 1]} : vector<48x1xf32> to vector<32x1xf32>
    %111 = tpu.transpose %110, [1, 0] : vector<32x1xf32> -> vector<1x32xf32>
    %c0_53 = arith.constant 0 : index
    %c0_54 = arith.constant 0 : index
    %c0_55 = arith.constant 0 : index
    %112 = vector.load %arg14[%c0_53, %c0_54, %c0_55] : memref<1x1x32xf32, #tpu.memory_space<vmem>>, vector<1x1x32xf32>
    %113 = vector.shape_cast %112 : vector<1x1x32xf32> to vector<1x32xf32>
    %114 = vector.shape_cast %111 : vector<1x32xf32> to vector<1x1x32xf32>
    tpu.vector_store %arg14[%c0_53, %c0_54, %c0_55], %114 {strides = array<i32>} : memref<1x1x32xf32, #tpu.memory_space<vmem>>, vector<1x1x32xf32>,
    return
  }
  func.func @transform_0(%arg0: i32, %arg1: i32) -> (i32, i32, i32) {
    %c0_i32 = arith.constant 0 : i32
    %c0_i32_0 = arith.constant 0 : i32
    return %arg0, %arg1, %c0_i32 : i32, i32, i32
  }
  func.func @transform_1(%arg0: i32, %arg1: i32) -> (i32, i32, i32, i32) {
    %c0_i32 = arith.constant 0 : i32
    %c0_i32_0 = arith.constant 0 : i32
    %c0_i32_1 = arith.constant 0 : i32
    return %arg0, %arg1, %c0_i32, %c0_i32_0 : i32, i32, i32, i32
  }
  func.func @transform_2(%arg0: i32, %arg1: i32) -> (i32, i32) {
    %c0_i32 = arith.constant 0 : i32
    %c0_i32_0 = arith.constant 0 : i32
    %c0_i32_1 = arith.constant 0 : i32
    return %c0_i32, %c0_i32_0 : i32, i32
  }
  func.func @transform_3(%arg0: i32, %arg1: i32) -> (i32, i32) {
    %c0_i32 = arith.constant 0 : i32
    %c0_i32_0 = arith.constant 0 : i32
    %c0_i32_1 = arith.constant 0 : i32
    return %c0_i32, %c0_i32_0 : i32, i32
  }
  func.func @transform_4(%arg0: i32, %arg1: i32) -> (i32, i32) {
    %c0_i32 = arith.constant 0 : i32
    %c0_i32_0 = arith.constant 0 : i32
    %c0_i32_1 = arith.constant 0 : i32
    return %c0_i32, %c0_i32_0 : i32, i32
  }
  func.func @transform_5(%arg0: i32, %arg1: i32) -> (i32, i32) {
    %c0_i32 = arith.constant 0 : i32
    %c0_i32_0 = arith.constant 0 : i32
    %c0_i32_1 = arith.constant 0 : i32
    return %c0_i32, %c0_i32_0 : i32, i32
  }
  func.func @transform_6(%arg0: i32, %arg1: i32) -> (i32, i32) {
    %c0_i32 = arith.constant 0 : i32
    %c0_i32_0 = arith.constant 0 : i32
    %c0_i32_1 = arith.constant 0 : i32
    return %c0_i32, %c0_i32_0 : i32, i32
  }
  func.func @transform_7(%arg0: i32, %arg1: i32) -> (i32, i32) {
    %c0_i32 = arith.constant 0 : i32
    %c0_i32_0 = arith.constant 0 : i32
    %c0_i32_1 = arith.constant 0 : i32
    return %c0_i32, %c0_i32_0 : i32, i32
  }
  func.func @transform_8(%arg0: i32, %arg1: i32) -> (i32, i32) {
    %c0_i32 = arith.constant 0 : i32
    %c0_i32_0 = arith.constant 0 : i32
    %c0_i32_1 = arith.constant 0 : i32
    return %c0_i32, %c0_i32_0 : i32, i32
  }
  func.func @transform_9(%arg0: i32, %arg1: i32) -> (i32, i32) {
    %c0_i32 = arith.constant 0 : i32
    %c0_i32_0 = arith.constant 0 : i32
    %c0_i32_1 = arith.constant 0 : i32
    return %c0_i32, %c0_i32_0 : i32, i32
  }
  func.func @transform_10(%arg0: i32, %arg1: i32) -> (i32, i32) {
    %c0_i32 = arith.constant 0 : i32
    %c0_i32_0 = arith.constant 0 : i32
    %c0_i32_1 = arith.constant 0 : i32
    return %c0_i32, %c0_i32_0 : i32, i32
  }
  func.func @transform_11(%arg0: i32, %arg1: i32) -> (i32, i32) {
    %c0_i32 = arith.constant 0 : i32
    %c0_i32_0 = arith.constant 0 : i32
    %c0_i32_1 = arith.constant 0 : i32
    return %c0_i32, %c0_i32_0 : i32, i32
  }
  func.func @transform_12(%arg0: i32, %arg1: i32) -> (i32, i32, i32) {
    %c0_i32 = arith.constant 0 : i32
    %c0_i32_0 = arith.constant 0 : i32
    return %arg0, %c0_i32, %arg1 : i32, i32, i32
  }
}

module attributes {stable_mosaic.version = 11 : i64} {
  func.func @wavlm_disc_kernel(%arg0: i32, %arg1: i32, %arg2: memref<1x32x128xf32, #tpu.memory_space<vmem>>, %arg3: memref<1x1x16x128xf32, #tpu.memory_space<vmem>>, %arg4: memref<128x128xbf16, #tpu.memory_space<vmem>>, %arg5: memref<1x128xf32, #tpu.memory_space<vmem>>, %arg6: memref<640x128xbf16, #tpu.memory_space<vmem>>, %arg7: memref<1x128xf32, #tpu.memory_space<vmem>>, %arg8: memref<640x128xbf16, #tpu.memory_space<vmem>>, %arg9: memref<1x128xf32, #tpu.memory_space<vmem>>, %arg10: memref<640x128xbf16, #tpu.memory_space<vmem>>, %arg11: memref<1x128xf32, #tpu.memory_space<vmem>>, %arg12: memref<3x128xf32, #tpu.memory_space<vmem>>, %arg13: memref<1x1xf32, #tpu.memory_space<vmem>>, %arg14: memref<1x1x32xf32, #tpu.memory_space<vmem>>) attributes {dimension_semantics = [#tpu.dimension_semantics<parallel>, #tpu.dimension_semantics<parallel>], iteration_bounds = array<i64: 2, 1>, scalar_prefetch = 0 : i64, scratch_operands = 0 : i64, tpu.core_type = #tpu.core_type<tc>, window_params = [{transform_indices = @transform_0, window_bounds = array<i64: 1, 32, 128>}, {transform_indices = @transform_1, window_bounds = array<i64: 1, 1, 16, 128>}, {pipeline_mode = #tpu.pipeline_mode<synchronous>, transform_indices = @transform_2, window_bounds = array<i64: 128, 128>}, {pipeline_mode = #tpu.pipeline_mode<synchronous>, transform_indices = @transform_3, window_bounds = array<i64: 1, 128>}, {pipeline_mode = #tpu.pipeline_mode<synchronous>, transform_indices = @transform_4, window_bounds = array<i64: 640, 128>}, {pipeline_mode = #tpu.pipeline_mode<synchronous>, transform_indices = @transform_5, window_bounds = array<i64: 1, 128>}, {pipeline_mode = #tpu.pipeline_mode<synchronous>, transform_indices = @transform_6, window_bounds = array<i64: 640, 128>}, {pipeline_mode = #tpu.pipeline_mode<synchronous>, transform_indices = @transform_7, window_bounds = array<i64: 1, 128>}, {pipeline_mode = #tpu.pipeline_mode<synchronous>, transform_indices = @transform_8, window_bounds = array<i64: 640, 128>}, {pipeline_mode = #tpu.pipeline_mode<synchronous>, transform_indices = @transform_9, window_bounds = array<i64: 1, 128>}, {pipeline_mode = #tpu.pipeline_mode<synchronous>, transform_indices = @transform_10, window_bounds = array<i64: 3, 128>}, {pipeline_mode = #tpu.pipeline_mode<synchronous>, transform_indices = @transform_11, window_bounds = array<i64: 1, 1>}, {transform_indices = @transform_12, window_bounds = array<i64: 1, 1, 32>}]} {
    %c32_i32 = arith.constant 32 : i32
    %0 = arith.muli %arg1, %c32_i32 : i32
    %c8_i32 = arith.constant 8 : i32
    %1 = arith.subi %0, %c8_i32 : i32
    %2 = tpu.iota {dimensions = array<i32: 0>} : vector<48x1xi32>
    %3 = vector.broadcast %1 : i32 to vector<48x1xi32>
    %4 = arith.addi %3, %2 : vector<48x1xi32>
    %c0_i32 = arith.constant 0 : i32
    %5 = vector.broadcast %c0_i32 : i32 to vector<48x1xi32>
    %6 = arith.cmpi sge, %4, %5 : vector<48x1xi32>
    %c32_i32_0 = arith.constant 32 : i32
    %7 = vector.broadcast %c32_i32_0 : i32 to vector<48x1xi32>
    %8 = arith.cmpi slt, %4, %7 : vector<48x1xi32>
    %9 = arith.andi %6, %8 : vector<48x1xi1>
    %c0 = arith.constant 0 : index
    %c0_1 = arith.constant 0 : index
    %10 = vector.load %arg4[%c0, %c0_1] : memref<128x128xbf16, #tpu.memory_space<vmem>>, vector<128x128xbf16>
    %c0_2 = arith.constant 0 : index
    %c0_3 = arith.constant 0 : index
    %c0_4 = arith.constant 0 : index
    %c0_5 = arith.constant 0 : index
    %11 = vector.load %arg3[%c0_2, %c0_3, %c0_4, %c0_5] : memref<1x1x16x128xf32, #tpu.memory_space<vmem>>, vector<1x1x16x128xf32>
    %12 = vector.shape_cast %11 : vector<1x1x16x128xf32> to vector<16x128xf32>
    %13 = vector.extract_strided_slice %12 {offsets = [0, 0], sizes = [8, 128], strides = [1, 1]} : vector<16x128xf32> to vector<8x128xf32>
    %14 = arith.truncf %13 : vector<8x128xf32> to vector<8x128xbf16>
    %cst = arith.constant dense<0.000000e+00> : vector<8x128xf32>
    %15 = tpu.matmul %14, %10, %cst {dimension_numbers = #tpu.dot_dimension_numbers<[1], [0], [0], [1], [0, 0, 1, 1], [], []>} : vector<8x128xbf16>, vector<128x128xbf16>, vector<8x128xf32> -> vector<8x128xf32>
    %c0_6 = arith.constant 0 : index
    %c0_7 = arith.constant 0 : index
    %c0_8 = arith.constant 0 : index
    %16 = vector.load %arg2[%c0_6, %c0_7, %c0_8] : memref<1x32x128xf32, #tpu.memory_space<vmem>>, vector<1x32x128xf32>
    %17 = vector.shape_cast %16 : vector<1x32x128xf32> to vector<32x128xf32>
    %18 = arith.truncf %17 : vector<32x128xf32> to vector<32x128xbf16>
    %cst_9 = arith.constant dense<0.000000e+00> : vector<32x128xf32>
    %19 = tpu.matmul %18, %10, %cst_9 {dimension_numbers = #tpu.dot_dimension_numbers<[1], [0], [0], [1], [0, 0, 1, 1], [], []>} : vector<32x128xbf16>, vector<128x128xbf16>, vector<32x128xf32> -> vector<32x128xf32>
    %20 = vector.extract_strided_slice %12 {offsets = [8, 0], sizes = [8, 128], strides = [1, 1]} : vector<16x128xf32> to vector<8x128xf32>
    %21 = arith.truncf %20 : vector<8x128xf32> to vector<8x128xbf16>
    %cst_10 = arith.constant dense<0.000000e+00> : vector<8x128xf32>
    %22 = tpu.matmul %21, %10, %cst_10 {dimension_numbers = #tpu.dot_dimension_numbers<[1], [0], [0], [1], [0, 0, 1, 1], [], []>} : vector<8x128xbf16>, vector<128x128xbf16>, vector<8x128xf32> -> vector<8x128xf32>
    %23 = tpu.concatenate %15, %19, %22 in 0 : vector<8x128xf32>, vector<32x128xf32>, vector<8x128xf32> -> vector<48x128xf32>
    %c0_11 = arith.constant 0 : index
    %c0_12 = arith.constant 0 : index
    %24 = vector.load %arg5[%c0_11, %c0_12] : memref<1x128xf32, #tpu.memory_space<vmem>>, vector<1x128xf32>
    %25 = vector.broadcast %24 : vector<1x128xf32> to vector<48x128xf32>
    %26 = arith.addf %23, %25 : vector<48x128xf32>
    %cst_13 = arith.constant 0.000000e+00 : f32
    %27 = vector.shape_cast %9 : vector<48x1xi1> to vector<48x1xi1>
    %28 = vector.broadcast %27 : vector<48x1xi1> to vector<48x128xi1>
    %29 = vector.broadcast %cst_13 : f32 to vector<48x128xf32>
    %30 = arith.select %28, %26, %29 : vector<48x128xi1>, vector<48x128xf32>
    %c2_i32 = arith.constant 2 : i32
    %31 = tpu.dynamic_rotate %30 by %c2_i32 dim 0 : vector<48x128xf32>, i32 -> vector<48x128xf32>
    %c1_i32 = arith.constant 1 : i32
    %32 = tpu.dynamic_rotate %30 by %c1_i32 dim 0 : vector<48x128xf32>, i32 -> vector<48x128xf32>
    %c47_i32 = arith.constant 47 : i32
    %33 = tpu.dynamic_rotate %30 by %c47_i32 dim 0 : vector<48x128xf32>, i32 -> vector<48x128xf32>
    %c46_i32 = arith.constant 46 : i32
    %34 = tpu.dynamic_rotate %30 by %c46_i32 dim 0 : vector<48x128xf32>, i32 -> vector<48x128xf32>
    %35 = tpu.concatenate %31, %32, %30, %33, %34 in 1 : vector<48x128xf32>, vector<48x128xf32>, vector<48x128xf32>, vector<48x128xf32>, vector<48x128xf32> -> vector<48x640xf32>
    %36 = arith.truncf %35 : vector<48x640xf32> to vector<48x640xbf16>
    %c0_14 = arith.constant 0 : index
    %c0_15 = arith.constant 0 : index
    %37 = vector.load %arg6[%c0_14, %c0_15] : memref<640x128xbf16, #tpu.memory_space<vmem>>, vector<640x128xbf16>
    %cst_16 = arith.constant dense<0.000000e+00> : vector<48x128xf32>
    %38 = tpu.matmul %36, %37, %cst_16 {dimension_numbers = #tpu.dot_dimension_numbers<[1], [0], [0], [1], [0, 0, 1, 1], [], []>} : vector<48x640xbf16>, vector<640x128xbf16>, vector<48x128xf32> -> vector<48x128xf32>
    %c0_17 = arith.constant 0 : index
    %c0_18 = arith.constant 0 : index
    %39 = vector.load %arg7[%c0_17, %c0_18] : memref<1x128xf32, #tpu.memory_space<vmem>>, vector<1x128xf32>
    %40 = vector.broadcast %39 : vector<1x128xf32> to vector<48x128xf32>
    %41 = arith.addf %38, %40 : vector<48x128xf32>
    %cst_19 = arith.constant 0.000000e+00 : f32
    %42 = vector.shape_cast %9 : vector<48x1xi1> to vector<48x1xi1>
    %43 = vector.broadcast %42 : vector<48x1xi1> to vector<48x128xi1>
    %44 = vector.broadcast %cst_19 : f32 to vector<48x128xf32>
    %45 = arith.select %43, %41, %44 : vector<48x128xi1>, vector<48x128xf32>
    %cst_20 = arith.constant 0.000000e+00 : f32
    %46 = vector.broadcast %cst_20 : f32 to vector<48x128xf32>
    %47 = arith.cmpf oge, %45, %46 : vector<48x128xf32>
    %cst_21 = arith.constant 1.000000e-01 : f32
    %48 = vector.broadcast %cst_21 : f32 to vector<48x128xf32>
    %49 = arith.mulf %48, %45 : vector<48x128xf32>
    %50 = arith.select %47, %45, %49 : vector<48x128xi1>, vector<48x128xf32>
    %c2_i32_22 = arith.constant 2 : i32
    %51 = tpu.dynamic_rotate %50 by %c2_i32_22 dim 0 : vector<48x128xf32>, i32 -> vector<48x128xf32>
    %c1_i32_23 = arith.constant 1 : i32
    %52 = tpu.dynamic_rotate %50 by %c1_i32_23 dim 0 : vector<48x128xf32>, i32 -> vector<48x128xf32>
    %c47_i32_24 = arith.constant 47 : i32
    %53 = tpu.dynamic_rotate %50 by %c47_i32_24 dim 0 : vector<48x128xf32>, i32 -> vector<48x128xf32>
    %c46_i32_25 = arith.constant 46 : i32
    %54 = tpu.dynamic_rotate %50 by %c46_i32_25 dim 0 : vector<48x128xf32>, i32 -> vector<48x128xf32>
    %55 = tpu.concatenate %51, %52, %50, %53, %54 in 1 : vector<48x128xf32>, vector<48x128xf32>, vector<48x128xf32>, vector<48x128xf32>, vector<48x128xf32> -> vector<48x640xf32>
    %56 = arith.truncf %55 : vector<48x640xf32> to vector<48x640xbf16>
    %c0_26 = arith.constant 0 : index
    %c0_27 = arith.constant 0 : index
    %57 = vector.load %arg8[%c0_26, %c0_27] : memref<640x128xbf16, #tpu.memory_space<vmem>>, vector<640x128xbf16>
    %cst_28 = arith.constant dense<0.000000e+00> : vector<48x128xf32>
    %58 = tpu.matmul %56, %57, %cst_28 {dimension_numbers = #tpu.dot_dimension_numbers<[1], [0], [0], [1], [0, 0, 1, 1], [], []>} : vector<48x640xbf16>, vector<640x128xbf16>, vector<48x128xf32> -> vector<48x128xf32>
    %c0_29 = arith.constant 0 : index
    %c0_30 = arith.constant 0 : index
    %59 = vector.load %arg9[%c0_29, %c0_30] : memref<1x128xf32, #tpu.memory_space<vmem>>, vector<1x128xf32>
    %60 = vector.broadcast %59 : vector<1x128xf32> to vector<48x128xf32>
    %61 = arith.addf %58, %60 : vector<48x128xf32>
    %cst_31 = arith.constant 0.000000e+00 : f32
    %62 = vector.shape_cast %9 : vector<48x1xi1> to vector<48x1xi1>
    %63 = vector.broadcast %62 : vector<48x1xi1> to vector<48x128xi1>
    %64 = vector.broadcast %cst_31 : f32 to vector<48x128xf32>
    %65 = arith.select %63, %61, %64 : vector<48x128xi1>, vector<48x128xf32>
    %cst_32 = arith.constant 0.000000e+00 : f32
    %66 = vector.broadcast %cst_32 : f32 to vector<48x128xf32>
    %67 = arith.cmpf oge, %65, %66 : vector<48x128xf32>
    %cst_33 = arith.constant 1.000000e-01 : f32
    %68 = vector.broadcast %cst_33 : f32 to vector<48x128xf32>
    %69 = arith.mulf %68, %65 : vector<48x128xf32>
    %70 = arith.select %67, %65, %69 : vector<48x128xi1>, vector<48x128xf32>
    %c2_i32_34 = arith.constant 2 : i32
    %71 = tpu.dynamic_rotate %70 by %c2_i32_34 dim 0 : vector<48x128xf32>, i32 -> vector<48x128xf32>
    %c1_i32_35 = arith.constant 1 : i32
    %72 = tpu.dynamic_rotate %70 by %c1_i32_35 dim 0 : vector<48x128xf32>, i32 -> vector<48x128xf32>
    %c47_i32_36 = arith.constant 47 : i32
    %73 = tpu.dynamic_rotate %70 by %c47_i32_36 dim 0 : vector<48x128xf32>, i32 -> vector<48x128xf32>
    %c46_i32_37 = arith.constant 46 : i32
    %74 = tpu.dynamic_rotate %70 by %c46_i32_37 dim 0 : vector<48x128xf32>, i32 -> vector<48x128xf32>
    %75 = tpu.concatenate %71, %72, %70, %73, %74 in 1 : vector<48x128xf32>, vector<48x128xf32>, vector<48x128xf32>, vector<48x128xf32>, vector<48x128xf32> -> vector<48x640xf32>
    %76 = arith.truncf %75 : vector<48x640xf32> to vector<48x640xbf16>
    %c0_38 = arith.constant 0 : index
    %c0_39 = arith.constant 0 : index
    %77 = vector.load %arg10[%c0_38, %c0_39] : memref<640x128xbf16, #tpu.memory_space<vmem>>, vector<640x128xbf16>
    %cst_40 = arith.constant dense<0.000000e+00> : vector<48x128xf32>
    %78 = tpu.matmul %76, %77, %cst_40 {dimension_numbers = #tpu.dot_dimension_numbers<[1], [0], [0], [1], [0, 0, 1, 1], [], []>} : vector<48x640xbf16>, vector<640x128xbf16>, vector<48x128xf32> -> vector<48x128xf32>
    %c0_41 = arith.constant 0 : index
    %c0_42 = arith.constant 0 : index
    %79 = vector.load %arg11[%c0_41, %c0_42] : memref<1x128xf32, #tpu.memory_space<vmem>>, vector<1x128xf32>
    %80 = vector.broadcast %79 : vector<1x128xf32> to vector<48x128xf32>
    %81 = arith.addf %78, %80 : vector<48x128xf32>
    %cst_43 = arith.constant 0.000000e+00 : f32
    %82 = vector.shape_cast %9 : vector<48x1xi1> to vector<48x1xi1>
    %83 = vector.broadcast %82 : vector<48x1xi1> to vector<48x128xi1>
    %84 = vector.broadcast %cst_43 : f32 to vector<48x128xf32>
    %85 = arith.select %83, %81, %84 : vector<48x128xi1>, vector<48x128xf32>
    %cst_44 = arith.constant 0.000000e+00 : f32
    %86 = vector.broadcast %cst_44 : f32 to vector<48x128xf32>
    %87 = arith.cmpf oge, %85, %86 : vector<48x128xf32>
    %cst_45 = arith.constant 1.000000e-01 : f32
    %88 = vector.broadcast %cst_45 : f32 to vector<48x128xf32>
    %89 = arith.mulf %88, %85 : vector<48x128xf32>
    %90 = arith.select %87, %85, %89 : vector<48x128xi1>, vector<48x128xf32>
    %c0_46 = arith.constant 0 : index
    %c0_47 = arith.constant 0 : index
    %91 = vector.load %arg12[%c0_46, %c0_47] : memref<3x128xf32, #tpu.memory_space<vmem>>, vector<3x128xf32>
    %c1_i32_48 = arith.constant 1 : i32
    %92 = tpu.dynamic_rotate %90 by %c1_i32_48 dim 0 : vector<48x128xf32>, i32 -> vector<48x128xf32>
    %93 = vector.extract_strided_slice %91 {offsets = [0, 0], sizes = [1, 128], strides = [1, 1]} : vector<3x128xf32> to vector<1x128xf32>
    %94 = vector.broadcast %93 : vector<1x128xf32> to vector<48x128xf32>
    %95 = arith.mulf %92, %94 : vector<48x128xf32>
    %96 = vector.extract_strided_slice %91 {offsets = [1, 0], sizes = [1, 128], strides = [1, 1]} : vector<3x128xf32> to vector<1x128xf32>
    %97 = vector.broadcast %96 : vector<1x128xf32> to vector<48x128xf32>
    %98 = arith.mulf %90, %97 : vector<48x128xf32>
    %99 = arith.addf %95, %98 : vector<48x128xf32>
    %c47_i32_49 = arith.constant 47 : i32
    %100 = tpu.dynamic_rotate %90 by %c47_i32_49 dim 0 : vector<48x128xf32>, i32 -> vector<48x128xf32>
    %101 = vector.extract_strided_slice %91 {offsets = [2, 0], sizes = [1, 128], strides = [1, 1]} : vector<3x128xf32> to vector<1x128xf32>
    %102 = vector.broadcast %101 : vector<1x128xf32> to vector<48x128xf32>
    %103 = arith.mulf %100, %102 : vector<48x128xf32>
    %104 = arith.addf %99, %103 : vector<48x128xf32>
    %cst_50 = arith.constant dense<0.000000e+00> : vector<48xf32>
    %105 = vector.multi_reduction <add>, %104, %cst_50 [1] : vector<48x128xf32> to vector<48xf32>
    %106 = vector.shape_cast %105 : vector<48xf32> to vector<48x1xf32>
    %c0_51 = arith.constant 0 : index
    %c0_52 = arith.constant 0 : index
    %107 = vector.load %arg13[%c0_51, %c0_52] : memref<1x1xf32, #tpu.memory_space<vmem>>, vector<1x1xf32>
    %108 = vector.broadcast %107 : vector<1x1xf32> to vector<48x1xf32>
    %109 = arith.addf %106, %108 : vector<48x1xf32>
    %110 = vector.extract_strided_slice %109 {offsets = [8, 0], sizes = [32, 1], strides = [1, 1]} : vector<48x1xf32> to vector<32x1xf32>
    %111 = tpu.transpose %110, [1, 0] : vector<32x1xf32> -> vector<1x32xf32>
    %c0_53 = arith.constant 0 : index
    %c0_54 = arith.constant 0 : index
    %c0_55 = arith.constant 0 : index
    %112 = vector.load %arg14[%c0_53, %c0_54, %c0_55] : memref<1x1x32xf32, #tpu.memory_space<vmem>>, vector<1x1x32xf32>
    %113 = vector.shape_cast %112 : vector<1x1x32xf32> to vector<1x32xf32>
    %114 = vector.shape_cast %111 : vector<1x32xf32> to vector<1x1x32xf32>
    tpu.vector_store %arg14[%c0_53, %c0_54, %c0_55], %114 {strides = array<i32>} : memref<1x1x32xf32, #tpu.memory_space<vmem>>, vector<1x1x32xf32>,
    return
  }
  func.func @transform_0(%arg0: i32, %arg1: i32) -> (i32, i32, i32) {
    %c0_i32 = arith.constant 0 : i32
    %c0_i32_0 = arith.constant 0 : i32
    return %arg0, %arg1, %c0_i32 : i32, i32, i32
  }
  func.func @transform_1(%arg0: i32, %arg1: i32) -> (i32, i32, i32, i32) {
    %c0_i32 = arith.constant 0 : i32
    %c0_i32_0 = arith.constant 0 : i32
    %c0_i32_1 = arith.constant 0 : i32
    return %arg0, %arg1, %c0_i32, %c0_i32_0 : i32, i32, i32, i32
  }
  func.func @transform_2(%arg0: i32, %arg1: i32) -> (i32, i32) {
    %c0_i32 = arith.constant 0 : i32
    %c0_i32_0 = arith.constant 0 : i32
    %c0_i32_1 = arith.constant 0 : i32
    return %c0_i32, %c0_i32_0 : i32, i32
  }
  func.func @transform_3(%arg0: i32, %arg1: i32) -> (i32, i32) {
    %c0_i32 = arith.constant 0 : i32
    %c0_i32_0 = arith.constant 0 : i32
    %c0_i32_1 = arith.constant 0 : i32
    return %c0_i32, %c0_i32_0 : i32, i32
  }
  func.func @transform_4(%arg0: i32, %arg1: i32) -> (i32, i32) {
    %c0_i32 = arith.constant 0 : i32
    %c0_i32_0 = arith.constant 0 : i32
    %c0_i32_1 = arith.constant 0 : i32
    return %c0_i32, %c0_i32_0 : i32, i32
  }
  func.func @transform_5(%arg0: i32, %arg1: i32) -> (i32, i32) {
    %c0_i32 = arith.constant 0 : i32
    %c0_i32_0 = arith.constant 0 : i32
    %c0_i32_1 = arith.constant 0 : i32
    return %c0_i32, %c0_i32_0 : i32, i32
  }
  func.func @transform_6(%arg0: i32, %arg1: i32) -> (i32, i32) {
    %c0_i32 = arith.constant 0 : i32
    %c0_i32_0 = arith.constant 0 : i32
    %c0_i32_1 = arith.constant 0 : i32
    return %c0_i32, %c0_i32_0 : i32, i32
  }
  func.func @transform_7(%arg0: i32, %arg1: i32) -> (i32, i32) {
    %c0_i32 = arith.constant 0 : i32
    %c0_i32_0 = arith.constant 0 : i32
    %c0_i32_1 = arith.constant 0 : i32
    return %c0_i32, %c0_i32_0 : i32, i32
  }
  func.func @transform_8(%arg0: i32, %arg1: i32) -> (i32, i32) {
    %c0_i32 = arith.constant 0 : i32
    %c0_i32_0 = arith.constant 0 : i32
    %c0_i32_1 = arith.constant 0 : i32
    return %c0_i32, %c0_i32_0 : i32, i32
  }
  func.func @transform_9(%arg0: i32, %arg1: i32) -> (i32, i32) {
    %c0_i32 = arith.constant 0 : i32
    %c0_i32_0 = arith.constant 0 : i32
    %c0_i32_1 = arith.constant 0 : i32
    return %c0_i32, %c0_i32_0 : i32, i32
  }
  func.func @transform_10(%arg0: i32, %arg1: i32) -> (i32, i32) {
    %c0_i32 = arith.constant 0 : i32
    %c0_i32_0 = arith.constant 0 : i32
    %c0_i32_1 = arith.constant 0 : i32
    return %c0_i32, %c0_i32_0 : i32, i32
  }
  func.func @transform_11(%arg0: i32, %arg1: i32) -> (i32, i32) {
    %c0_i32 = arith.constant 0 : i32
    %c0_i32_0 = arith.constant 0 : i32
    %c0_i32_1 = arith.constant 0 : i32
    return %c0_i32, %c0_i32_0 : i32, i32
  }
  func.func @transform_12(%arg0: i32, %arg1: i32) -> (i32, i32, i32) {
    %c0_i32 = arith.constant 0 : i32
    %c0_i32_0 = arith.constant 0 : i32
    return %arg0, %c0_i32, %arg1 : i32, i32, i32
  }
}

</mosaic_0001>

<bundles_post_ra>
// kernel: tpu_custom_call.1
= control target key start
LH: loop header
LB: loop body
LE: loop exit
PB: predicated region body
PF: predicated region fallthrough
CT: control target
= control target key end

     0   :  { %s4600_s0 = inlined_call_operand.hbm [shape: f32[2,32,128], index: 0, kind: input, shape index: {}]   ;;  %s4601_s1 = inlined_call_operand.hbm [shape: f32[2,1,16,128], index: 1, kind: input, shape index: {}]   ;;  %s4602_s2 = inlined_call_operand.hbm [shape: bf16[128,128], index: 2, kind: input, shape index: {}]   ;;  %s4603_s3 = inlined_call_operand.vmem [shape: f32[1,128], index: 3, kind: input, shape index: {}]   ;;  %s4604_s4 = inlined_call_operand.hbm [shape: bf16[640,128], index: 4, kind: input, shape index: {}]   ;;  %s4605_s5 = inlined_call_operand.vmem [shape: f32[1,128], index: 5, kind: input, shape index: {}]   ;;  %s4606_s6 = inlined_call_operand.hbm [shape: bf16[640,128], index: 6, kind: input, shape index: {}]   ;;  %s4607_s7 = inlined_call_operand.vmem [shape: f32[1,128], index: 7, kind: input, shape index: {}]   ;;  %s4608_s8 = inlined_call_operand.hbm [shape: bf16[640,128], index: 8, kind: input, shape index: {}]   ;;  %s4609_s9 = inlined_call_operand.vmem [shape: f32[1,128], index: 9, kind: input, shape index: {}]   ;;  %s4610_s10 = inlined_call_operand.vmem [shape: f32[3,128], index: 10, kind: input, shape index: {}]   ;;  %s4611_s11 = inlined_call_operand.<no memory space> [shape: f32[1,1], index: 11, kind: input, shape index: {}]   ;;  %s4612_s12 = inlined_call_operand.hbm [shape: f32[2,1,32], index: 12, kind: output, shape index: {}]  }
   0x1   :  { %4621 = sst [smem:[#allocation28_spill]] %s4600_s0  ;;  %v17_v0 = vstv %s4611_s11 }
   0x2   :  { %4622 = sst [smem:[#allocation29_spill]] %s4602_s2  ;;  %18 = vst [vmem:[#allocation2] sm:$0x1] %v17_v0 }
   0x3   :  { %4623 = sst [smem:[#allocation30_spill]] %s4604_s4 }
   0x4   :  { %4624 = sst [smem:[#allocation31_spill]] %s4606_s6 }
   0x5   :  { %4625 = sst [smem:[#allocation32_spill]] %s4608_s8 }
   0x6   :  { %4626 = sst [smem:[#allocation33_spill]] %s4612_s12 }
   0x7   :  { %19 = vsyncpa [#allocation4], 0 }
   0x8   :  { %21 = vsyncpa [#allocation4 + $0x1], 0 }
   0x9   :  { %22 = vsyncpa [#allocation7], 0 }
   0xa   :  { %24 = vsyncpa [#allocation7 + $0x1], 0 }
   0xb   :  { %25 = vsyncpa [#allocation10], 0 }
   0xc   :  { %26 = vsyncpa [#allocation13], 0 }
   0xd   :  { %27 = vsyncpa [#allocation5], 0 }
   0xe   :  { %29 = vsyncpa [#allocation5 + $0x1], 0  ;;  %s3991_s23 = smov 0   ;;  %s3993_s24 = smov 0  }
   0xf   :  { %s3995_s25 = smov 0   ;;  %s3997_s26 = smov 0  }
  0x10   :  { %s3999_s27 = smov 0   ;;  %s4001_s11 = smov 0  }
  0x11 LB: > { %4627 = sst [smem:[#allocation21_spill]] %s3888_s23  ;;  %s4022_s28 = sadd.s32 4294967295, %s3908_s11   ;;  %s3908_s11 = sphi %s4001_s11, %s35_s11   ;;  %s3904_s27 = sphi %s3999_s27, %s4663_s27   ;;  %s3900_s26 = sphi %s3997_s26, %s4662_s26   ;;  %s3896_s25 = sphi %s3995_s25, %s4658_s25   ;;  %s3892_s24 = sphi %s3993_s24, %s4661_s24   ;;  %s3888_s23 = sphi %s3991_s23, %s4660_s23  }
  0x12   : > { %4628 = sst [smem:[#allocation22_spill]] %s3896_s25  ;;  %s2843_s29 = sadd.s32 4294967294, %s3908_s11  }
  0x13   : > { %4629 = sst [smem:[#allocation23_spill]] %s3900_s26  ;;  %p69_p0 = scmp.ne.s32.totalorder %s3892_s24, %s3888_s23 }
  0x14   : > { %p4615_p1 = scmp.eq.s32.totalorder %s4022_s28, 0  ;;  %p333_p2 = scmp.eq.s32.totalorder %s4022_s28, 1 }
  0x15   : > { %p339_p3 = scmp.eq.s32.totalorder %s2843_s29, 1  ;;  %p2844_p5 = scmp.ge.s32.totalorder %s3908_s11, 1 }
  0x16   : > { %p4031_p4 = por %p4615_p1, %p69_p0  ;;  %p346_p7 = scmp.lt.s32.totalorder %s3908_s11, 3 }
  0x17   : > { %p4036_p6 = por %p339_p3, %p69_p0  ;;  %s3910_s15 = smov [#allocation8]  }
  0x18   : > { %p4041_p8 = pnand %p2844_p5, %p346_p7  ;;  %s358_s16 = sshll.u32 %s3910_s15, 4  ;;  %s359_s16 = int_to_ptr.vmem [resolvable:$true] %s358_s16 }
  0x19   : > { %s4631_s13 = scalar_select %p4036_p6, 1, 0 }
  0x1a   : > { %p3432_p9 = pneg %p4041_p8  ;;  %s3911_s18 = smov [#allocation9]  }
  0x1b   : > { %4632 = sst [smem:[#allocation24_spill]] %s4631_s13  ;;  %s374_s19 = sshll.u32 %s3911_s18, 4  ;;  %s375_s19 = int_to_ptr.vmem [resolvable:$true] %s374_s19 }
  0x1c   : > { %p4050_p11 = pnand %p3432_p9, %p4615_p1  ;;  %s3912_s20 = smov [#allocation11]  }
  0x1d   : > { %s390_s21 = sshll.u32 %s3912_s20, 4  ;;  %s3663_s22 = scalar_lea.vmem %s359_s16, 1024  ;;  %s391_s21 = int_to_ptr.vmem [resolvable:$true] %s390_s21 }
  0x1e   : > { %p3654_p12 = pneg %p4050_p11  ;;  %p3664_p13 = scmp.ne.s32.totalorder %s359_s16, %s3663_s22 }
  0x1f   : > { %p3671_p5 = scmp.lt.s32.totalorder %s359_s16, %s359_s16  ;;  %p3672_p7 = scmp.lt.s32.totalorder %s3663_s22, %s3663_s22 }
  0x20   : > { %p3666_p0 = pnand %p3664_p13, %p3654_p12 }
  0x21   : > { %p3673_p9 = por %p3672_p7, %p3671_p5 }
  0x22   : > { %p3667_p3 = pneg %p3666_p0 }
  0x24   : > { %p3674_p10 = pnand %p3673_p9, %p3667_p3 }
  0x26   : > { %3677 = shalt.err (!%p3674_p10)
}
  0x27   : > { %s3913_s29 = smov 64   ;;  %s3914_s15 = smov 4  }
  0x28   : > { %s4635_s2 = sld [smem:[#allocation29_spill]]  ;;  %s3689_s13 = scalar_lea.vmem %s375_s19, 5120 }
  0x29   : > { %p3690_p13 = scmp.ne.s32.totalorder %s375_s19, %s3689_s13  ;;  %p3697_p3 = scmp.lt.s32.totalorder %s375_s19, %s375_s19 }
  0x2a   : > { %p3698_p10 = scmp.lt.s32.totalorder %s3689_s13, %s3689_s13 }
  0x2b   : > { %p3692_p0 = pnand %p3690_p13, %p3654_p12 }
  0x2c   : > { %p3699_p7 = por %p3698_p10, %p3697_p3 }
  0x2d   : > { %p3693_p5 = pneg %p3692_p0 }
  0x2e   : > { %3435 = dma.hbm_to_vmem [thread:$0]  (!%p4050_p11), %s4635_s2, 1024, %s359_s16, [#allocation7], %s3913_s29, %s3913_s29, %s3914_s15  }
  0x2f   : > { %p3700_p9 = pnand %p3699_p7, %p3693_p5 }
  0x31   : > { %3703 = shalt.err (!%p3700_p9)
}
  0x32   : > { %s4636_s4 = sld [smem:[#allocation30_spill]]  ;;  %s3715_s16 = scalar_lea.vmem %s391_s21, 5120 }
  0x33   : > { %p3716_p1 = scmp.ne.s32.totalorder %s391_s21, %s3715_s16  ;;  %p3723_p3 = scmp.lt.s32.totalorder %s391_s21, %s391_s21 }
  0x34   : > { %p3724_p5 = scmp.lt.s32.totalorder %s3715_s16, %s3715_s16 }
  0x35   : > { %p3718_p13 = pnand %p3716_p1, %p3654_p12 }
  0x36   : > { %p3725_p10 = por %p3724_p5, %p3723_p3 }
  0x37   : > { %p3719_p0 = pneg %p3718_p13 }
  0x38   : > { %3438 = dma.hbm_to_vmem [thread:$0]  (!%p4050_p11), %s4636_s4, 5120, %s375_s19, [#allocation10], %s3913_s29, %s3913_s29, %s3914_s15  }
  0x39   : > { %p3726_p7 = pnand %p3725_p10, %p3719_p0 }
  0x3b   : > { %3729 = shalt.err (!%p3726_p7)
}
  0x3c   : > { %s4637_s6 = sld [smem:[#allocation31_spill]]  ;;  %s3915_s19 = smov [#allocation12]  }
  0x3d   : > { %s406_s18 = sshll.u32 %s3915_s19, 4  ;;  %s407_s18 = int_to_ptr.vmem [resolvable:$true] %s406_s18 }
  0x3e   : > { %s3741_s20 = scalar_lea.vmem %s407_s18, 5120  ;;  %p3749_p0 = scmp.lt.s32.totalorder %s407_s18, %s407_s18 }
  0x3f   : > { %p3742_p1 = scmp.ne.s32.totalorder %s407_s18, %s3741_s20  ;;  %p3750_p3 = scmp.lt.s32.totalorder %s3741_s20, %s3741_s20 }
  0x41   : > { %p3744_p9 = pnand %p3742_p1, %p3654_p12  ;;  %p3751_p5 = por %p3750_p3, %p3749_p0 }
  0x42   : > { %3441 = dma.hbm_to_vmem [thread:$0]  (!%p4050_p11), %s4637_s6, 5120, %s391_s21, [#allocation10], %s3913_s29, %s3913_s29, %s3914_s15  }
  0x43   : > { %p3745_p13 = pneg %p3744_p9 }
  0x45   : > { %p3752_p10 = pnand %p3751_p5, %p3745_p13 }
  0x47   : > { %3755 = shalt.err (!%p3752_p10)
}
  0x48   : > { %s4638_s8 = sld [smem:[#allocation32_spill]]  ;;  %s47_s16 = sadd.s32 1, %s3904_s27 }
  0x49   : > { %s56_s17 = sadd.s32 1, %s3896_s25  ;;  %p49_p12 = scmp.ge.s32.totalorder %s47_s16, 2 }
  0x4a   : > { %p63_p7 = scmp.ne.s32.totalorder %s3896_s25, %s3892_s24  ;;  %p64_p1 = scmp.eq.s32.totalorder %s3908_s11, 0 }
  0x4b   : > { %p3460_p9 = scmp.lt.s32.totalorder %s3908_s11, 2  ;;  %s4665_s16 = smov (%p49_p12, %s47_s16), 0 }
  0x4c   : > { %4639 = sst [smem:[#allocation25_spill]] %s4665_s16  ;;  %p65_p13 = por %p64_p1, %p63_p7 }
  0x4d   : > { %p4110_p0 = por %p333_p2, %p63_p7  ;;  %s51_s13 = ssub.s32 %s3904_s27, %s4665_s16 }
  0x4e   : > { %3444 = dma.hbm_to_vmem [thread:$0]  (!%p4050_p11), %s4638_s8, 5120, %s407_s18, [#allocation13], %s3913_s29, %s3913_s29, %s3914_s15  }
  0x4f   : > { %s4640_s23 = scalar_select %p4110_p0, 1, 0 }
  0x50   : > { %s4117_s19 = sand.u32 1, %s3896_s25   ;;  %p54_p11 = scmp.eq.s32.totalorder %s51_s13, 0 }
  0x51   : > { %4641 = sst [smem:[#allocation26_spill]] %s4640_s23  ;;  %s2850_s29 = sshll.u32 %s4117_s19, 5 }
  0x52   : > { %s2999_s15 = sshll.u32 %s3904_s27, 9  ;;  %s4643_s0 = sld [smem:[#allocation28_spill]] }
  0x53   : > { %s4122_s18 = scalar_select %p54_p11, %s3896_s25, %s56_s17  }
  0x54   : > { %s433_s2 = scalar_lea.vmem [#allocation3], %s2850_s29  ;;  %p4129_p2 = pnand %p3460_p9, %p65_p13 }
  0x55   : > { %4642 = sst [smem:[#allocation27_spill]] %s4122_s18  ;;  %s442_s4 = sshll.u32 %s433_s2, 4  ;;  %s443_s4 = int_to_ptr.vmem [resolvable:$true] %s442_s4 }
  0x56   : > { %s430_s8 = scalar_lea.sflag [#allocation4], %s4117_s19  ;;  %p3758_p3 = pneg %p4129_p2 }
  0x57   : > { %s3769_s13 = scalar_lea.vmem %s443_s4, 512  ;;  %s3916_s17 = smov [#allocation3]  }
  0x58   : > { %s441_s22 = scalar_lea.hbm %s4643_s0, %s2999_s15  ;;  %p3770_p5 = scmp.ne.s32.totalorder %s443_s4, %s3769_s13 }
  0x59   : > { %s3774_s29 = sshll.u32 %s3916_s17, 4  ;;  %s3775_s29 = int_to_ptr.vmem [resolvable:$false] %s3774_s29 }
  0x5a   : > { %p3772_p10 = pnand %p3770_p5, %p3758_p3  ;;  %s3776_s2 = scalar_lea.vmem %s3775_s29, 1024 }
  0x5b   : > { %p3777_p7 = scmp.lt.s32.totalorder %s443_s4, %s3775_s29  ;;  %p3778_p1 = scmp.lt.s32.totalorder %s3776_s2, %s3769_s13 }
  0x5c   : > { %p3773_p12 = pneg %p3772_p10 }
  0x5d   : > { %p3779_p9 = por %p3778_p1, %p3777_p7 }
  0x5f   : > { %p3780_p13 = pnand %p3779_p9, %p3773_p12 }
  0x61   : > { %3783 = shalt.err (!%p3780_p13)
}
  0x62   : > { %s3917_s15 = smov 128   ;;  %s3918_s20 = smov 8  }
  0x63   : > { %3448 = dma.hbm_to_vmem [thread:$0]  (!%p4129_p2), %s441_s22, 512, %s443_s4, %s430_s8, %s3917_s15, %s3917_s15, %s3918_s20  }
  0x64   : > { %s452_s21 = sand.u32 1, %s3908_s11   ;;  %s2853_s0 = sshll.u32 %s4117_s19, 4 }
  0x65   : > { %s3000_s16 = sshll.u32 %s3904_s27, 8  ;;  %s456_s17 = scalar_lea.vmem [#allocation6], %s2853_s0 }
  0x66   : > { %s465_s18 = sshll.u32 %s456_s17, 4  ;;  %s464_s13 = scalar_lea.hbm %s4601_s1, %s3000_s16  ;;  %s466_s18 = int_to_ptr.vmem [resolvable:$true] %s465_s18 }
  0x67   : > { %s453_s2 = scalar_lea.sflag [#allocation7], %s452_s21  ;;  %s3797_s12 = scalar_lea.vmem %s466_s18, 256 }
  0x68   : > { %p3798_p11 = scmp.ne.s32.totalorder %s466_s18, %s3797_s12  ;;  %s3919_s23 = smov [#allocation6]  }
  0x69   : > { %s3802_s26 = sshll.u32 %s3919_s23, 4  ;;  %s3803_s26 = int_to_ptr.vmem [resolvable:$false] %s3802_s26 }
  0x6a   : > { %p3800_p5 = pnand %p3798_p11, %p3758_p3  ;;  %s3804_s4 = scalar_lea.vmem %s3803_s26, 512 }
  0x6b   : > { %p3805_p12 = scmp.lt.s32.totalorder %s466_s18, %s3803_s26  ;;  %p3806_p7 = scmp.lt.s32.totalorder %s3804_s4, %s3797_s12 }
  0x6c   : > { %p3801_p10 = pneg %p3800_p5 }
  0x6d   : > { %p3807_p1 = por %p3806_p7, %p3805_p12 }
  0x6f   : > { %p3808_p9 = pnand %p3807_p1, %p3801_p10 }
  0x71   : > { %3811 = shalt.err (!%p3808_p9)
}
  0x72   : > { %3451 = dma.hbm_to_vmem [thread:$0]  (!%p4129_p2), %s464_s13, 256, %s466_s18, %s453_s2, %s3917_s15, %s3917_s15, %s3918_s20  }
  0x73   : > { %477 = sbr.rel (%p4041_p8) target bundleno = 1374 (0x55e), region = 68  ;;  %s4155_s0 = sand.u32 (!%p4041_p8), 1, %s3892_s24  }
  0x74   : > { %s2857_s8 = sshll.u32 (!%p4041_p8), %s4155_s0, 5  ;;  %s480_s25 = scalar_lea.sflag (!%p4041_p8), [#allocation4], %s4155_s0 }
  0x75   : > { %s4159_s16 = scalar_lea.vmem (!%p4041_p8), [#allocation3], %s2857_s8 }
  0x78   : > { %3863 = dma.done.wait (%p4031_p4), %s480_s25, 512  }
  0x79   : > { %3865 = vsyncadd (%p4031_p4), %s480_s25, 4294966784  ;;  %s488_s6 = sand.u32 1, %s4022_s28   ;;  %s2858_s12 = sshll.u32 %s4155_s0, 4 }
  0x7a   : > { %s489_s26 = scalar_lea.sflag [#allocation7], %s488_s6  ;;  %s4167_s14 = scalar_lea.vmem [#allocation6], %s2858_s12 }
  0x7b   : > { %3867 = dma.done.wait (%p4031_p4), %s489_s26, 256  }
  0x7c   : > { %3869 = vsyncadd (%p4031_p4), %s489_s26, 4294967040  ;;  %p4645_p8 = scmp.eq.s32.totalorder %s4022_s28, 0 }
  0x7e   : > { %3871 = dma.done.wait (%p4645_p8), [#allocation7], 1024   ;;  %p4646_p2 = pmov %p4645_p8 }
  0x80   : > { %3873 = vsyncadd (%p4646_p2), [#allocation7], 4294966272  ;;  %p4647_p3 = pmov %p4646_p2 }
  0x81   : > { %p4648_p13 = pmov %p4646_p2 }
  0x82   : > { %3875 = dma.done.wait (%p4647_p3), [#allocation10], 10240  }
  0x83   : > { %3877 = vsyncadd (%p4648_p13), [#allocation10], 4294957056  ;;  %p4649_p11 = pmov %p4646_p2 }
  0x84   : > { %p4650_p5 = pmov %p4646_p2 }
  0x85   : > { %3879 = dma.done.wait (%p4649_p11), [#allocation13], 5120  }
  0x86   : > { %3881 = vsyncadd (%p4650_p5), [#allocation13], 4294962176  ;;  %v3920_v1 = vmov 0.0   ;;  %vm3921_vm0 = vmmov 0   ;;  %v3524_v2 = vld [vmem:[#allocation8 + $0x38] sm:$0xff]   ;;  %v3525_v3 = vld [vmem:[#allocation8 + $0x30] sm:$0xff]   ;;  %v557_v52 = vlaneseq }
  0x87   : > { %3266 = vmatprep.subr.bf16.mxu0 %v3920_v1  ;;  %3282 = vmatprep.mubr.msk.bf16.mxu0 %vm3921_vm0, %v3920_v1  ;;  %v3526_v4 = vld [vmem:[#allocation8 + $0x28] sm:$0xff]   ;;  %v3527_v5 = vld [vmem:[#allocation8 + $0x20] sm:$0xff]   ;;  %v3528_v9 = vld [vmem:[#allocation8 + $0x18] sm:$0xff]   ;;  %v4220_v60 = vrot.slane %v3920_v1, 7  ;;  %v4223_v61 = vrot.slane %v3920_v1, 6  ;;  %s4651_s29 = sld [smem:[#allocation23_spill]] }
  0x88   : > { %3286 = vmatprep.subr.bf16.mxu1 %v3524_v2  ;;  %3267 = vmatpush3.bf16.msra.mxu0 %v3524_v2  ;;  %v696_v6 = vld [vmem:[%s4159_s16] sm:$0xff]  ;;  %v697_v7 = vld [vmem:[%s4159_s16 + $0x8] sm:$0xff]  ;;  %v3529_v10 = vld [vmem:[#allocation8 + $0x10] sm:$0xff]   ;;  %v4212_v55 = vshrl.u32 %v557_v52, 7  ;;  %s552_s4 = scalar_lea.vmem [#allocation14], %s4155_s0  ;;  %s4653_s6 = sld [smem:[#allocation33_spill]] }
  0x89   : > { %3287 = vmatpush3.bf16.msra.mxu1 %v3524_v2  ;;  %3268 = vmatprep.subr.bf16.mxu0 %v3920_v1  ;;  %v700_v8 = vpack.c.bf16 %v697_v7, %v696_v6  ;;  %v3530_v11 = vld [vmem:[#allocation8 + $0x8] sm:$0xff]   ;;  %v3531_v12 = vld [vmem:[#allocation8] sm:$0xff]   ;;  %v698_v13 = vld [vmem:[%s4159_s16 + $0x10] sm:$0xff]  ;;  %v4234_v7 = vrot.slane %v3920_v1, 1  ;;  %s2700_s8 = sshll.u32 %s552_s4, 4  ;;  %s2687_s26 = scalar_lea.sflag [#allocation5], %s4155_s0  ;;  %s2701_s8 = int_to_ptr.vmem [resolvable:$true] %s2700_s8 }
  0x8a   : > { %3288 = vmatprep.subr.bf16.mxu1 %v3525_v3  ;;  %v605_v14 = vld [vmem:[%s4167_s14] sm:$0xff]  ;;  %v699_v15 = vld [vmem:[%s4159_s16 + $0x18] sm:$0xff]  ;;  %v3538_v22 = vld [vmem:[#allocation9 + $0x68] sm:$0xff]   ;;  %vm842_vm1 = vcmp.lt.s32.totalorder %v4212_v55, 1  ;;  %vm829_vm2 = vcmp.lt.s32.totalorder %v4212_v55, 2  ;;  %vm855_vm3 = vcmp.lt.s32.totalorder %v4212_v55, 7 }
  0x8b   : > { %3302 = vmatprep.mubr.bf16.mxu1 %v700_v8  ;;  %v3532_v16 = vld [vmem:[#allocation9 + $0x78] sm:$0xff]   ;;  %v607_v17 = vpack.c.bf16 %v605_v14, %v605_v14  ;;  %v701_v19 = vpack.c.bf16 %v699_v15, %v698_v13  ;;  %v3534_v20 = vld [vmem:[#allocation9 + $0x70] sm:$0xff]   ;;  %v3539_v23 = vld [vmem:[#allocation9 + $0x28] sm:$0xff]   ;;  %vm868_vm4 = vcmp.lt.s32.totalorder %v4212_v55, 6  ;;  %s3922_s28 = smov [#allocation14]  }
  0x8c   : > { %3269 = vmatpush3.bf16.msra.mxu0 %v3525_v3  ;;  %v3533_v18 = vld [vmem:[#allocation9 + $0x38] sm:$0xff]   ;;  %v3535_v21 = vld [vmem:[#allocation9 + $0x30] sm:$0xff]   ;;  %v3542_v24 = vld [vmem:[#allocation9 + $0x60] sm:$0xff]   ;;  %s3816_s30 = sshll.u32 %s3922_s28, 4  ;;  %s3817_s30 = int_to_ptr.vmem [resolvable:$false] %s3816_s30 }
  0x8d   : > { %3289 = vmatpush3.bf16.msra.mxu1 %v3525_v3  ;;  %3270 = vmatprep.subr.bf16.mxu0 %v3920_v1  ;;  %v3543_v25 = vld [vmem:[#allocation9 + $0x20] sm:$0xff]   ;;  %v3546_v26 = vld [vmem:[#allocation9 + $0x58] sm:$0xff]   ;;  %v3550_v28 = vld [vmem:[#allocation9 + $0x50] sm:$0xff]   ;;  %s2996_s2 = sshll.u32 %s4651_s29, 4  ;;  %s3818_s23 = scalar_lea.vmem %s3817_s30, 32 }
  0x8e   : > { %3290 = vmatprep.subr.bf16.mxu1 %v3526_v4  ;;  %v3547_v27 = vld [vmem:[#allocation9 + $0x18] sm:$0xff]   ;;  %v3551_v29 = vld [vmem:[#allocation9 + $0x10] sm:$0xff]   ;;  %v3544_v36 = vld [vmem:[#allocation9 + $0xe8] sm:$0xff]   ;;  %s4558_s12 = scalar_lea.hbm %s4653_s6, %s2996_s2  ;;  %p3819_p7 = scmp.lt.s32.totalorder %s2701_s8, %s3817_s30 }
  0x8f   : > { %v606_v30 = vld [vmem:[%s4167_s14 + $0x8] sm:$0xff]  ;;  %v3540_v34 = vld [vmem:[#allocation9 + $0xf0] sm:$0xff]   ;;  %v3548_v38 = vld [vmem:[#allocation9 + $0xe0] sm:$0xff]   ;;  %s3812_s14 = scalar_lea.vmem %s2701_s8, 16 }
  0x90   : > { %3271 = vmatpush3.bf16.msra.mxu0 %v3526_v4  ;;  %v3536_v31 = vld [vmem:[#allocation9 + $0xf8] sm:$0xff]   ;;  %v751_v33 = vpack.c.bf16 %v606_v30, %v606_v30  ;;  %v3541_v35 = vld [vmem:[#allocation9 + $0xb0] sm:$0xff]   ;;  %v3545_v37 = vld [vmem:[#allocation9 + $0xa8] sm:$0xff]   ;;  %p3813_p4 = scmp.ne.s32.totalorder %s2701_s8, %s3812_s14  ;;  %p3820_p1 = scmp.lt.s32.totalorder %s3818_s23, %s3812_s14 }
  0x91   : > { %3291 = vmatpush3.bf16.msra.mxu1 %v3526_v4  ;;  %3272 = vmatprep.subr.bf16.mxu0 %v3920_v1  ;;  %v3537_v32 = vld [vmem:[#allocation9 + $0xb8] sm:$0xff]   ;;  %v3549_v39 = vld [vmem:[#allocation9 + $0xa0] sm:$0xff]   ;;  %v3554_v42 = vld [vmem:[#allocation9 + $0x48] sm:$0xff]  }
  0x92   : > { %3292 = vmatprep.subr.bf16.mxu1 %v3527_v5  ;;  %v3552_v40 = vld [vmem:[#allocation9 + $0xd8] sm:$0xff]   ;;  %v3555_v43 = vld [vmem:[#allocation9 + $0x8] sm:$0xff]   ;;  %v3556_v44 = vld [vmem:[#allocation9 + $0xd0] sm:$0xff]   ;;  %p3814_p10 = pnand %p3813_p4, %p4110_p0  ;;  %p3821_p9 = por %p3820_p1, %p3819_p7 }
  0x93   : > { %v3553_v41 = vld [vmem:[#allocation9 + $0x98] sm:$0xff]   ;;  %v3557_v45 = vld [vmem:[#allocation9 + $0x90] sm:$0xff]   ;;  %v3558_v46 = vld [vmem:[#allocation9 + $0x40] sm:$0xff]  }
  0x94   : > { %3273 = vmatpush3.bf16.msra.mxu0 %v3527_v5  ;;  %v3559_v47 = vld [vmem:[#allocation9] sm:$0xff]   ;;  %v3560_v48 = vld [vmem:[#allocation9 + $0xc8] sm:$0xff]   ;;  %v2871_v56 = vld [vmem:[%s4603_s3] ss:$0 sm:$0xff]  ;;  %p3815_p12 = pneg %p3814_p10 }
  0x95   : > { %3293 = vmatpush3.bf16.msra.mxu1 %v3527_v5  ;;  %3274 = vmatprep.subr.bf16.mxu0 %v3920_v1  ;;  %v3561_v49 = vld [vmem:[#allocation9 + $0x88] sm:$0xff]   ;;  %v3562_v50 = vld [vmem:[#allocation9 + $0xc0] sm:$0xff]   ;;  %v3563_v14 = vld [vmem:[#allocation9 + $0x138] sm:$0xff]  }
  0x96   : > { %3294 = vmatprep.subr.bf16.mxu1 %v3528_v9  ;;  %v3564_v51 = vld [vmem:[#allocation9 + $0x80] sm:$0xff]   ;;  %p3822_p8 = pnand %p3821_p9, %p3815_p12 }
  0x98   : > { %3275 = vmatpush3.bf16.msra.mxu0 %v3528_v9 }
  0x99   : > { %3295 = vmatpush3.bf16.msra.mxu1 %v3528_v9  ;;  %3276 = vmatprep.subr.bf16.mxu0 %v3920_v1 }
  0x9a   : > { %3296 = vmatprep.subr.bf16.mxu1 %v3529_v10 }
  0x9c   : > { %3277 = vmatpush3.bf16.msra.mxu0 %v3529_v10 }
  0x9d   : > { %3297 = vmatpush3.bf16.msra.mxu1 %v3529_v10  ;;  %3278 = vmatprep.subr.bf16.mxu0 %v3920_v1 }
  0x9e   : > { %3298 = vmatprep.subr.bf16.mxu1 %v3530_v11 }
  0xa0   : > { %3279 = vmatpush3.bf16.msra.mxu0 %v3530_v11 }
  0xa1   : > { %3299 = vmatpush3.bf16.msra.mxu1 %v3530_v11  ;;  %3280 = vmatprep.subr.bf16.mxu0 %v3920_v1 }
  0xa2   : > { %3300 = vmatprep.subr.bf16.mxu1 %v3531_v12 }
  0xa4   : > { %3281 = vmatpush3.bf16.msra.mxu0 %v3531_v12 }
  0xa5   : > { %3301 = vmatpush3.bf16.msra.mxu1 %v3531_v12  ;;  %3306 = vmatprep.subr.bf16.mxu0 %v3920_v1 }
  0xa6   : > { %3029 = vmatprep.subr.bf16.mxu1 %v3532_v16 }
  0xa7   : > { %3283 = vmatmul.mubr.bf16.vlgmr.msra.gmra.mxu0 %v607_v17 }
  0xa8   : > { %3303 = vmatmul.mubr.bf16.vlgmr.msra.gmra.mxu1 %v701_v19  ;;  %3307 = vmatpush3.bf16.msra.mxu0 %v3524_v2 }
  0xa9   : > { %3308 = vmatprep.subr.bf16.mxu0 %v3920_v1  ;;  %3030 = vmatpush3.bf16.msra.mxu1 %v3533_v18 }
  0xaa   : > { %3031 = vmatprep.subr.bf16.mxu1 %v3534_v20  ;;  %3322 = vmatprep.mubr.msk.bf16.mxu0 %vm3921_vm0, %v3920_v1 }
  0xac   : > { %3309 = vmatpush3.bf16.msra.mxu0 %v3525_v3 }
  0xad   : > { %3310 = vmatprep.subr.bf16.mxu0 %v3920_v1  ;;  %3032 = vmatpush3.bf16.msra.mxu1 %v3535_v21 }
  0xae   : > { %3033 = vmatprep.subr.bf16.mxu1 %v3538_v22 }
  0xb0   : > { %3311 = vmatpush3.bf16.msra.mxu0 %v3526_v4 }
  0xb1   : > { %3312 = vmatprep.subr.bf16.mxu0 %v3920_v1  ;;  %3034 = vmatpush3.bf16.msra.mxu1 %v3539_v23 }
  0xb2   : > { %3035 = vmatprep.subr.bf16.mxu1 %v3542_v24 }
  0xb4   : > { %3313 = vmatpush3.bf16.msra.mxu0 %v3527_v5 }
  0xb5   : > { %3314 = vmatprep.subr.bf16.mxu0 %v3920_v1  ;;  %3036 = vmatpush3.bf16.msra.mxu1 %v3543_v25 }
  0xb6   : > { %3037 = vmatprep.subr.bf16.mxu1 %v3546_v26 }
  0xb8   : > { %3315 = vmatpush3.bf16.msra.mxu0 %v3528_v9 }
  0xb9   : > { %3316 = vmatprep.subr.bf16.mxu0 %v3920_v1  ;;  %3038 = vmatpush3.bf16.msra.mxu1 %v3547_v27 }
  0xba   : > { %3039 = vmatprep.subr.bf16.mxu1 %v3550_v28 }
  0xbc   : > { %3317 = vmatpush3.bf16.msra.mxu0 %v3529_v10 }
  0xbd   : > { %3318 = vmatprep.subr.bf16.mxu0 %v3920_v1  ;;  %3040 = vmatpush3.bf16.msra.mxu1 %v3551_v29  ;;  %v3565_v29 = vld [vmem:[#allocation9 + $0x130] sm:$0xff]  }
  0xbe   : > { %3041 = vmatprep.subr.bf16.mxu1 %v3554_v42 }
  0xc0   : > { %3319 = vmatpush3.bf16.msra.mxu0 %v3530_v11 }
  0xc1   : > { %3320 = vmatprep.subr.bf16.mxu0 %v3920_v1  ;;  %3042 = vmatpush3.bf16.msra.mxu1 %v3555_v43  ;;  %v3567_v43 = vld [vmem:[#allocation9 + $0x120] sm:$0xff]  }
  0xc2   : > { %3043 = vmatprep.subr.bf16.mxu1 %v3558_v46 }
  0xc4   : > { %3321 = vmatpush3.bf16.msra.mxu0 %v3531_v12 }
  0xc5   : > { %3063 = vmatprep.subr.bf16.mxu0 %v3536_v31  ;;  %3044 = vmatpush3.bf16.msra.mxu1 %v3559_v47 }
  0xc6   : > { %3326 = vmatprep.subr.bf16.mxu1 %v3920_v1 }
  0xc7   : > { %3323 = vmatmul.mubr.bf16.vlgmr.msra.gmra.mxu0 %v751_v33 }
  0xc8   : > { %3064 = vmatpush3.bf16.msra.mxu0 %v3537_v32 }
  0xc9   : > { %3065 = vmatprep.subr.bf16.mxu0 %v3540_v34 }
  0xcc   : > { %3066 = vmatpush3.bf16.msra.mxu0 %v3541_v35 }
  0xcd   : > { %3067 = vmatprep.subr.bf16.mxu0 %v3544_v36 }
  0xd0   : > { %3068 = vmatpush3.bf16.msra.mxu0 %v3545_v37 }
  0xd1   : > { %3069 = vmatprep.subr.bf16.mxu0 %v3548_v38  ;;  %v3566_v38 = vld [vmem:[#allocation9 + $0x128] sm:$0xff]  }
  0xd4   : > { %3070 = vmatpush3.bf16.msra.mxu0 %v3549_v39 }
  0xd5   : > { %3071 = vmatprep.subr.bf16.mxu0 %v3552_v40 }
  0xd8   : > { %3072 = vmatpush3.bf16.msra.mxu0 %v3553_v41 }
  0xd9   : > { %3073 = vmatprep.subr.bf16.mxu0 %v3556_v44 }
  0xdc   : > { %3074 = vmatpush3.bf16.msra.mxu0 %v3557_v45 }
  0xdd   : > { %3075 = vmatprep.subr.bf16.mxu0 %v3560_v48  ;;  %v3568_v48 = vld [vmem:[#allocation9 + $0x118] sm:$0xff]  }
  0xe0   : > { %3076 = vmatpush3.bf16.msra.mxu0 %v3561_v49 }
  0xe1   : > { %3077 = vmatprep.subr.bf16.mxu0 %v3562_v50  ;;  %v3569_v50 = vld [vmem:[#allocation9 + $0x110] sm:$0xff]  }
  0xe4   : > { %3078 = vmatpush3.bf16.msra.mxu0 %v3564_v51 }
 0x167   : > { %v690_v53 = vpop.f32.mrf.mxu0 }
 0x168   : > { %v3304_v54 = vpop.f32.mrf.mxu1  ;;  %v3570_v53 = vld [vmem:[#allocation9 + $0x108] sm:$0xff]  }
 0x169   : > { %v3284_v57 = vpop.f32.mrf.mxu0  ;;  %v4225_v63 = vadd.f32 %v3304_v54, %v2871_v56 }
 0x16a   : > { %v736_v58 = vpop.f32.mrf.mxu1 }
 0x16b   : > { %v4217_v59 = vadd.f32 %v2871_v56, %v736_v58  ;;  %v693_v62 = vpop.f32.mrf.mxu0  ;;  %v839_v15 = vrot.slane %v4225_v63, 7  ;;  %v852_v18 = vrot.slane %v4225_v63, 1  ;;  %v826_v30 = vrot.slane %v4225_v63, 6 }
 0x16c   : > { %v3305_v0 = vpop.f32.mrf.mxu1  ;;  %v3571_v62 = vld [vmem:[#allocation9 + $0x100] sm:$0xff]  }
 0x16d   : > { %v4229_v2 = vadd.f32 %v3305_v0, %v2871_v56  ;;  %v837_v3 = vrot.slane %v4217_v59, 7  ;;  %v824_v4 = vrot.slane %v4217_v59, 6  ;;  %v3285_v5 = vpop.f32.mrf.mxu0  ;;  %v850_v8 = vrot.slane %v4217_v59, 1 }
 0x16e   : > { %v739_v6 = vpop.f32.mrf.mxu1  ;;  %v877_v31 = vpack.c.bf16 %v4217_v59, %v3920_v1  ;;  %v863_v58 = vrot.slane %v4217_v59, 2  ;;  %v4305_v0 = vrot.slane %v3920_v1, 2  ;;  %v865_v59 = vrot.slane %v4225_v63, 2 }
 0x16f   : > { %v4237_v9 = vadd.f32 %v2871_v56, %v739_v6  ;;  %v847_v10 = vsel %vm842_vm1, %v4220_v60, %v837_v3  ;;  %v834_v11 = vsel %vm829_vm2, %v4223_v61, %v824_v4  ;;  %v853_v19 = vrot.slane %v4229_v2, 1 }
 0x170   : > { %v876_v12 = vpack.c.bf16 %v847_v10, %v4220_v60  ;;  %v875_v13 = vpack.c.bf16 %v834_v11, %v4223_v61  ;;  %v860_v20 = vsel %vm855_vm3, %v4234_v7, %v850_v8  ;;  %v840_v22 = vrot.slane %v4229_v2, 7 }
 0x171   : > { %v838_v16 = vrot.slane %v4237_v9, 7  ;;  %v851_v17 = vrot.slane %v4237_v9, 1  ;;  %v825_v21 = vrot.slane %v4237_v9, 6  ;;  %v857_v32 = vsel %vm855_vm3, %v852_v18, %v853_v19 }
 0x172   : > { %1249 = vmatprep.mubr.bf16.mxu1 %v876_v12  ;;  %v843_v36 = vsel %vm842_vm1, %v840_v22, %v4220_v60  ;;  %v844_v37 = vsel %vm842_vm1, %v839_v15, %v840_v22  ;;  %v827_v41 = vrot.slane %v4229_v2, 6  ;;  %v856_v42 = vsel %vm855_vm3, %v853_v19, %v4234_v7  ;;  %v3580_v19 = vld [vmem:[#allocation11 + $0xf0] sm:$0xff]   ;;  %v3582_v22 = vld [vmem:[#allocation11 + $0x60] sm:$0xff]  }
 0x173   : > { %1250 = vmatmul.mubr.bf16.vlgmr.msra.gmra.mxu1 %v875_v13  ;;  %v845_v23 = vsel %vm842_vm1, %v838_v16, %v839_v15  ;;  %v846_v24 = vsel %vm842_vm1, %v837_v3, %v838_v16  ;;  %v859_v25 = vsel %vm855_vm3, %v850_v8, %v851_v17  ;;  %v858_v26 = vsel %vm855_vm3, %v851_v17, %v852_v18  ;;  %v3575_v15 = vld [vmem:[#allocation11 + $0x30] sm:$0xff]   ;;  %v3576_v16 = vld [vmem:[#allocation11 + $0xf8] sm:$0xff]   ;;  %v3578_v18 = vld [vmem:[#allocation11 + $0x68] sm:$0xff]  }
 0x174   : > { %3327 = vmatpush3.bf16.msra.mxu1 %v3563_v14  ;;  %v881_v27 = vpack.c.bf16 %v845_v23, %v846_v24  ;;  %v878_v28 = vpack.c.bf16 %v859_v25, %v860_v20  ;;  %v883_v33 = vpack.c.bf16 %v857_v32, %v858_v26  ;;  %v832_v34 = vsel %vm829_vm2, %v825_v21, %v826_v30  ;;  %v3574_v14 = vld [vmem:[#allocation11 + $0x70] sm:$0xff]   ;;  %v3577_v17 = vld [vmem:[#allocation11 + $0xb8] sm:$0xff]   ;;  %v3579_v20 = vld [vmem:[#allocation11 + $0x28] sm:$0xff]  }
 0x175   : > { %3328 = vmatprep.subr.bf16.mxu1 %v3920_v1  ;;  %v833_v35 = vsel %vm829_vm2, %v824_v4, %v825_v21  ;;  %v886_v40 = vpack.c.bf16 %v843_v36, %v844_v37  ;;  %v882_v44 = vpack.c.bf16 %v4225_v63, %v4237_v9  ;;  %v888_v45 = vpack.c.bf16 %v4234_v7, %v856_v42  ;;  %v3572_v63 = vld [vmem:[#allocation11 + $0x78] sm:$0xff]   ;;  %v3581_v21 = vld [vmem:[#allocation11 + $0xb0] sm:$0xff]   ;;  %v3584_v23 = vld [vmem:[#allocation11 + $0xe8] sm:$0xff]  }
 0x176   : > { %1257 = vmatprep.mubr.bf16.mxu1 %v881_v27  ;;  %1306 = vmatprep.mubr.bf16.mxu0 %v878_v28  ;;  %v880_v39 = vpack.c.bf16 %v832_v34, %v833_v35  ;;  %v830_v46 = vsel %vm829_vm2, %v827_v41, %v4223_v61  ;;  %v831_v47 = vsel %vm829_vm2, %v826_v30, %v827_v41  ;;  %v864_v56 = vrot.slane %v4237_v9, 2  ;;  %v3583_v24 = vld [vmem:[#allocation11 + $0x20] sm:$0xff]   ;;  %v3585_v25 = vld [vmem:[#allocation11 + $0xa8] sm:$0xff]   ;;  %v3586_v26 = vld [vmem:[#allocation11 + $0x58] sm:$0xff]  }
 0x177   : > { %1307 = vmatmul.mubr.bf16.vlgmr.msra.gmra.mxu0 %v877_v31  ;;  %v885_v49 = vpack.c.bf16 %v830_v46, %v831_v47  ;;  %v887_v51 = vpack.c.bf16 %v3920_v1, %v4229_v2  ;;  %v873_v5 = vsel %vm868_vm4, %v4305_v0, %v863_v58  ;;  %v866_v8 = vrot.slane %v4229_v2, 2  ;;  %v3573_v2 = vld [vmem:[#allocation11 + $0x38] sm:$0xff]   ;;  %3108 = vmatprep.subr.bf16.mxu0 %v3572_v63  ;;  %v3588_v28 = vld [vmem:[#allocation11 + $0xe0] sm:$0xff]   ;;  %v3590_v30 = vld [vmem:[#allocation11 + $0x50] sm:$0xff]  }
 0x178   : > { %3329 = vmatpush3.bf16.msra.mxu1 %v3565_v29  ;;  %1314 = vmatprep.mubr.bf16.mxu0 %v883_v33  ;;  %v872_v4 = vsel %vm868_vm4, %v863_v58, %v864_v56  ;;  %v871_v9 = vsel %vm868_vm4, %v864_v56, %v865_v59  ;;  %v3587_v27 = vld [vmem:[#allocation11 + $0x18] sm:$0xff]   ;;  %v3589_v29 = vld [vmem:[#allocation11 + $0xa0] sm:$0xff]   ;;  %v3591_v31 = vld [vmem:[#allocation11 + $0x10] sm:$0xff]  }
 0x179   : > { %3330 = vmatprep.subr.bf16.mxu1 %v3920_v1  ;;  %v879_v6 = vpack.c.bf16 %v872_v4, %v873_v5  ;;  %v870_v10 = vsel %vm868_vm4, %v865_v59, %v866_v8  ;;  %v869_v12 = vsel %vm868_vm4, %v866_v8, %v4305_v0  ;;  %3109 = vmatpush3.bf16.msra.mxu0 %v3573_v2  ;;  %v3592_v32 = vld [vmem:[#allocation11 + $0xd8] sm:$0xff]   ;;  %v3594_v34 = vld [vmem:[#allocation11 + $0x48] sm:$0xff]   ;;  %v3596_v36 = vld [vmem:[#allocation11 + $0xd0] sm:$0xff]  }
 0x17a   : > { %v884_v11 = vpack.c.bf16 %v870_v10, %v871_v9  ;;  %v889_v13 = vpack.c.bf16 %v4305_v0, %v869_v12  ;;  %3110 = vmatprep.subr.bf16.mxu0 %v3574_v14  ;;  %v3593_v33 = vld [vmem:[#allocation11 + $0x98] sm:$0xff]   ;;  %v3595_v35 = vld [vmem:[#allocation11 + $0x8] sm:$0xff]   ;;  %v3597_v37 = vld [vmem:[#allocation11 + $0x90] sm:$0xff]  }
 0x17b   : > { %1258 = vmatmul.mubr.bf16.gmra.mxu1 %v880_v39  ;;  %v3599_v39 = vld [vmem:[#allocation11] sm:$0xff]   ;;  %v3601_v41 = vld [vmem:[#allocation11 + $0x88] sm:$0xff]  }
 0x17c   : > { %3331 = vmatpush3.bf16.msra.mxu1 %v3566_v38  ;;  %1265 = vmatprep.mubr.bf16.mxu1 %v886_v40  ;;  %v3598_v38 = vld [vmem:[#allocation11 + $0x40] sm:$0xff]   ;;  %v3600_v40 = vld [vmem:[#allocation11 + $0xc8] sm:$0xff]  }
 0x17d   : > { %3332 = vmatprep.subr.bf16.mxu1 %v3920_v1  ;;  %3111 = vmatpush3.bf16.msra.mxu0 %v3575_v15  ;;  %v3602_v42 = vld [vmem:[#allocation11 + $0xc0] sm:$0xff]  }
 0x17e   : > { %3112 = vmatprep.subr.bf16.mxu0 %v3578_v18 }
 0x17f   : > { %1315 = vmatmul.mubr.bf16.gmra.mxu0 %v882_v44 }
 0x180   : > { %3333 = vmatpush3.bf16.msra.mxu1 %v3567_v43  ;;  %1322 = vmatprep.mubr.bf16.mxu0 %v888_v45  ;;  %v3604_v43 = vld [vmem:[#allocation11 + $0x80] sm:$0xff]  }
 0x181   : > { %3334 = vmatprep.subr.bf16.mxu1 %v3920_v1  ;;  %3113 = vmatpush3.bf16.msra.mxu0 %v3579_v20 }
 0x182   : > { %3114 = vmatprep.subr.bf16.mxu0 %v3582_v22 }
 0x183   : > { %1266 = vmatmul.mubr.bf16.gmra.mxu1 %v885_v49 }
 0x184   : > { %3335 = vmatpush3.bf16.msra.mxu1 %v3568_v48  ;;  %3342 = vmatprep.mubr.msk.bf16.mxu1 %vm3921_vm0, %v3920_v1 }
 0x185   : > { %3336 = vmatprep.subr.bf16.mxu1 %v3920_v1  ;;  %3115 = vmatpush3.bf16.msra.mxu0 %v3583_v24 }
 0x186   : > { %3116 = vmatprep.subr.bf16.mxu0 %v3586_v26 }
 0x187   : > { %1323 = vmatmul.mubr.bf16.gmra.mxu0 %v887_v51  ;;  %v786_v52 = vpop.f32.mrf.mxu0 }
 0x188   : > { %3337 = vmatpush3.bf16.msra.mxu1 %v3569_v50 }
 0x189   : > { %3338 = vmatprep.subr.bf16.mxu1 %v3920_v1  ;;  %v3324_v54 = vpop.f32.mrf.mxu0  ;;  %3117 = vmatpush3.bf16.msra.mxu0 %v3587_v27 }
 0x18a   : > { %3118 = vmatprep.subr.bf16.mxu0 %v3590_v30 }
 0x18b   : > { %v789_v57 = vpop.f32.mrf.mxu0 }
 0x18c   : > { %3339 = vmatpush3.bf16.msra.mxu1 %v3570_v53 }
 0x18d   : > { %3340 = vmatprep.subr.bf16.mxu1 %v3920_v1  ;;  %v3325_v3 = vpop.f32.mrf.mxu0  ;;  %3119 = vmatpush3.bf16.msra.mxu0 %v3591_v31 }
 0x18e   : > { %3120 = vmatprep.subr.bf16.mxu0 %v3594_v34 }
 0x190   : > { %3341 = vmatpush3.bf16.msra.mxu1 %v3571_v62 }
 0x191   : > { %3142 = vmatprep.subr.bf16.mxu1 %v3576_v16  ;;  %3121 = vmatpush3.bf16.msra.mxu0 %v3595_v35 }
 0x192   : > { %3122 = vmatprep.subr.bf16.mxu0 %v3598_v38 }
 0x193   : > { %3343 = vmatmul.mubr.bf16.vlgmr.msra.gmra.mxu1 %v879_v6 }
 0x194   : > { %3346 = vmatprep.mubr.msk.bf16.mxu1 %vm3921_vm0, %v3920_v1  ;;  %3143 = vmatpush3.bf16.msra.mxu1 %v3577_v17 }
 0x195   : > { %3144 = vmatprep.subr.bf16.mxu1 %v3580_v19  ;;  %3123 = vmatpush3.bf16.msra.mxu0 %v3599_v39 }
 0x196   : > { %3354 = vmatprep.subr.bf16.mxu0 %v3920_v1 }
 0x198   : > { %3145 = vmatpush3.bf16.msra.mxu1 %v3581_v21 }
 0x199   : > { %3146 = vmatprep.subr.bf16.mxu1 %v3584_v23 }
 0x19b   : > { %3347 = vmatmul.mubr.bf16.gmra.mxu1 %v884_v11 }
 0x19c   : > { %3350 = vmatprep.mubr.msk.bf16.mxu1 %vm3921_vm0, %v3920_v1  ;;  %3147 = vmatpush3.bf16.msra.mxu1 %v3585_v25 }
 0x19d   : > { %3148 = vmatprep.subr.bf16.mxu1 %v3588_v28 }
 0x1a0   : > { %3149 = vmatpush3.bf16.msra.mxu1 %v3589_v29 }
 0x1a1   : > { %3150 = vmatprep.subr.bf16.mxu1 %v3592_v32 }
 0x1a3   : > { %3351 = vmatmul.mubr.bf16.gmra.mxu1 %v889_v13  ;;  %v2872_v13 = vld [vmem:[%s4605_s5] ss:$0 sm:$0xff] }
 0x1a4   : > { %3151 = vmatpush3.bf16.msra.mxu1 %v3593_v33 }
 0x1a5   : > { %3152 = vmatprep.subr.bf16.mxu1 %v3596_v36 }
 0x1a8   : > { %3153 = vmatpush3.bf16.msra.mxu1 %v3597_v37 }
 0x1a9   : > { %3154 = vmatprep.subr.bf16.mxu1 %v3600_v40 }
 0x1ac   : > { %3155 = vmatpush3.bf16.msra.mxu1 %v3601_v41 }
 0x1ad   : > { %3156 = vmatprep.subr.bf16.mxu1 %v3602_v42 }
 0x1b0   : > { %3157 = vmatpush3.bf16.msra.mxu1 %v3604_v43 }
 0x233   : > { %v3045_v44 = vpop.f32.mrf.mxu1 }
 0x235   : > { %v3046_v45 = vpop.f32.mrf.mxu1 }
 0x237   : > { %v3048_v46 = vpop.f32.mrf.mxu1  ;;  %v3079_v47 = vpop.f32.mrf.mxu0 }
 0x238   : > { %v3603_v47 = vld [vmem:[#allocation11 + $0x138] sm:$0xff]  }
 0x239   : > { %v3049_v48 = vpop.f32.mrf.mxu1  ;;  %v3080_v49 = vpop.f32.mrf.mxu0 }
 0x23a   : > { %v3050_v12 = vadd.f32 %v3049_v48, %v3048_v46 }
 0x23b   : > { %v3051_v50 = vpop.f32.mrf.mxu1  ;;  %v3082_v51 = vpop.f32.mrf.mxu0 }
 0x23c   : > { %v1255_v14 = vadd.f32 %v3050_v12, %v2872_v13 }
 0x23d   : > { %v3052_v52 = vpop.f32.mrf.mxu1  ;;  %v3083_v53 = vpop.f32.mrf.mxu0 }
 0x23e   : > { %v3084_v63 = vadd.f32 %v3083_v53, %v3082_v51  ;;  %v3053_v15 = vadd.f32 %v3052_v52, %v3051_v50 }
 0x23f   : > { %v3054_v54 = vpop.f32.mrf.mxu1  ;;  %v3085_v56 = vpop.f32.mrf.mxu0 }
 0x240   : > { %v1312_v18 = vadd.f32 %v3084_v63, %v1255_v14  ;;  %v1260_v20 = vadd.f32 %v3053_v15, %v2872_v13 }
 0x241   : > { %v3055_v57 = vpop.f32.mrf.mxu1  ;;  %v3086_v58 = vpop.f32.mrf.mxu0 }
 0x242   : > { %v3087_v17 = vadd.f32 %v3086_v58, %v3085_v56  ;;  %v3056_v21 = vadd.f32 %v3055_v57, %v3054_v54 }
 0x243   : > { %v3057_v62 = vpop.f32.mrf.mxu1  ;;  %v3088_v3 = vpop.f32.mrf.mxu0 }
 0x244   : > { %v1317_v26 = vadd.f32 %v3087_v17, %v1260_v20  ;;  %v1263_v29 = vadd.f32 %v3056_v21, %v2872_v13  ;;  %v3606_v17 = vld [vmem:[#allocation11 + $0x128] sm:$0xff]  }
 0x245   : > { %v3058_v4 = vpop.f32.mrf.mxu1  ;;  %v3089_v5 = vpop.f32.mrf.mxu0 }
 0x246   : > { %v3090_v24 = vadd.f32 %v3089_v5, %v3088_v3  ;;  %v3059_v27 = vadd.f32 %v3058_v4, %v3057_v62  ;;  %v3605_v4 = vld [vmem:[#allocation11 + $0x130] sm:$0xff]  }
 0x247   : > { %v3060_v6 = vpop.f32.mrf.mxu1  ;;  %v3091_v59 = vpop.f32.mrf.mxu0 }
 0x248   : > { %v1320_v37 = vadd.f32 %v3090_v24, %v1263_v29  ;;  %v1268_v38 = vadd.f32 %v3059_v27, %v2872_v13  ;;  %v3607_v29 = vld [vmem:[#allocation11 + $0x120] sm:$0xff]  }
 0x249   : > { %v3061_v8 = vpop.f32.mrf.mxu1  ;;  %v3092_v9 = vpop.f32.mrf.mxu0 }
 0x24a   : > { %v3093_v35 = vadd.f32 %v3092_v9, %v3091_v59 }
 0x24b   : > { %v3094_v10 = vpop.f32.mrf.mxu0 }
 0x24c   : > { %v1325_v51 = vadd.f32 %v3093_v35, %v1268_v38  ;;  %v3608_v35 = vld [vmem:[#allocation11 + $0x118] sm:$0xff]  }
 0x24d   : > { %v3095_v11 = vpop.f32.mrf.mxu0 }
 0x253   : > { %v1365_v2 = vpop.f32.mrf.mxu1 }
 0x255   : > { %v3344_v16 = vpop.f32.mrf.mxu1 }
 0x257   : > { %v1368_v19 = vpop.f32.mrf.mxu1 }
 0x258   : > { %v1369_v22 = vadd.f32 %v1368_v19, %v1312_v18 }
 0x259   : > { %v3345_v23 = vpop.f32.mrf.mxu1 }
 0x25a   : > { %vm1395_vm5 = vcmp.ge.f32.partialorder %v1369_v22, 0.0  ;;  %v1401_v25 = vmul.f32 0.1, %v1369_v22 }
 0x25b   : > { %v1373_v28 = vpop.f32.mrf.mxu1 }
 0x25c   : > { %v4332_v30 = vsel %vm1395_vm5, %v1369_v22, %v1401_v25  ;;  %v1374_v31 = vadd.f32 %v1373_v28, %v1317_v26 }
 0x25d   : > { %v1413_v32 = vrot.slane %v4332_v30, 6  ;;  %v3348_v33 = vpop.f32.mrf.mxu1  ;;  %v1425_v34 = vrot.slane %v4332_v30, 7  ;;  %v1437_v42 = vrot.slane %v4332_v30, 1  ;;  %v1462_v5 = vpack.c.bf16 %v4332_v30, %v3920_v1 }
 0x25e   : > { %vm1396_vm6 = vcmp.ge.f32.partialorder %v1374_v31, 0.0  ;;  %v1402_v36 = vmul.f32 0.1, %v1374_v31 }
 0x25f   : > { %v1376_v39 = vpop.f32.mrf.mxu1  ;;  %v1434_v40 = vsel %vm842_vm1, %v4220_v60, %v1425_v34  ;;  %v1422_v41 = vsel %vm829_vm2, %v4223_v61, %v1413_v32  ;;  %v1446_v54 = vsel %vm855_vm3, %v4234_v7, %v1437_v42 }
 0x260   : > { %v4343_v43 = vsel %vm1396_vm6, %v1374_v31, %v1402_v36  ;;  %v1377_v44 = vadd.f32 %v1376_v39, %v1320_v37  ;;  %v1461_v45 = vpack.c.bf16 %v1434_v40, %v4220_v60  ;;  %v1460_v46 = vpack.c.bf16 %v1422_v41, %v4223_v61  ;;  %v3609_v37 = vld [vmem:[#allocation11 + $0x110] sm:$0xff]   ;;  %v3610_v39 = vld [vmem:[#allocation11 + $0x108] sm:$0xff]  }
 0x261   : > { %v3349_v48 = vpop.f32.mrf.mxu1  ;;  %v1438_v49 = vrot.slane %v4343_v43, 1  ;;  %v1426_v56 = vrot.slane %v4343_v43, 7  ;;  %v1414_v57 = vrot.slane %v4343_v43, 6  ;;  %v1450_v40 = vrot.slane %v4343_v43, 2 }
 0x262   : > { %vm1397_vm7 = vcmp.ge.f32.partialorder %v1377_v44, 0.0  ;;  %v1403_v50 = vmul.f32 0.1, %v1377_v44  ;;  %1834 = vmatprep.mubr.bf16.mxu0 %v1461_v45  ;;  %v1449_v41 = vrot.slane %v4332_v30, 2 }
 0x263   : > { %v1381_v52 = vpop.f32.mrf.mxu1  ;;  %1835 = vmatmul.mubr.bf16.vlgmr.msra.gmra.mxu0 %v1460_v46  ;;  %v1445_v53 = vsel %vm855_vm3, %v1437_v42, %v1438_v49  ;;  %v1433_v13 = vsel %vm842_vm1, %v1425_v34, %v1426_v56  ;;  %v1421_v2 = vsel %vm829_vm2, %v1413_v32, %v1414_v57  ;;  %v3611_v42 = vld [vmem:[#allocation11 + $0x100] sm:$0xff]  }
 0x264   : > { %v4355_v58 = vsel %vm1397_vm7, %v1377_v44, %v1403_v50  ;;  %v1382_v62 = vadd.f32 %v1381_v52, %v1325_v51  ;;  %3355 = vmatpush3.bf16.msra.mxu0 %v3603_v47  ;;  %v1463_v3 = vpack.c.bf16 %v1445_v53, %v1446_v54  ;;  %v1457_v44 = vsel %vm868_vm4, %v1449_v41, %v1450_v40  ;;  %v3612_v52 = vld [vmem:[#allocation12 + $0x78] sm:$0xff]   ;;  %v3614_v54 = vld [vmem:[#allocation12 + $0x70] sm:$0xff]  }
 0x265   : > { %v3352_v6 = vpop.f32.mrf.mxu1  ;;  %3356 = vmatprep.subr.bf16.mxu0 %v3920_v1  ;;  %v1427_v59 = vrot.slane %v4355_v58, 7  ;;  %v1415_v8 = vrot.slane %v4355_v58, 6  ;;  %v1439_v10 = vrot.slane %v4355_v58, 1  ;;  %v1467_v31 = vpack.c.bf16 %v4355_v58, %v4343_v43  ;;  %v3613_v53 = vld [vmem:[#allocation12 + $0x38] sm:$0xff]   ;;  %3187 = vmatprep.subr.bf16.mxu1 %v3612_v52 }
 0x266   : > { %vm1398_vm8 = vcmp.ge.f32.partialorder %v1382_v62, 0.0  ;;  %v1404_v9 = vmul.f32 0.1, %v1382_v62  ;;  %1891 = vmatprep.mubr.bf16.mxu1 %v1463_v3  ;;  %v1458_v45 = vsel %vm868_vm4, %v4305_v0, %v1449_v41  ;;  %v1451_v30 = vrot.slane %v4355_v58, 2  ;;  %v3617_v58 = vld [vmem:[#allocation12 + $0xb8] sm:$0xff]   ;;  %v3620_v3 = vld [vmem:[#allocation12 + $0xf0] sm:$0xff]  }
 0x267   : > { %v1384_v11 = vpop.f32.mrf.mxu1  ;;  %1892 = vmatmul.mubr.bf16.vlgmr.msra.gmra.mxu1 %v1462_v5  ;;  %v1432_v12 = vsel %vm842_vm1, %v1426_v56, %v1427_v59  ;;  %v1420_v63 = vsel %vm829_vm2, %v1414_v57, %v1415_v8  ;;  %v1444_v21 = vsel %vm855_vm3, %v1438_v49, %v1439_v10  ;;  %v1464_v46 = vpack.c.bf16 %v1457_v44, %v1458_v45  ;;  %v3615_v56 = vld [vmem:[#allocation12 + $0x30] sm:$0xff]   ;;  %v3616_v57 = vld [vmem:[#allocation12 + $0xf8] sm:$0xff]   ;;  %v3622_v6 = vld [vmem:[#allocation12 + $0x60] sm:$0xff]  }
 0x268   : > { %v4371_v14 = vsel %vm1398_vm8, %v1382_v62, %v1404_v9  ;;  %3357 = vmatpush3.bf16.msra.mxu0 %v3605_v4  ;;  %v1466_v15 = vpack.c.bf16 %v1432_v12, %v1433_v13  ;;  %v1465_v16 = vpack.c.bf16 %v1420_v63, %v1421_v2  ;;  %v1456_v48 = vsel %vm868_vm4, %v1450_v40, %v1451_v30  ;;  %v3618_v62 = vld [vmem:[#allocation12 + $0x68] sm:$0xff]   ;;  %v3621_v5 = vld [vmem:[#allocation12 + $0xb0] sm:$0xff]   ;;  %v3627_v11 = vld [vmem:[#allocation12 + $0x18] sm:$0xff]  }
 0x269   : > { %v3353_v18 = vpop.f32.mrf.mxu1  ;;  %3358 = vmatprep.subr.bf16.mxu0 %v3920_v1  ;;  %v1428_v19 = vrot.slane %v4371_v14, 7  ;;  %v1440_v20 = vrot.slane %v4371_v14, 1  ;;  %v1416_v22 = vrot.slane %v4371_v14, 6  ;;  %v1472_v38 = vpack.c.bf16 %v3920_v1, %v4371_v14  ;;  %3188 = vmatpush3.bf16.msra.mxu1 %v3613_v53  ;;  %v3619_v4 = vld [vmem:[#allocation12 + $0x28] sm:$0xff]   ;;  %v3628_v12 = vld [vmem:[#allocation12 + $0xe0] sm:$0xff]   ;;  %v3630_v63 = vld [vmem:[#allocation12 + $0x50] sm:$0xff]  }
 0x26a   : > { %1842 = vmatprep.mubr.bf16.mxu0 %v1466_v15  ;;  %v1452_v47 = vrot.slane %v4371_v14, 2  ;;  %3189 = vmatprep.subr.bf16.mxu1 %v3614_v54  ;;  %v3625_v9 = vld [vmem:[#allocation12 + $0xa8] sm:$0xff]   ;;  %v3629_v13 = vld [vmem:[#allocation12 + $0xa0] sm:$0xff]   ;;  %v3631_v2 = vld [vmem:[#allocation12 + $0x10] sm:$0xff]  }
 0x26b   : > { %1843 = vmatmul.mubr.bf16.gmra.mxu0 %v1465_v16  ;;  %v1430_v23 = vsel %vm842_vm1, %v1428_v19, %v4220_v60  ;;  %v1431_v24 = vsel %vm842_vm1, %v1427_v59, %v1428_v19  ;;  %v1443_v25 = vsel %vm855_vm3, %v1439_v10, %v1440_v20  ;;  %v1442_v26 = vsel %vm855_vm3, %v1440_v20, %v4234_v7  ;;  %v3624_v59 = vld [vmem:[#allocation12 + $0xe8] sm:$0xff]   ;;  %v3626_v10 = vld [vmem:[#allocation12 + $0x58] sm:$0xff]   ;;  %v3636_v18 = vld [vmem:[#allocation12 + $0xd0] sm:$0xff]  }
 0x26c   : > { %3359 = vmatpush3.bf16.msra.mxu0 %v3606_v17  ;;  %v1471_v27 = vpack.c.bf16 %v1430_v23, %v1431_v24  ;;  %v1468_v28 = vpack.c.bf16 %v1443_v25, %v1444_v21  ;;  %v1473_v32 = vpack.c.bf16 %v4234_v7, %v1442_v26  ;;  %v1418_v33 = vsel %vm829_vm2, %v1416_v22, %v4223_v61  ;;  %v3632_v14 = vld [vmem:[#allocation12 + $0xd8] sm:$0xff]   ;;  %v3634_v16 = vld [vmem:[#allocation12 + $0x48] sm:$0xff]   ;;  %v3637_v19 = vld [vmem:[#allocation12 + $0x90] sm:$0xff]  }
 0x26d   : > { %3360 = vmatprep.subr.bf16.mxu0 %v3920_v1  ;;  %v1419_v34 = vsel %vm829_vm2, %v1415_v8, %v1416_v22  ;;  %v1455_v43 = vsel %vm868_vm4, %v1451_v30, %v1452_v47  ;;  %v1454_v50 = vsel %vm868_vm4, %v1452_v47, %v4305_v0  ;;  %3190 = vmatpush3.bf16.msra.mxu1 %v3615_v56  ;;  %v3623_v8 = vld [vmem:[#allocation12 + $0x20] sm:$0xff]   ;;  %v3633_v15 = vld [vmem:[#allocation12 + $0x98] sm:$0xff]   ;;  %v3635_v17 = vld [vmem:[#allocation12 + $0x8] sm:$0xff]  }
 0x26e   : > { %1850 = vmatprep.mubr.bf16.mxu0 %v1471_v27  ;;  %1899 = vmatprep.mubr.bf16.mxu1 %v1468_v28  ;;  %v1470_v36 = vpack.c.bf16 %v1418_v33, %v1419_v34  ;;  %v1469_v49 = vpack.c.bf16 %v1455_v43, %v1456_v48  ;;  %v1474_v51 = vpack.c.bf16 %v4305_v0, %v1454_v50  ;;  %v3638_v20 = vld [vmem:[#allocation12 + $0x40] sm:$0xff]   ;;  %v3640_v22 = vld [vmem:[#allocation12 + $0xc8] sm:$0xff]  }
 0x26f   : > { %1900 = vmatmul.mubr.bf16.gmra.mxu1 %v1467_v31  ;;  %3191 = vmatprep.subr.bf16.mxu1 %v3618_v62  ;;  %v3639_v21 = vld [vmem:[#allocation12] sm:$0xff]   ;;  %v3641_v23 = vld [vmem:[#allocation12 + $0x88] sm:$0xff]  }
 0x270   : > { %3361 = vmatpush3.bf16.msra.mxu0 %v3607_v29  ;;  %1907 = vmatprep.mubr.bf16.mxu1 %v1473_v32  ;;  %v3642_v24 = vld [vmem:[#allocation12 + $0xc0] sm:$0xff]  }
 0x271   : > { %3362 = vmatprep.subr.bf16.mxu0 %v3920_v1  ;;  %3192 = vmatpush3.bf16.msra.mxu1 %v3619_v4  ;;  %v3644_v25 = vld [vmem:[#allocation12 + $0x80] sm:$0xff]  }
 0x272   : > { %3193 = vmatprep.subr.bf16.mxu1 %v3622_v6 }
 0x273   : > { %1851 = vmatmul.mubr.bf16.gmra.mxu0 %v1470_v36 }
 0x274   : > { %3363 = vmatpush3.bf16.msra.mxu0 %v3608_v35  ;;  %3370 = vmatprep.mubr.msk.bf16.mxu0 %vm3921_vm0, %v3920_v1 }
 0x275   : > { %3364 = vmatprep.subr.bf16.mxu0 %v3920_v1  ;;  %3194 = vmatpush3.bf16.msra.mxu1 %v3623_v8 }
 0x276   : > { %3195 = vmatprep.subr.bf16.mxu1 %v3626_v10 }
 0x277   : > { %1908 = vmatmul.mubr.bf16.gmra.mxu1 %v1472_v38 }
 0x278   : > { %3365 = vmatpush3.bf16.msra.mxu0 %v3609_v37 }
 0x279   : > { %3366 = vmatprep.subr.bf16.mxu0 %v3920_v1  ;;  %3196 = vmatpush3.bf16.msra.mxu1 %v3627_v11 }
 0x27a   : > { %3197 = vmatprep.subr.bf16.mxu1 %v3630_v63 }
 0x27c   : > { %3367 = vmatpush3.bf16.msra.mxu0 %v3610_v39 }
 0x27d   : > { %3368 = vmatprep.subr.bf16.mxu0 %v3920_v1  ;;  %3198 = vmatpush3.bf16.msra.mxu1 %v3631_v2 }
 0x27e   : > { %3199 = vmatprep.subr.bf16.mxu1 %v3634_v16 }
 0x280   : > { %3369 = vmatpush3.bf16.msra.mxu0 %v3611_v42 }
 0x281   : > { %3221 = vmatprep.subr.bf16.mxu0 %v3616_v57  ;;  %3200 = vmatpush3.bf16.msra.mxu1 %v3635_v17 }
 0x282   : > { %3201 = vmatprep.subr.bf16.mxu1 %v3638_v20 }
 0x283   : > { %3371 = vmatmul.mubr.bf16.vlgmr.msra.gmra.mxu0 %v1464_v46 }
 0x284   : > { %3374 = vmatprep.mubr.msk.bf16.mxu0 %vm3921_vm0, %v3920_v1  ;;  %3222 = vmatpush3.bf16.msra.mxu0 %v3617_v58 }
 0x285   : > { %3223 = vmatprep.subr.bf16.mxu0 %v3620_v3  ;;  %3202 = vmatpush3.bf16.msra.mxu1 %v3639_v21 }
 0x286   : > { %3382 = vmatprep.subr.bf16.mxu1 %v3920_v1 }
 0x288   : > { %3224 = vmatpush3.bf16.msra.mxu0 %v3621_v5 }
 0x289   : > { %3225 = vmatprep.subr.bf16.mxu0 %v3624_v59 }
 0x28b   : > { %3375 = vmatmul.mubr.bf16.gmra.mxu0 %v1469_v49 }
 0x28c   : > { %3378 = vmatprep.mubr.msk.bf16.mxu0 %vm3921_vm0, %v3920_v1  ;;  %3226 = vmatpush3.bf16.msra.mxu0 %v3625_v9 }
 0x28d   : > { %3227 = vmatprep.subr.bf16.mxu0 %v3628_v12 }
 0x290   : > { %3228 = vmatpush3.bf16.msra.mxu0 %v3629_v13 }
 0x291   : > { %3229 = vmatprep.subr.bf16.mxu0 %v3632_v14 }
 0x293   : > { %3379 = vmatmul.mubr.bf16.gmra.mxu0 %v1474_v51  ;;  %v2913_v51 = vld [vmem:[%s4607_s7] ss:$0 sm:$0xff] }
 0x294   : > { %3230 = vmatpush3.bf16.msra.mxu0 %v3633_v15 }
 0x295   : > { %3231 = vmatprep.subr.bf16.mxu0 %v3636_v18 }
 0x298   : > { %3232 = vmatpush3.bf16.msra.mxu0 %v3637_v19 }
 0x299   : > { %3233 = vmatprep.subr.bf16.mxu0 %v3640_v22 }
 0x29c   : > { %3234 = vmatpush3.bf16.msra.mxu0 %v3641_v23 }
 0x29d   : > { %3235 = vmatprep.subr.bf16.mxu0 %v3642_v24 }
 0x2a0   : > { %3236 = vmatpush3.bf16.msra.mxu0 %v3644_v25 }
 0x323   : > { %v3124_v26 = vpop.f32.mrf.mxu0 }
 0x325   : > { %v3125_v27 = vpop.f32.mrf.mxu0 }
 0x327   : > { %v3127_v28 = vpop.f32.mrf.mxu0  ;;  %v3158_v29 = vpop.f32.mrf.mxu1 }
 0x328   : > { %v3643_v29 = vld [vmem:[#allocation12 + $0x138] sm:$0xff]  }
 0x329   : > { %v3128_v31 = vpop.f32.mrf.mxu0  ;;  %v3159_v32 = vpop.f32.mrf.mxu1 }
 0x32a   : > { %v3129_v50 = vadd.f32 %v3128_v31, %v3127_v28 }
 0x32b   : > { %v3130_v33 = vpop.f32.mrf.mxu0  ;;  %v3161_v34 = vpop.f32.mrf.mxu1 }
 0x32c   : > { %v1840_v54 = vadd.f32 %v3129_v50, %v2913_v51 }
 0x32d   : > { %v3131_v35 = vpop.f32.mrf.mxu0  ;;  %v3162_v36 = vpop.f32.mrf.mxu1 }
 0x32e   : > { %v3163_v52 = vadd.f32 %v3162_v36, %v3161_v34  ;;  %v3132_v56 = vadd.f32 %v3131_v35, %v3130_v33 }
 0x32f   : > { %v3133_v37 = vpop.f32.mrf.mxu0  ;;  %v3164_v38 = vpop.f32.mrf.mxu1 }
 0x330   : > { %v1897_v62 = vadd.f32 %v3163_v52, %v1840_v54  ;;  %v1845_v4 = vadd.f32 %v3132_v56, %v2913_v51 }
 0x331   : > { %v3134_v39 = vpop.f32.mrf.mxu0  ;;  %v3165_v40 = vpop.f32.mrf.mxu1 }
 0x332   : > { %v3166_v58 = vadd.f32 %v3165_v40, %v3164_v38  ;;  %v3135_v5 = vadd.f32 %v3134_v39, %v3133_v37 }
 0x333   : > { %v3136_v41 = vpop.f32.mrf.mxu0  ;;  %v3167_v42 = vpop.f32.mrf.mxu1 }
 0x334   : > { %v1902_v10 = vadd.f32 %v3166_v58, %v1845_v4  ;;  %v1848_v13 = vadd.f32 %v3135_v5, %v2913_v51  ;;  %v3646_v58 = vld [vmem:[#allocation12 + $0x128] sm:$0xff]  }
 0x335   : > { %v3137_v44 = vpop.f32.mrf.mxu0  ;;  %v3168_v45 = vpop.f32.mrf.mxu1 }
 0x336   : > { %v3169_v8 = vadd.f32 %v3168_v45, %v3167_v42  ;;  %v3138_v11 = vadd.f32 %v3137_v44, %v3136_v41  ;;  %v3645_v44 = vld [vmem:[#allocation12 + $0x130] sm:$0xff]  }
 0x337   : > { %v3139_v46 = vpop.f32.mrf.mxu0  ;;  %v3170_v47 = vpop.f32.mrf.mxu1 }
 0x338   : > { %v1905_v19 = vadd.f32 %v3169_v8, %v1848_v13  ;;  %v1853_v20 = vadd.f32 %v3138_v11, %v2913_v51  ;;  %v3647_v13 = vld [vmem:[#allocation12 + $0x120] sm:$0xff]  }
 0x339   : > { %v3140_v30 = vpop.f32.mrf.mxu0  ;;  %v3171_v43 = vpop.f32.mrf.mxu1 }
 0x33a   : > { %v3172_v17 = vadd.f32 %v3171_v43, %v3170_v47 }
 0x33b   : > { %v3173_v48 = vpop.f32.mrf.mxu1 }
 0x33c   : > { %v1910_v34 = vadd.f32 %v3172_v17, %v1853_v20  ;;  %v3648_v17 = vld [vmem:[#allocation12 + $0x118] sm:$0xff]   ;;  %v3650_v20 = vld [vmem:[#allocation12 + $0x108] sm:$0xff]  }
 0x33d   : > { %v3174_v49 = vpop.f32.mrf.mxu1 }
 0x343   : > { %v1950_v53 = vpop.f32.mrf.mxu0 }
 0x345   : > { %v3372_v57 = vpop.f32.mrf.mxu0 }
 0x347   : > { %v1953_v3 = vpop.f32.mrf.mxu0 }
 0x348   : > { %v1954_v6 = vadd.f32 %v1953_v3, %v1897_v62 }
 0x349   : > { %v3373_v59 = vpop.f32.mrf.mxu0 }
 0x34a   : > { %vm1980_vm9 = vcmp.ge.f32.partialorder %v1954_v6, 0.0  ;;  %v1986_v9 = vmul.f32 0.1, %v1954_v6 }
 0x34b   : > { %v1958_v12 = vpop.f32.mrf.mxu0 }
 0x34c   : > { %v4431_v63 = vsel %vm1980_vm9, %v1954_v6, %v1986_v9  ;;  %v1959_v2 = vadd.f32 %v1958_v12, %v1902_v10 }
 0x34d   : > { %v1998_v14 = vrot.slane %v4431_v63, 6  ;;  %v3376_v15 = vpop.f32.mrf.mxu0  ;;  %v2010_v16 = vrot.slane %v4431_v63, 7  ;;  %v2022_v24 = vrot.slane %v4431_v63, 1  ;;  %v2047_v45 = vpack.c.bf16 %v4431_v63, %v3920_v1 }
 0x34e   : > { %vm1981_vm10 = vcmp.ge.f32.partialorder %v1959_v2, 0.0  ;;  %v1987_v18 = vmul.f32 0.1, %v1959_v2 }
 0x34f   : > { %v1961_v21 = vpop.f32.mrf.mxu0  ;;  %v2019_v22 = vsel %vm842_vm1, %v4220_v60, %v2010_v16  ;;  %v2007_v23 = vsel %vm829_vm2, %v4223_v61, %v1998_v14  ;;  %v2031_v37 = vsel %vm855_vm3, %v4234_v7, %v2022_v24 }
 0x350   : > { %v4442_v25 = vsel %vm1981_vm10, %v1959_v2, %v1987_v18  ;;  %v1962_v26 = vadd.f32 %v1961_v21, %v1905_v19  ;;  %v2046_v27 = vpack.c.bf16 %v2019_v22, %v4220_v60  ;;  %v2045_v28 = vpack.c.bf16 %v2007_v23, %v4223_v61  ;;  %v3649_v19 = vld [vmem:[#allocation12 + $0x110] sm:$0xff]   ;;  %v3651_v23 = vld [vmem:[#allocation12 + $0x100] sm:$0xff]  }
 0x351   : > { %v3377_v31 = vpop.f32.mrf.mxu0  ;;  %v2023_v32 = vrot.slane %v4442_v25, 1  ;;  %v2011_v38 = vrot.slane %v4442_v25, 7  ;;  %v1999_v39 = vrot.slane %v4442_v25, 6  ;;  %v2035_v21 = vrot.slane %v4442_v25, 2 }
 0x352   : > { %vm1982_vm11 = vcmp.ge.f32.partialorder %v1962_v26, 0.0  ;;  %v1988_v33 = vmul.f32 0.1, %v1962_v26  ;;  %2419 = vmatprep.mubr.bf16.mxu1 %v2046_v27  ;;  %v2034_v22 = vrot.slane %v4431_v63, 2 }
 0x353   : > { %v1966_v35 = vpop.f32.mrf.mxu0  ;;  %2420 = vmatmul.mubr.bf16.vlgmr.msra.gmra.mxu1 %v2045_v28  ;;  %v2030_v36 = vsel %vm855_vm3, %v2022_v24, %v2023_v32  ;;  %v2018_v51 = vsel %vm842_vm1, %v2010_v16, %v2011_v38  ;;  %v2006_v53 = vsel %vm829_vm2, %v1998_v14, %v1999_v39 }
 0x354   : > { %v4454_v40 = vsel %vm1982_vm11, %v1962_v26, %v1988_v33  ;;  %v1967_v41 = vadd.f32 %v1966_v35, %v1910_v34  ;;  %3383 = vmatpush3.bf16.msra.mxu1 %v3643_v29  ;;  %v2048_v42 = vpack.c.bf16 %v2030_v36, %v2031_v37  ;;  %v2042_v24 = vsel %vm868_vm4, %v2034_v22, %v2035_v21 }
 0x355   : > { %v3380_v46 = vpop.f32.mrf.mxu0  ;;  %3384 = vmatprep.subr.bf16.mxu1 %v3920_v1  ;;  %v2012_v47 = vrot.slane %v4454_v40, 7  ;;  %v2000_v30 = vrot.slane %v4454_v40, 6  ;;  %v2024_v48 = vrot.slane %v4454_v40, 1  ;;  %v2052_v2 = vpack.c.bf16 %v4454_v40, %v4442_v25 }
 0x356   : > { %vm1983_vm12 = vcmp.ge.f32.partialorder %v1967_v41, 0.0  ;;  %v1989_v43 = vmul.f32 0.1, %v1967_v41  ;;  %2476 = vmatprep.mubr.bf16.mxu0 %v2048_v42  ;;  %v2043_v26 = vsel %vm868_vm4, %v4305_v0, %v2034_v22  ;;  %v2036_v63 = vrot.slane %v4454_v40, 2 }
 0x357   : > { %v1969_v49 = vpop.f32.mrf.mxu0  ;;  %2477 = vmatmul.mubr.bf16.vlgmr.msra.gmra.mxu0 %v2047_v45  ;;  %v2017_v50 = vsel %vm842_vm1, %v2011_v38, %v2012_v47  ;;  %v2005_v52 = vsel %vm829_vm2, %v1999_v39, %v2000_v30  ;;  %v2029_v5 = vsel %vm855_vm3, %v2023_v32, %v2024_v48  ;;  %v2049_v27 = vpack.c.bf16 %v2042_v24, %v2043_v26 }
 0x358   : > { %v4470_v54 = vsel %vm1983_vm12, %v1967_v41, %v1989_v43  ;;  %3385 = vmatpush3.bf16.msra.mxu1 %v3645_v44  ;;  %v2051_v56 = vpack.c.bf16 %v2017_v50, %v2018_v51  ;;  %v2050_v57 = vpack.c.bf16 %v2005_v52, %v2006_v53  ;;  %v2041_v29 = vsel %vm868_vm4, %v2035_v21, %v2036_v63 }
 0x359   : > { %v3381_v62 = vpop.f32.mrf.mxu0  ;;  %3386 = vmatprep.subr.bf16.mxu1 %v3920_v1  ;;  %v2013_v3 = vrot.slane %v4470_v54, 7  ;;  %v2025_v4 = vrot.slane %v4470_v54, 1  ;;  %v2001_v6 = vrot.slane %v4470_v54, 6  ;;  %v2037_v28 = vrot.slane %v4470_v54, 2 }
 0x35a   : > { %2427 = vmatprep.mubr.bf16.mxu1 %v2051_v56 }
 0x35b   : > { %2428 = vmatmul.mubr.bf16.gmra.mxu1 %v2050_v57  ;;  %v2015_v59 = vsel %vm842_vm1, %v2013_v3, %v4220_v60  ;;  %v2016_v8 = vsel %vm842_vm1, %v2012_v47, %v2013_v3  ;;  %v2028_v9 = vsel %vm855_vm3, %v2024_v48, %v2025_v4  ;;  %v2027_v10 = vsel %vm855_vm3, %v2025_v4, %v4234_v7  ;;  %v2954_v57 = vld [vmem:[%s4609_s9] ss:$0 sm:$0xff] }
 0x35c   : > { %3387 = vmatpush3.bf16.msra.mxu1 %v3646_v58  ;;  %v2056_v11 = vpack.c.bf16 %v2015_v59, %v2016_v8  ;;  %v2053_v12 = vpack.c.bf16 %v2028_v9, %v2029_v5  ;;  %v2058_v14 = vpack.c.bf16 %v4234_v7, %v2027_v10  ;;  %v2003_v15 = vsel %vm829_vm2, %v2001_v6, %v4223_v61 }
 0x35d   : > { %3388 = vmatprep.subr.bf16.mxu1 %v3920_v1  ;;  %v2004_v16 = vsel %vm829_vm2, %v2000_v30, %v2001_v6  ;;  %v2057_v61 = vpack.c.bf16 %v3920_v1, %v4470_v54  ;;  %v2040_v25 = vsel %vm868_vm4, %v2036_v63, %v2037_v28  ;;  %v2039_v32 = vsel %vm868_vm4, %v2037_v28, %v4305_v0 }
 0x35e   : > { %2435 = vmatprep.mubr.bf16.mxu1 %v2056_v11  ;;  %2484 = vmatprep.mubr.bf16.mxu0 %v2053_v12  ;;  %v2055_v18 = vpack.c.bf16 %v2003_v15, %v2004_v16  ;;  %v2054_v31 = vpack.c.bf16 %v2040_v25, %v2041_v29  ;;  %v2059_v33 = vpack.c.bf16 %v4305_v0, %v2039_v32  ;;  %v2594_v9 = vsub.s32 0, %v4212_v55 }
 0x35f   : > { %2485 = vmatmul.mubr.bf16.gmra.mxu0 %v2052_v2  ;;  %v2602_v2 = vsub.s32 1, %v4212_v55 }
 0x360   : > { %3389 = vmatpush3.bf16.msra.mxu1 %v3647_v13  ;;  %2492 = vmatprep.mubr.bf16.mxu0 %v2058_v14 }
 0x361   : > { %3390 = vmatprep.subr.bf16.mxu1 %v3920_v1 }
 0x363   : > { %2436 = vmatmul.mubr.bf16.gmra.mxu1 %v2055_v18 }
 0x364   : > { %3391 = vmatpush3.bf16.msra.mxu1 %v3648_v17  ;;  %3398 = vmatprep.mubr.msk.bf16.mxu1 %vm3921_vm0, %v3920_v1  ;;  %v2582_v17 = vld [vmem:[%s4610_s10] sm:$0x7] }
 0x365   : > { %3392 = vmatprep.subr.bf16.mxu1 %v3920_v1 }
 0x367   : > { %2493 = vmatmul.mubr.bf16.gmra.mxu0 %v2057_v61  ;;  %v2623_v61 = vsub.s32 2, %v4212_v55 }
 0x368   : > { %3393 = vmatpush3.bf16.msra.mxu1 %v3649_v19  ;;  %v2595_v19 = vrot.slane %v2582_v17, %v2594_v9 }
 0x369   : > { %3394 = vmatprep.subr.bf16.mxu1 %v3920_v1  ;;  %v2624_v32 = vrot.slane %v2582_v17, %v2623_v61 }
 0x36c   : > { %3395 = vmatpush3.bf16.msra.mxu1 %v3650_v20 }
 0x36d   : > { %3396 = vmatprep.subr.bf16.mxu1 %v3920_v1 }
 0x370   : > { %3397 = vmatpush3.bf16.msra.mxu1 %v3651_v23 }
 0x373   : > { %3399 = vmatmul.mubr.bf16.vlgmr.msra.gmra.mxu1 %v2049_v27  ;;  %v2603_v27 = vrot.slane %v2582_v17, %v2602_v2 }
 0x374   : > { %3402 = vmatprep.mubr.msk.bf16.mxu1 %vm3921_vm0, %v3920_v1 }
 0x37b   : > { %3403 = vmatmul.mubr.bf16.gmra.mxu1 %v2054_v31 }
 0x37c   : > { %3406 = vmatprep.mubr.msk.bf16.mxu1 %vm3921_vm0, %v3920_v1 }
 0x383   : > { %3407 = vmatmul.mubr.bf16.gmra.mxu1 %v2059_v33 }
 0x413   : > { %v3203_v34 = vpop.f32.mrf.mxu1 }
 0x415   : > { %v3204_v35 = vpop.f32.mrf.mxu1 }
 0x417   : > { %v3206_v36 = vpop.f32.mrf.mxu1  ;;  %v3237_v37 = vpop.f32.mrf.mxu0 }
 0x419   : > { %v3207_v38 = vpop.f32.mrf.mxu1  ;;  %v3238_v39 = vpop.f32.mrf.mxu0 }
 0x41a   : > { %v3208_v56 = vadd.f32 %v3207_v38, %v3206_v36 }
 0x41b   : > { %v3209_v40 = vpop.f32.mrf.mxu1  ;;  %v3240_v41 = vpop.f32.mrf.mxu0 }
 0x41c   : > { %v2425_v3 = vadd.f32 %v3208_v56, %v2954_v57 }
 0x41d   : > { %v3210_v42 = vpop.f32.mrf.mxu1  ;;  %v3241_v44 = vpop.f32.mrf.mxu0 }
 0x41e   : > { %v3242_v58 = vadd.f32 %v3241_v44, %v3240_v41  ;;  %v3211_v4 = vadd.f32 %v3210_v42, %v3209_v40 }
 0x41f   : > { %v3212_v45 = vpop.f32.mrf.mxu1  ;;  %v3243_v46 = vpop.f32.mrf.mxu0 }
 0x420   : > { %v2482_v59 = vadd.f32 %v3242_v58, %v2425_v3  ;;  %v2430_v10 = vadd.f32 %v3211_v4, %v2954_v57 }
 0x421   : > { %v3213_v1 = vpop.f32.mrf.mxu1  ;;  %v3244_v47 = vpop.f32.mrf.mxu0 }
 0x422   : > { %v3245_v6 = vadd.f32 %v3244_v47, %v3243_v46  ;;  %v3214_v11 = vadd.f32 %v3213_v1, %v3212_v45 }
 0x423   : > { %v3215_v30 = vpop.f32.mrf.mxu1  ;;  %v3246_v43 = vpop.f32.mrf.mxu0 }
 0x424   : > { %v2487_v16 = vadd.f32 %v3245_v6, %v2430_v10  ;;  %v2433_v20 = vadd.f32 %v3214_v11, %v2954_v57 }
 0x425   : > { %v3216_v48 = vpop.f32.mrf.mxu1  ;;  %v3247_v49 = vpop.f32.mrf.mxu0 }
 0x426   : > { %v3248_v14 = vadd.f32 %v3247_v49, %v3246_v43  ;;  %v3217_v21 = vadd.f32 %v3216_v48, %v3215_v30 }
 0x427   : > { %v3218_v0 = vpop.f32.mrf.mxu1  ;;  %v3249_v50 = vpop.f32.mrf.mxu0 }
 0x428   : > { %v2490_v25 = vadd.f32 %v3248_v14, %v2433_v20  ;;  %v2438_v33 = vadd.f32 %v3217_v21, %v2954_v57  ;;  %v2995_v20 = vld [vmem:[#allocation2] ss:$0 sm:$0xff] }
 0x429   : > { %v3219_v51 = vpop.f32.mrf.mxu1  ;;  %v3250_v52 = vpop.f32.mrf.mxu0 }
 0x42a   : > { %v3251_v28 = vadd.f32 %v3250_v52, %v3249_v50 }
 0x42b   : > { %v3252_v53 = vpop.f32.mrf.mxu0 }
 0x42c   : > { %v2495_v44 = vadd.f32 %v3251_v28, %v2438_v33 }
 0x42d   : > { %v3253_v54 = vpop.f32.mrf.mxu0 }
 0x433   : > { %v2535_v62 = vpop.f32.mrf.mxu1 }
 0x435   : > { %v3400_v5 = vpop.f32.mrf.mxu1 }
 0x437   : > { %v2538_v8 = vpop.f32.mrf.mxu1 }
 0x438   : > { %v2539_v12 = vadd.f32 %v2538_v8, %v2482_v59 }
 0x439   : > { %v3401_v13 = vpop.f32.mrf.mxu1 }
 0x43a   : > { %vm2565_vm13 = vcmp.ge.f32.partialorder %v2539_v12, 0.0  ;;  %v2571_v15 = vmul.f32 0.1, %v2539_v12 }
 0x43b   : > { %v2543_v18 = vpop.f32.mrf.mxu1 }
 0x43c   : > { %v2577_v22 = vsel %vm2565_vm13, %v2539_v12, %v2571_v15  ;;  %v2544_v23 = vadd.f32 %v2543_v18, %v2487_v16 }
 0x43d   : > { %v2584_v24 = vrot.slane %v2577_v22, 7  ;;  %v3404_v26 = vpop.f32.mrf.mxu1  ;;  %v2612_v37 = vrot.slane %v2577_v22, 1  ;;  %v2604_v41 = vmul.f32 %v2603_v27, %v2577_v22 }
 0x43e   : > { %vm2566_vm14 = vcmp.ge.f32.partialorder %v2544_v23, 0.0  ;;  %v2572_v63 = vmul.f32 0.1, %v2544_v23 }
 0x43f   : > { %v2546_v29 = vpop.f32.mrf.mxu1  ;;  %v2591_v31 = vsel %vm842_vm1, %v4220_v60, %v2584_v24 }
 0x440   : > { %v2578_v34 = vsel %vm2566_vm14, %v2544_v23, %v2572_v63  ;;  %v2547_v35 = vadd.f32 %v2546_v29, %v2490_v25  ;;  %v2596_v36 = vmul.f32 %v2595_v19, %v2591_v31 }
 0x441   : > { %v2585_v38 = vrot.slane %v2578_v34, 7  ;;  %v2613_v39 = vrot.slane %v2578_v34, 1  ;;  %v3405_v40 = vpop.f32.mrf.mxu1  ;;  %v2605_v53 = vmul.f32 %v2603_v27, %v2578_v34 }
 0x442   : > { %vm2567_vm15 = vcmp.ge.f32.partialorder %v2547_v35, 0.0  ;;  %v2573_v42 = vmul.f32 0.1, %v2547_v35  ;;  %v2608_v46 = vadd.f32 %v2604_v41, %v2596_v36 }
 0x443   : > { %v2551_v45 = vpop.f32.mrf.mxu1  ;;  %v2620_v1 = vsel %vm855_vm3, %v2612_v37, %v2613_v39  ;;  %v2590_v60 = vsel %vm842_vm1, %v2584_v24, %v2585_v38 }
 0x444   : > { %v2579_v47 = vsel %vm2567_vm15, %v2547_v35, %v2573_v42  ;;  %v2552_v30 = vadd.f32 %v2551_v45, %v2495_v44  ;;  %v2625_v43 = vmul.f32 %v2624_v32, %v2620_v1  ;;  %v2597_v48 = vmul.f32 %v2595_v19, %v2590_v60 }
 0x445   : > { %v2586_v49 = vrot.slane %v2579_v47, 7  ;;  %v2614_v0 = vrot.slane %v2579_v47, 1  ;;  %v3408_v50 = vpop.f32.mrf.mxu1  ;;  %v2606_v9 = vmul.f32 %v2603_v27, %v2579_v47 }
 0x446   : > { %vm2568_vm0 = vcmp.ge.f32.partialorder %v2552_v30, 0.0  ;;  %v2574_v51 = vmul.f32 0.1, %v2552_v30  ;;  %v2629_v52 = vadd.f32 %v2625_v43, %v2608_v46  ;;  %v2609_v62 = vadd.f32 %v2605_v53, %v2597_v48 }
 0x447   : > { %v2554_v54 = vpop.f32.mrf.mxu1  ;;  %v2619_v56 = vsel %vm855_vm3, %v2613_v39, %v2614_v0  ;;  %v2589_v57 = vsel %vm842_vm1, %v2585_v38, %v2586_v49 }
 0x448   : > { %v2580_v58 = vsel %vm2568_vm0, %v2552_v30, %v2574_v51  ;;  %2633 = vadd.xlane.f32.xlu0 %v2629_v52  ;;  %v2626_v3 = vmul.f32 %v2624_v32, %v2619_v56  ;;  %v2598_v4 = vmul.f32 %v2595_v19, %v2589_v57 }
 0x449   : > { %v2587_v5 = vrot.slane %v2580_v58, 7  ;;  %v2615_v6 = vrot.slane %v2580_v58, 1  ;;  %v3409_v59 = vpop.f32.mrf.mxu1  ;;  %v2607_v14 = vmul.f32 %v2603_v27, %v2580_v58 }
 0x44a   : > { %v2630_v8 = vadd.f32 %v2626_v3, %v2609_v62  ;;  %v2610_v12 = vadd.f32 %v2606_v9, %v2598_v4 }
 0x44b   : > { %v2618_v10 = vsel %vm855_vm3, %v2614_v0, %v2615_v6  ;;  %v2588_v11 = vsel %vm842_vm1, %v2586_v49, %v2587_v5  ;;  %v2617_v15 = vsel %vm855_vm3, %v2615_v6, %v4234_v7  ;;  %vm2684_vm1 = vcmask 253952  }
 0x44c   : > { %2635 = vadd.xlane.f32.xlu0 %v2630_v8  ;;  %v2627_v13 = vmul.f32 %v2624_v32, %v2618_v10  ;;  %v2599_v2 = vmul.f32 %v2595_v19, %v2588_v11  ;;  %v2628_v18 = vmul.f32 %v2624_v32, %v2617_v15 }
 0x44e   : > { %v2631_v16 = vadd.f32 %v2627_v13, %v2610_v12  ;;  %v2611_v17 = vadd.f32 %v2607_v14, %v2599_v2 }
 0x450   : > { %2637 = vadd.xlane.f32.xlu1 %v2631_v16  ;;  %v2632_v61 = vadd.f32 %v2628_v18, %v2611_v17 }
 0x454   : > { %2639 = vadd.xlane.f32.xlu1 %v2632_v61 }
 0x4d1   : > { %v2634_v21 = vpop.xlane.xlu0 %2633 }
 0x4d2   : > { %v2648_v22 = vadd.f32 %v2995_v20, %v2634_v21 }
 0x4d4   : > { %2652 = vxpose.xlu0.b32.start [1/4] (short) (narrow) %v2648_v22, 8 }
 0x4d5   : > { %v2636_v23 = vpop.xlane.xlu0 %2635 }
 0x4d6   : > { %v2649_v24 = vadd.f32 %v2995_v20, %v2636_v23 }
 0x4d8   : > { %2653 = vxpose.xlu0.b32.cont [2/4] (short) (narrow) %v2649_v24, 8 }
 0x4d9   : > { %v2638_v19 = vpop.xlane.xlu1 %2637 }
 0x4da   : > { %v2650_v26 = vadd.f32 %v2995_v20, %v2638_v19 }
 0x4dc   : > { %2654 = vxpose.xlu0.b32.cont [3/4] (short) (narrow) %v2650_v26, 8 }
 0x4dd   : > { %v2640_v55 = vpop.xlane.xlu1 %2639 }
 0x4de   : > { %v2651_v7 = vadd.f32 %v2995_v20, %v2640_v55 }
 0x4e0   : > { %2655 = vxpose.xlu0.b32.end [4/4] (short) (narrow) %v2651_v7, 8 }
 0x550   : > { %v2668_v27 = vpop.trf.xlu0 }
 0x551   : > { %2685 = vst.msk [vmem:[%s552_s4] sm:$0x1] %vm2684_vm1, %v2668_v27 }
 0x552   : > { %3825 = shalt.err (!%p3822_p8)
}
 0x553   : > { %s3826_s19 = scalar_lea.hbm %s4558_s12, 16  ;;  %s3830_s22 = scalar_lea.hbm %s4653_s6, 32 }
 0x554   : > { %p3827_p2 = scmp.ne.s32.totalorder %s4558_s12, %s3826_s19  ;;  %p3831_p11 = scmp.lt.s32.totalorder %s4558_s12, %s4653_s6 }
 0x555   : > { %p3832_p5 = scmp.lt.s32.totalorder %s3830_s22, %s3826_s19 }
 0x556   : > { %p3828_p3 = pnand %p3827_p2, %p4110_p0 }
 0x557   : > { %p3833_p4 = por %p3832_p5, %p3831_p11 }
 0x558   : > { %p3829_p13 = pneg %p3828_p3 }
 0x55a   : > { %p3834_p10 = pnand %p3833_p4, %p3829_p13 }
 0x55c   : > { %3837 = shalt.err (!%p3834_p10)
}
 0x55d   : > { %3430 = dma.vmem_to_hbm [thread:$0]  (%p4110_p0), %s2701_s8, 16, %s4558_s12, %s2687_s26  }
 0x55e PF: > { %s4654_s21 = sld [smem:[#allocation21_spill]]  ;;  %p4656_p12 = scmp.ge.s32.totalorder %s3908_s11, 2 }
 0x560   : > { %p3453_p7 = pnand %p4656_p12, %p4036_p6 }
 0x562   : > { %p3454_p1 = pneg %p3453_p7 }
 0x564   : > { %s2712_s29 = sand.u32 1, %s4654_s21  }
 0x565   : > { %s2713_s2 = scalar_lea.sflag [#allocation5], %s2712_s29 }
 0x566   : > { %3883 = dma.done.wait (%p3454_p1), %s2713_s2, 16  }
 0x567   : > { %3885 = vsyncadd (%p3454_p1), %s2713_s2, 4294967280  ;;  %s35_s11 = sadd.s32 1, %s3908_s11   ;;  %s4657_s4 = sld [smem:[#allocation22_spill]] }
 0x568   : > { %p32_p9 = scmp.ge.s32.totalorder %s35_s11, 4   ;;  %s4658_s25 = sld [smem:[#allocation27_spill]] }
 0x569   : > { %s4659_s13 = sld [smem:[#allocation25_spill]]  ;;  %s4660_s23 = smov %s3892_s24 }
 0x56a   : > { %s4662_s26 = smov %s3904_s27 }
 0x56b   :  { %34 = sbr.rel (!%p32_p9) target bundleno = 17 (0x11), region = 142 }
 0x56d   : > { %s4661_s24 = smov %s4657_s4 }
 0x56f   : > { %s4663_s27 = smov %s4659_s13 }
 0x570   :  { %2717 = vsyncpa [#allocation4], 1 }
 0x571   :  { %2719 = vsyncpa [#allocation4 + $0x1], 1 }
 0x572   :  { %2720 = vsyncpa [#allocation7], 1 }
 0x573   :  { %2722 = vsyncpa [#allocation7 + $0x1], 1 }
 0x574   :  { %2723 = vsyncpa [#allocation10], 1 }
 0x575   :  { %2724 = vsyncpa [#allocation13], 1 }
 0x576   :  { %2725 = vsyncpa [#allocation5], 1 }
 0x577   :  { %2727 = vsyncpa [#allocation5 + $0x1], 1 }

// kernel: tpu_custom_call.1
= control target key start
LH: loop header
LB: loop body
LE: loop exit
PB: predicated region body
PF: predicated region fallthrough
CT: control target
= control target key end

     0   :  { %s4600_s0 = inlined_call_operand.hbm [shape: f32[2,32,128], index: 0, kind: input, shape index: {}]   ;;  %s4601_s1 = inlined_call_operand.hbm [shape: f32[2,1,16,128], index: 1, kind: input, shape index: {}]   ;;  %s4602_s2 = inlined_call_operand.hbm [shape: bf16[128,128], index: 2, kind: input, shape index: {}]   ;;  %s4603_s3 = inlined_call_operand.vmem [shape: f32[1,128], index: 3, kind: input, shape index: {}]   ;;  %s4604_s4 = inlined_call_operand.hbm [shape: bf16[640,128], index: 4, kind: input, shape index: {}]   ;;  %s4605_s5 = inlined_call_operand.vmem [shape: f32[1,128], index: 5, kind: input, shape index: {}]   ;;  %s4606_s6 = inlined_call_operand.hbm [shape: bf16[640,128], index: 6, kind: input, shape index: {}]   ;;  %s4607_s7 = inlined_call_operand.vmem [shape: f32[1,128], index: 7, kind: input, shape index: {}]   ;;  %s4608_s8 = inlined_call_operand.hbm [shape: bf16[640,128], index: 8, kind: input, shape index: {}]   ;;  %s4609_s9 = inlined_call_operand.vmem [shape: f32[1,128], index: 9, kind: input, shape index: {}]   ;;  %s4610_s10 = inlined_call_operand.vmem [shape: f32[3,128], index: 10, kind: input, shape index: {}]   ;;  %s4611_s11 = inlined_call_operand.<no memory space> [shape: f32[1,1], index: 11, kind: input, shape index: {}]   ;;  %s4612_s12 = inlined_call_operand.hbm [shape: f32[2,1,32], index: 12, kind: output, shape index: {}]  }
   0x1   :  { %4621 = sst [smem:[#allocation28_spill]] %s4600_s0  ;;  %v17_v0 = vstv %s4611_s11 }
   0x2   :  { %4622 = sst [smem:[#allocation29_spill]] %s4602_s2  ;;  %18 = vst [vmem:[#allocation2] sm:$0x1] %v17_v0 }
   0x3   :  { %4623 = sst [smem:[#allocation30_spill]] %s4604_s4 }
   0x4   :  { %4624 = sst [smem:[#allocation31_spill]] %s4606_s6 }
   0x5   :  { %4625 = sst [smem:[#allocation32_spill]] %s4608_s8 }
   0x6   :  { %4626 = sst [smem:[#allocation33_spill]] %s4612_s12 }
   0x7   :  { %19 = vsyncpa [#allocation4], 0 }
   0x8   :  { %21 = vsyncpa [#allocation4 + $0x1], 0 }
   0x9   :  { %22 = vsyncpa [#allocation7], 0 }
   0xa   :  { %24 = vsyncpa [#allocation7 + $0x1], 0 }
   0xb   :  { %25 = vsyncpa [#allocation10], 0 }
   0xc   :  { %26 = vsyncpa [#allocation13], 0 }
   0xd   :  { %27 = vsyncpa [#allocation5], 0 }
   0xe   :  { %29 = vsyncpa [#allocation5 + $0x1], 0  ;;  %s3991_s23 = smov 0   ;;  %s3993_s24 = smov 0  }
   0xf   :  { %s3995_s25 = smov 0   ;;  %s3997_s26 = smov 0  }
  0x10   :  { %s3999_s27 = smov 0   ;;  %s4001_s11 = smov 0  }
  0x11 LB: > { %4627 = sst [smem:[#allocation21_spill]] %s3888_s23  ;;  %s4022_s28 = sadd.s32 4294967295, %s3908_s11   ;;  %s3908_s11 = sphi %s4001_s11, %s35_s11   ;;  %s3904_s27 = sphi %s3999_s27, %s4663_s27   ;;  %s3900_s26 = sphi %s3997_s26, %s4662_s26   ;;  %s3896_s25 = sphi %s3995_s25, %s4658_s25   ;;  %s3892_s24 = sphi %s3993_s24, %s4661_s24   ;;  %s3888_s23 = sphi %s3991_s23, %s4660_s23  }
  0x12   : > { %4628 = sst [smem:[#allocation22_spill]] %s3896_s25  ;;  %s2843_s29 = sadd.s32 4294967294, %s3908_s11  }
  0x13   : > { %4629 = sst [smem:[#allocation23_spill]] %s3900_s26  ;;  %p69_p0 = scmp.ne.s32.totalorder %s3892_s24, %s3888_s23 }
  0x14   : > { %p4615_p1 = scmp.eq.s32.totalorder %s4022_s28, 0  ;;  %p333_p2 = scmp.eq.s32.totalorder %s4022_s28, 1 }
  0x15   : > { %p339_p3 = scmp.eq.s32.totalorder %s2843_s29, 1  ;;  %p2844_p5 = scmp.ge.s32.totalorder %s3908_s11, 1 }
  0x16   : > { %p4031_p4 = por %p4615_p1, %p69_p0  ;;  %p346_p7 = scmp.lt.s32.totalorder %s3908_s11, 3 }
  0x17   : > { %p4036_p6 = por %p339_p3, %p69_p0  ;;  %s3910_s15 = smov [#allocation8]  }
  0x18   : > { %p4041_p8 = pnand %p2844_p5, %p346_p7  ;;  %s358_s16 = sshll.u32 %s3910_s15, 4  ;;  %s359_s16 = int_to_ptr.vmem [resolvable:$true] %s358_s16 }
  0x19   : > { %s4631_s13 = scalar_select %p4036_p6, 1, 0 }
  0x1a   : > { %p3432_p9 = pneg %p4041_p8  ;;  %s3911_s18 = smov [#allocation9]  }
  0x1b   : > { %4632 = sst [smem:[#allocation24_spill]] %s4631_s13  ;;  %s374_s19 = sshll.u32 %s3911_s18, 4  ;;  %s375_s19 = int_to_ptr.vmem [resolvable:$true] %s374_s19 }
  0x1c   : > { %p4050_p11 = pnand %p3432_p9, %p4615_p1  ;;  %s3912_s20 = smov [#allocation11]  }
  0x1d   : > { %s390_s21 = sshll.u32 %s3912_s20, 4  ;;  %s3663_s22 = scalar_lea.vmem %s359_s16, 1024  ;;  %s391_s21 = int_to_ptr.vmem [resolvable:$true] %s390_s21 }
  0x1e   : > { %p3654_p12 = pneg %p4050_p11  ;;  %p3664_p13 = scmp.ne.s32.totalorder %s359_s16, %s3663_s22 }
  0x1f   : > { %p3671_p5 = scmp.lt.s32.totalorder %s359_s16, %s359_s16  ;;  %p3672_p7 = scmp.lt.s32.totalorder %s3663_s22, %s3663_s22 }
  0x20   : > { %p3666_p0 = pnand %p3664_p13, %p3654_p12 }
  0x21   : > { %p3673_p9 = por %p3672_p7, %p3671_p5 }
  0x22   : > { %p3667_p3 = pneg %p3666_p0 }
  0x24   : > { %p3674_p10 = pnand %p3673_p9, %p3667_p3 }
  0x26   : > { %3677 = shalt.err (!%p3674_p10)
}
  0x27   : > { %s3913_s29 = smov 64   ;;  %s3914_s15 = smov 4  }
  0x28   : > { %s4635_s2 = sld [smem:[#allocation29_spill]]  ;;  %s3689_s13 = scalar_lea.vmem %s375_s19, 5120 }
  0x29   : > { %p3690_p13 = scmp.ne.s32.totalorder %s375_s19, %s3689_s13  ;;  %p3697_p3 = scmp.lt.s32.totalorder %s375_s19, %s375_s19 }
  0x2a   : > { %p3698_p10 = scmp.lt.s32.totalorder %s3689_s13, %s3689_s13 }
  0x2b   : > { %p3692_p0 = pnand %p3690_p13, %p3654_p12 }
  0x2c   : > { %p3699_p7 = por %p3698_p10, %p3697_p3 }
  0x2d   : > { %p3693_p5 = pneg %p3692_p0 }
  0x2e   : > { %3435 = dma.hbm_to_vmem [thread:$0]  (!%p4050_p11), %s4635_s2, 1024, %s359_s16, [#allocation7], %s3913_s29, %s3913_s29, %s3914_s15  }
  0x2f   : > { %p3700_p9 = pnand %p3699_p7, %p3693_p5 }
  0x31   : > { %3703 = shalt.err (!%p3700_p9)
}
  0x32   : > { %s4636_s4 = sld [smem:[#allocation30_spill]]  ;;  %s3715_s16 = scalar_lea.vmem %s391_s21, 5120 }
  0x33   : > { %p3716_p1 = scmp.ne.s32.totalorder %s391_s21, %s3715_s16  ;;  %p3723_p3 = scmp.lt.s32.totalorder %s391_s21, %s391_s21 }
  0x34   : > { %p3724_p5 = scmp.lt.s32.totalorder %s3715_s16, %s3715_s16 }
  0x35   : > { %p3718_p13 = pnand %p3716_p1, %p3654_p12 }
  0x36   : > { %p3725_p10 = por %p3724_p5, %p3723_p3 }
  0x37   : > { %p3719_p0 = pneg %p3718_p13 }
  0x38   : > { %3438 = dma.hbm_to_vmem [thread:$0]  (!%p4050_p11), %s4636_s4, 5120, %s375_s19, [#allocation10], %s3913_s29, %s3913_s29, %s3914_s15  }
  0x39   : > { %p3726_p7 = pnand %p3725_p10, %p3719_p0 }
  0x3b   : > { %3729 = shalt.err (!%p3726_p7)
}
  0x3c   : > { %s4637_s6 = sld [smem:[#allocation31_spill]]  ;;  %s3915_s19 = smov [#allocation12]  }
  0x3d   : > { %s406_s18 = sshll.u32 %s3915_s19, 4  ;;  %s407_s18 = int_to_ptr.vmem [resolvable:$true] %s406_s18 }
  0x3e   : > { %s3741_s20 = scalar_lea.vmem %s407_s18, 5120  ;;  %p3749_p0 = scmp.lt.s32.totalorder %s407_s18, %s407_s18 }
  0x3f   : > { %p3742_p1 = scmp.ne.s32.totalorder %s407_s18, %s3741_s20  ;;  %p3750_p3 = scmp.lt.s32.totalorder %s3741_s20, %s3741_s20 }
  0x41   : > { %p3744_p9 = pnand %p3742_p1, %p3654_p12  ;;  %p3751_p5 = por %p3750_p3, %p3749_p0 }
  0x42   : > { %3441 = dma.hbm_to_vmem [thread:$0]  (!%p4050_p11), %s4637_s6, 5120, %s391_s21, [#allocation10], %s3913_s29, %s3913_s29, %s3914_s15  }
  0x43   : > { %p3745_p13 = pneg %p3744_p9 }
  0x45   : > { %p3752_p10 = pnand %p3751_p5, %p3745_p13 }
  0x47   : > { %3755 = shalt.err (!%p3752_p10)
}
  0x48   : > { %s4638_s8 = sld [smem:[#allocation32_spill]]  ;;  %s47_s16 = sadd.s32 1, %s3904_s27 }
  0x49   : > { %s56_s17 = sadd.s32 1, %s3896_s25  ;;  %p49_p12 = scmp.ge.s32.totalorder %s47_s16, 2 }
  0x4a   : > { %p63_p7 = scmp.ne.s32.totalorder %s3896_s25, %s3892_s24  ;;  %p64_p1 = scmp.eq.s32.totalorder %s3908_s11, 0 }
  0x4b   : > { %p3460_p9 = scmp.lt.s32.totalorder %s3908_s11, 2  ;;  %s4665_s16 = smov (%p49_p12, %s47_s16), 0 }
  0x4c   : > { %4639 = sst [smem:[#allocation25_spill]] %s4665_s16  ;;  %p65_p13 = por %p64_p1, %p63_p7 }
  0x4d   : > { %p4110_p0 = por %p333_p2, %p63_p7  ;;  %s51_s13 = ssub.s32 %s3904_s27, %s4665_s16 }
  0x4e   : > { %3444 = dma.hbm_to_vmem [thread:$0]  (!%p4050_p11), %s4638_s8, 5120, %s407_s18, [#allocation13], %s3913_s29, %s3913_s29, %s3914_s15  }
  0x4f   : > { %s4640_s23 = scalar_select %p4110_p0, 1, 0 }
  0x50   : > { %s4117_s19 = sand.u32 1, %s3896_s25   ;;  %p54_p11 = scmp.eq.s32.totalorder %s51_s13, 0 }
  0x51   : > { %4641 = sst [smem:[#allocation26_spill]] %s4640_s23  ;;  %s2850_s29 = sshll.u32 %s4117_s19, 5 }
  0x52   : > { %s2999_s15 = sshll.u32 %s3904_s27, 9  ;;  %s4643_s0 = sld [smem:[#allocation28_spill]] }
  0x53   : > { %s4122_s18 = scalar_select %p54_p11, %s3896_s25, %s56_s17  }
  0x54   : > { %s433_s2 = scalar_lea.vmem [#allocation3], %s2850_s29  ;;  %p4129_p2 = pnand %p3460_p9, %p65_p13 }
  0x55   : > { %4642 = sst [smem:[#allocation27_spill]] %s4122_s18  ;;  %s442_s4 = sshll.u32 %s433_s2, 4  ;;  %s443_s4 = int_to_ptr.vmem [resolvable:$true] %s442_s4 }
  0x56   : > { %s430_s8 = scalar_lea.sflag [#allocation4], %s4117_s19  ;;  %p3758_p3 = pneg %p4129_p2 }
  0x57   : > { %s3769_s13 = scalar_lea.vmem %s443_s4, 512  ;;  %s3916_s17 = smov [#allocation3]  }
  0x58   : > { %s441_s22 = scalar_lea.hbm %s4643_s0, %s2999_s15  ;;  %p3770_p5 = scmp.ne.s32.totalorder %s443_s4, %s3769_s13 }
  0x59   : > { %s3774_s29 = sshll.u32 %s3916_s17, 4  ;;  %s3775_s29 = int_to_ptr.vmem [resolvable:$false] %s3774_s29 }
  0x5a   : > { %p3772_p10 = pnand %p3770_p5, %p3758_p3  ;;  %s3776_s2 = scalar_lea.vmem %s3775_s29, 1024 }
  0x5b   : > { %p3777_p7 = scmp.lt.s32.totalorder %s443_s4, %s3775_s29  ;;  %p3778_p1 = scmp.lt.s32.totalorder %s3776_s2, %s3769_s13 }
  0x5c   : > { %p3773_p12 = pneg %p3772_p10 }
  0x5d   : > { %p3779_p9 = por %p3778_p1, %p3777_p7 }
  0x5f   : > { %p3780_p13 = pnand %p3779_p9, %p3773_p12 }
  0x61   : > { %3783 = shalt.err (!%p3780_p13)
}
  0x62   : > { %s3917_s15 = smov 128   ;;  %s3918_s20 = smov 8  }
  0x63   : > { %3448 = dma.hbm_to_vmem [thread:$0]  (!%p4129_p2), %s441_s22, 512, %s443_s4, %s430_s8, %s3917_s15, %s3917_s15, %s3918_s20  }
  0x64   : > { %s452_s21 = sand.u32 1, %s3908_s11   ;;  %s2853_s0 = sshll.u32 %s4117_s19, 4 }
  0x65   : > { %s3000_s16 = sshll.u32 %s3904_s27, 8  ;;  %s456_s17 = scalar_lea.vmem [#allocation6], %s2853_s0 }
  0x66   : > { %s465_s18 = sshll.u32 %s456_s17, 4  ;;  %s464_s13 = scalar_lea.hbm %s4601_s1, %s3000_s16  ;;  %s466_s18 = int_to_ptr.vmem [resolvable:$true] %s465_s18 }
  0x67   : > { %s453_s2 = scalar_lea.sflag [#allocation7], %s452_s21  ;;  %s3797_s12 = scalar_lea.vmem %s466_s18, 256 }
  0x68   : > { %p3798_p11 = scmp.ne.s32.totalorder %s466_s18, %s3797_s12  ;;  %s3919_s23 = smov [#allocation6]  }
  0x69   : > { %s3802_s26 = sshll.u32 %s3919_s23, 4  ;;  %s3803_s26 = int_to_ptr.vmem [resolvable:$false] %s3802_s26 }
  0x6a   : > { %p3800_p5 = pnand %p3798_p11, %p3758_p3  ;;  %s3804_s4 = scalar_lea.vmem %s3803_s26, 512 }
  0x6b   : > { %p3805_p12 = scmp.lt.s32.totalorder %s466_s18, %s3803_s26  ;;  %p3806_p7 = scmp.lt.s32.totalorder %s3804_s4, %s3797_s12 }
  0x6c   : > { %p3801_p10 = pneg %p3800_p5 }
  0x6d   : > { %p3807_p1 = por %p3806_p7, %p3805_p12 }
  0x6f   : > { %p3808_p9 = pnand %p3807_p1, %p3801_p10 }
  0x71   : > { %3811 = shalt.err (!%p3808_p9)
}
  0x72   : > { %3451 = dma.hbm_to_vmem [thread:$0]  (!%p4129_p2), %s464_s13, 256, %s466_s18, %s453_s2, %s3917_s15, %s3917_s15, %s3918_s20  }
  0x73   : > { %477 = sbr.rel (%p4041_p8) target bundleno = 1374 (0x55e), region = 68  ;;  %s4155_s0 = sand.u32 (!%p4041_p8), 1, %s3892_s24  }
  0x74   : > { %s2857_s8 = sshll.u32 (!%p4041_p8), %s4155_s0, 5  ;;  %s480_s25 = scalar_lea.sflag (!%p4041_p8), [#allocation4], %s4155_s0 }
  0x75   : > { %s4159_s16 = scalar_lea.vmem (!%p4041_p8), [#allocation3], %s2857_s8 }
  0x78   : > { %3863 = dma.done.wait (%p4031_p4), %s480_s25, 512  }
  0x79   : > { %3865 = vsyncadd (%p4031_p4), %s480_s25, 4294966784  ;;  %s488_s6 = sand.u32 1, %s4022_s28   ;;  %s2858_s12 = sshll.u32 %s4155_s0, 4 }
  0x7a   : > { %s489_s26 = scalar_lea.sflag [#allocation7], %s488_s6  ;;  %s4167_s14 = scalar_lea.vmem [#allocation6], %s2858_s12 }
  0x7b   : > { %3867 = dma.done.wait (%p4031_p4), %s489_s26, 256  }
  0x7c   : > { %3869 = vsyncadd (%p4031_p4), %s489_s26, 4294967040  ;;  %p4645_p8 = scmp.eq.s32.totalorder %s4022_s28, 0 }
  0x7e   : > { %3871 = dma.done.wait (%p4645_p8), [#allocation7], 1024   ;;  %p4646_p2 = pmov %p4645_p8 }
  0x80   : > { %3873 = vsyncadd (%p4646_p2), [#allocation7], 4294966272  ;;  %p4647_p3 = pmov %p4646_p2 }
  0x81   : > { %p4648_p13 = pmov %p4646_p2 }
  0x82   : > { %3875 = dma.done.wait (%p4647_p3), [#allocation10], 10240  }
  0x83   : > { %3877 = vsyncadd (%p4648_p13), [#allocation10], 4294957056  ;;  %p4649_p11 = pmov %p4646_p2 }
  0x84   : > { %p4650_p5 = pmov %p4646_p2 }
  0x85   : > { %3879 = dma.done.wait (%p4649_p11), [#allocation13], 5120  }
  0x86   : > { %3881 = vsyncadd (%p4650_p5), [#allocation13], 4294962176  ;;  %v3920_v1 = vmov 0.0   ;;  %vm3921_vm0 = vmmov 0   ;;  %v3524_v2 = vld [vmem:[#allocation8 + $0x38] sm:$0xff]   ;;  %v3525_v3 = vld [vmem:[#allocation8 + $0x30] sm:$0xff]   ;;  %v557_v52 = vlaneseq }
  0x87   : > { %3266 = vmatprep.subr.bf16.mxu0 %v3920_v1  ;;  %3282 = vmatprep.mubr.msk.bf16.mxu0 %vm3921_vm0, %v3920_v1  ;;  %v3526_v4 = vld [vmem:[#allocation8 + $0x28] sm:$0xff]   ;;  %v3527_v5 = vld [vmem:[#allocation8 + $0x20] sm:$0xff]   ;;  %v3528_v9 = vld [vmem:[#allocation8 + $0x18] sm:$0xff]   ;;  %v4220_v60 = vrot.slane %v3920_v1, 7  ;;  %v4223_v61 = vrot.slane %v3920_v1, 6  ;;  %s4651_s29 = sld [smem:[#allocation23_spill]] }
  0x88   : > { %3286 = vmatprep.subr.bf16.mxu1 %v3524_v2  ;;  %3267 = vmatpush3.bf16.msra.mxu0 %v3524_v2  ;;  %v696_v6 = vld [vmem:[%s4159_s16] sm:$0xff]  ;;  %v697_v7 = vld [vmem:[%s4159_s16 + $0x8] sm:$0xff]  ;;  %v3529_v10 = vld [vmem:[#allocation8 + $0x10] sm:$0xff]   ;;  %v4212_v55 = vshrl.u32 %v557_v52, 7  ;;  %s552_s4 = scalar_lea.vmem [#allocation14], %s4155_s0  ;;  %s4653_s6 = sld [smem:[#allocation33_spill]] }
  0x89   : > { %3287 = vmatpush3.bf16.msra.mxu1 %v3524_v2  ;;  %3268 = vmatprep.subr.bf16.mxu0 %v3920_v1  ;;  %v700_v8 = vpack.c.bf16 %v697_v7, %v696_v6  ;;  %v3530_v11 = vld [vmem:[#allocation8 + $0x8] sm:$0xff]   ;;  %v3531_v12 = vld [vmem:[#allocation8] sm:$0xff]   ;;  %v698_v13 = vld [vmem:[%s4159_s16 + $0x10] sm:$0xff]  ;;  %v4234_v7 = vrot.slane %v3920_v1, 1  ;;  %s2700_s8 = sshll.u32 %s552_s4, 4  ;;  %s2687_s26 = scalar_lea.sflag [#allocation5], %s4155_s0  ;;  %s2701_s8 = int_to_ptr.vmem [resolvable:$true] %s2700_s8 }
  0x8a   : > { %3288 = vmatprep.subr.bf16.mxu1 %v3525_v3  ;;  %v605_v14 = vld [vmem:[%s4167_s14] sm:$0xff]  ;;  %v699_v15 = vld [vmem:[%s4159_s16 + $0x18] sm:$0xff]  ;;  %v3538_v22 = vld [vmem:[#allocation9 + $0x68] sm:$0xff]   ;;  %vm842_vm1 = vcmp.lt.s32.totalorder %v4212_v55, 1  ;;  %vm829_vm2 = vcmp.lt.s32.totalorder %v4212_v55, 2  ;;  %vm855_vm3 = vcmp.lt.s32.totalorder %v4212_v55, 7 }
  0x8b   : > { %3302 = vmatprep.mubr.bf16.mxu1 %v700_v8  ;;  %v3532_v16 = vld [vmem:[#allocation9 + $0x78] sm:$0xff]   ;;  %v607_v17 = vpack.c.bf16 %v605_v14, %v605_v14  ;;  %v701_v19 = vpack.c.bf16 %v699_v15, %v698_v13  ;;  %v3534_v20 = vld [vmem:[#allocation9 + $0x70] sm:$0xff]   ;;  %v3539_v23 = vld [vmem:[#allocation9 + $0x28] sm:$0xff]   ;;  %vm868_vm4 = vcmp.lt.s32.totalorder %v4212_v55, 6  ;;  %s3922_s28 = smov [#allocation14]  }
  0x8c   : > { %3269 = vmatpush3.bf16.msra.mxu0 %v3525_v3  ;;  %v3533_v18 = vld [vmem:[#allocation9 + $0x38] sm:$0xff]   ;;  %v3535_v21 = vld [vmem:[#allocation9 + $0x30] sm:$0xff]   ;;  %v3542_v24 = vld [vmem:[#allocation9 + $0x60] sm:$0xff]   ;;  %s3816_s30 = sshll.u32 %s3922_s28, 4  ;;  %s3817_s30 = int_to_ptr.vmem [resolvable:$false] %s3816_s30 }
  0x8d   : > { %3289 = vmatpush3.bf16.msra.mxu1 %v3525_v3  ;;  %3270 = vmatprep.subr.bf16.mxu0 %v3920_v1  ;;  %v3543_v25 = vld [vmem:[#allocation9 + $0x20] sm:$0xff]   ;;  %v3546_v26 = vld [vmem:[#allocation9 + $0x58] sm:$0xff]   ;;  %v3550_v28 = vld [vmem:[#allocation9 + $0x50] sm:$0xff]   ;;  %s2996_s2 = sshll.u32 %s4651_s29, 4  ;;  %s3818_s23 = scalar_lea.vmem %s3817_s30, 32 }
  0x8e   : > { %3290 = vmatprep.subr.bf16.mxu1 %v3526_v4  ;;  %v3547_v27 = vld [vmem:[#allocation9 + $0x18] sm:$0xff]   ;;  %v3551_v29 = vld [vmem:[#allocation9 + $0x10] sm:$0xff]   ;;  %v3544_v36 = vld [vmem:[#allocation9 + $0xe8] sm:$0xff]   ;;  %s4558_s12 = scalar_lea.hbm %s4653_s6, %s2996_s2  ;;  %p3819_p7 = scmp.lt.s32.totalorder %s2701_s8, %s3817_s30 }
  0x8f   : > { %v606_v30 = vld [vmem:[%s4167_s14 + $0x8] sm:$0xff]  ;;  %v3540_v34 = vld [vmem:[#allocation9 + $0xf0] sm:$0xff]   ;;  %v3548_v38 = vld [vmem:[#allocation9 + $0xe0] sm:$0xff]   ;;  %s3812_s14 = scalar_lea.vmem %s2701_s8, 16 }
  0x90   : > { %3271 = vmatpush3.bf16.msra.mxu0 %v3526_v4  ;;  %v3536_v31 = vld [vmem:[#allocation9 + $0xf8] sm:$0xff]   ;;  %v751_v33 = vpack.c.bf16 %v606_v30, %v606_v30  ;;  %v3541_v35 = vld [vmem:[#allocation9 + $0xb0] sm:$0xff]   ;;  %v3545_v37 = vld [vmem:[#allocation9 + $0xa8] sm:$0xff]   ;;  %p3813_p4 = scmp.ne.s32.totalorder %s2701_s8, %s3812_s14  ;;  %p3820_p1 = scmp.lt.s32.totalorder %s3818_s23, %s3812_s14 }
  0x91   : > { %3291 = vmatpush3.bf16.msra.mxu1 %v3526_v4  ;;  %3272 = vmatprep.subr.bf16.mxu0 %v3920_v1  ;;  %v3537_v32 = vld [vmem:[#allocation9 + $0xb8] sm:$0xff]   ;;  %v3549_v39 = vld [vmem:[#allocation9 + $0xa0] sm:$0xff]   ;;  %v3554_v42 = vld [vmem:[#allocation9 + $0x48] sm:$0xff]  }
  0x92   : > { %3292 = vmatprep.subr.bf16.mxu1 %v3527_v5  ;;  %v3552_v40 = vld [vmem:[#allocation9 + $0xd8] sm:$0xff]   ;;  %v3555_v43 = vld [vmem:[#allocation9 + $0x8] sm:$0xff]   ;;  %v3556_v44 = vld [vmem:[#allocation9 + $0xd0] sm:$0xff]   ;;  %p3814_p10 = pnand %p3813_p4, %p4110_p0  ;;  %p3821_p9 = por %p3820_p1, %p3819_p7 }
  0x93   : > { %v3553_v41 = vld [vmem:[#allocation9 + $0x98] sm:$0xff]   ;;  %v3557_v45 = vld [vmem:[#allocation9 + $0x90] sm:$0xff]   ;;  %v3558_v46 = vld [vmem:[#allocation9 + $0x40] sm:$0xff]  }
  0x94   : > { %3273 = vmatpush3.bf16.msra.mxu0 %v3527_v5  ;;  %v3559_v47 = vld [vmem:[#allocation9] sm:$0xff]   ;;  %v3560_v48 = vld [vmem:[#allocation9 + $0xc8] sm:$0xff]   ;;  %v2871_v56 = vld [vmem:[%s4603_s3] ss:$0 sm:$0xff]  ;;  %p3815_p12 = pneg %p3814_p10 }
  0x95   : > { %3293 = vmatpush3.bf16.msra.mxu1 %v3527_v5  ;;  %3274 = vmatprep.subr.bf16.mxu0 %v3920_v1  ;;  %v3561_v49 = vld [vmem:[#allocation9 + $0x88] sm:$0xff]   ;;  %v3562_v50 = vld [vmem:[#allocation9 + $0xc0] sm:$0xff]   ;;  %v3563_v14 = vld [vmem:[#allocation9 + $0x138] sm:$0xff]  }
  0x96   : > { %3294 = vmatprep.subr.bf16.mxu1 %v3528_v9  ;;  %v3564_v51 = vld [vmem:[#allocation9 + $0x80] sm:$0xff]   ;;  %p3822_p8 = pnand %p3821_p9, %p3815_p12 }
  0x98   : > { %3275 = vmatpush3.bf16.msra.mxu0 %v3528_v9 }
  0x99   : > { %3295 = vmatpush3.bf16.msra.mxu1 %v3528_v9  ;;  %3276 = vmatprep.subr.bf16.mxu0 %v3920_v1 }
  0x9a   : > { %3296 = vmatprep.subr.bf16.mxu1 %v3529_v10 }
  0x9c   : > { %3277 = vmatpush3.bf16.msra.mxu0 %v3529_v10 }
  0x9d   : > { %3297 = vmatpush3.bf16.msra.mxu1 %v3529_v10  ;;  %3278 = vmatprep.subr.bf16.mxu0 %v3920_v1 }
  0x9e   : > { %3298 = vmatprep.subr.bf16.mxu1 %v3530_v11 }
  0xa0   : > { %3279 = vmatpush3.bf16.msra.mxu0 %v3530_v11 }
  0xa1   : > { %3299 = vmatpush3.bf16.msra.mxu1 %v3530_v11  ;;  %3280 = vmatprep.subr.bf16.mxu0 %v3920_v1 }
  0xa2   : > { %3300 = vmatprep.subr.bf16.mxu1 %v3531_v12 }
  0xa4   : > { %3281 = vmatpush3.bf16.msra.mxu0 %v3531_v12 }
  0xa5   : > { %3301 = vmatpush3.bf16.msra.mxu1 %v3531_v12  ;;  %3306 = vmatprep.subr.bf16.mxu0 %v3920_v1 }
  0xa6   : > { %3029 = vmatprep.subr.bf16.mxu1 %v3532_v16 }
  0xa7   : > { %3283 = vmatmul.mubr.bf16.vlgmr.msra.gmra.mxu0 %v607_v17 }
  0xa8   : > { %3303 = vmatmul.mubr.bf16.vlgmr.msra.gmra.mxu1 %v701_v19  ;;  %3307 = vmatpush3.bf16.msra.mxu0 %v3524_v2 }
  0xa9   : > { %3308 = vmatprep.subr.bf16.mxu0 %v3920_v1  ;;  %3030 = vmatpush3.bf16.msra.mxu1 %v3533_v18 }
  0xaa   : > { %3031 = vmatprep.subr.bf16.mxu1 %v3534_v20  ;;  %3322 = vmatprep.mubr.msk.bf16.mxu0 %vm3921_vm0, %v3920_v1 }
  0xac   : > { %3309 = vmatpush3.bf16.msra.mxu0 %v3525_v3 }
  0xad   : > { %3310 = vmatprep.subr.bf16.mxu0 %v3920_v1  ;;  %3032 = vmatpush3.bf16.msra.mxu1 %v3535_v21 }
  0xae   : > { %3033 = vmatprep.subr.bf16.mxu1 %v3538_v22 }
  0xb0   : > { %3311 = vmatpush3.bf16.msra.mxu0 %v3526_v4 }
  0xb1   : > { %3312 = vmatprep.subr.bf16.mxu0 %v3920_v1  ;;  %3034 = vmatpush3.bf16.msra.mxu1 %v3539_v23 }
  0xb2   : > { %3035 = vmatprep.subr.bf16.mxu1 %v3542_v24 }
  0xb4   : > { %3313 = vmatpush3.bf16.msra.mxu0 %v3527_v5 }
  0xb5   : > { %3314 = vmatprep.subr.bf16.mxu0 %v3920_v1  ;;  %3036 = vmatpush3.bf16.msra.mxu1 %v3543_v25 }
  0xb6   : > { %3037 = vmatprep.subr.bf16.mxu1 %v3546_v26 }
  0xb8   : > { %3315 = vmatpush3.bf16.msra.mxu0 %v3528_v9 }
  0xb9   : > { %3316 = vmatprep.subr.bf16.mxu0 %v3920_v1  ;;  %3038 = vmatpush3.bf16.msra.mxu1 %v3547_v27 }
  0xba   : > { %3039 = vmatprep.subr.bf16.mxu1 %v3550_v28 }
  0xbc   : > { %3317 = vmatpush3.bf16.msra.mxu0 %v3529_v10 }
  0xbd   : > { %3318 = vmatprep.subr.bf16.mxu0 %v3920_v1  ;;  %3040 = vmatpush3.bf16.msra.mxu1 %v3551_v29  ;;  %v3565_v29 = vld [vmem:[#allocation9 + $0x130] sm:$0xff]  }
  0xbe   : > { %3041 = vmatprep.subr.bf16.mxu1 %v3554_v42 }
  0xc0   : > { %3319 = vmatpush3.bf16.msra.mxu0 %v3530_v11 }
  0xc1   : > { %3320 = vmatprep.subr.bf16.mxu0 %v3920_v1  ;;  %3042 = vmatpush3.bf16.msra.mxu1 %v3555_v43  ;;  %v3567_v43 = vld [vmem:[#allocation9 + $0x120] sm:$0xff]  }
  0xc2   : > { %3043 = vmatprep.subr.bf16.mxu1 %v3558_v46 }
  0xc4   : > { %3321 = vmatpush3.bf16.msra.mxu0 %v3531_v12 }
  0xc5   : > { %3063 = vmatprep.subr.bf16.mxu0 %v3536_v31  ;;  %3044 = vmatpush3.bf16.msra.mxu1 %v3559_v47 }
  0xc6   : > { %3326 = vmatprep.subr.bf16.mxu1 %v3920_v1 }
  0xc7   : > { %3323 = vmatmul.mubr.bf16.vlgmr.msra.gmra.mxu0 %v751_v33 }
  0xc8   : > { %3064 = vmatpush3.bf16.msra.mxu0 %v3537_v32 }
  0xc9   : > { %3065 = vmatprep.subr.bf16.mxu0 %v3540_v34 }
  0xcc   : > { %3066 = vmatpush3.bf16.msra.mxu0 %v3541_v35 }
  0xcd   : > { %3067 = vmatprep.subr.bf16.mxu0 %v3544_v36 }
  0xd0   : > { %3068 = vmatpush3.bf16.msra.mxu0 %v3545_v37 }
  0xd1   : > { %3069 = vmatprep.subr.bf16.mxu0 %v3548_v38  ;;  %v3566_v38 = vld [vmem:[#allocation9 + $0x128] sm:$0xff]  }
  0xd4   : > { %3070 = vmatpush3.bf16.msra.mxu0 %v3549_v39 }
  0xd5   : > { %3071 = vmatprep.subr.bf16.mxu0 %v3552_v40 }
  0xd8   : > { %3072 = vmatpush3.bf16.msra.mxu0 %v3553_v41 }
  0xd9   : > { %3073 = vmatprep.subr.bf16.mxu0 %v3556_v44 }
  0xdc   : > { %3074 = vmatpush3.bf16.msra.mxu0 %v3557_v45 }
  0xdd   : > { %3075 = vmatprep.subr.bf16.mxu0 %v3560_v48  ;;  %v3568_v48 = vld [vmem:[#allocation9 + $0x118] sm:$0xff]  }
  0xe0   : > { %3076 = vmatpush3.bf16.msra.mxu0 %v3561_v49 }
  0xe1   : > { %3077 = vmatprep.subr.bf16.mxu0 %v3562_v50  ;;  %v3569_v50 = vld [vmem:[#allocation9 + $0x110] sm:$0xff]  }
  0xe4   : > { %3078 = vmatpush3.bf16.msra.mxu0 %v3564_v51 }
 0x167   : > { %v690_v53 = vpop.f32.mrf.mxu0 }
 0x168   : > { %v3304_v54 = vpop.f32.mrf.mxu1  ;;  %v3570_v53 = vld [vmem:[#allocation9 + $0x108] sm:$0xff]  }
 0x169   : > { %v3284_v57 = vpop.f32.mrf.mxu0  ;;  %v4225_v63 = vadd.f32 %v3304_v54, %v2871_v56 }
 0x16a   : > { %v736_v58 = vpop.f32.mrf.mxu1 }
 0x16b   : > { %v4217_v59 = vadd.f32 %v2871_v56, %v736_v58  ;;  %v693_v62 = vpop.f32.mrf.mxu0  ;;  %v839_v15 = vrot.slane %v4225_v63, 7  ;;  %v852_v18 = vrot.slane %v4225_v63, 1  ;;  %v826_v30 = vrot.slane %v4225_v63, 6 }
 0x16c   : > { %v3305_v0 = vpop.f32.mrf.mxu1  ;;  %v3571_v62 = vld [vmem:[#allocation9 + $0x100] sm:$0xff]  }
 0x16d   : > { %v4229_v2 = vadd.f32 %v3305_v0, %v2871_v56  ;;  %v837_v3 = vrot.slane %v4217_v59, 7  ;;  %v824_v4 = vrot.slane %v4217_v59, 6  ;;  %v3285_v5 = vpop.f32.mrf.mxu0  ;;  %v850_v8 = vrot.slane %v4217_v59, 1 }
 0x16e   : > { %v739_v6 = vpop.f32.mrf.mxu1  ;;  %v877_v31 = vpack.c.bf16 %v4217_v59, %v3920_v1  ;;  %v863_v58 = vrot.slane %v4217_v59, 2  ;;  %v4305_v0 = vrot.slane %v3920_v1, 2  ;;  %v865_v59 = vrot.slane %v4225_v63, 2 }
 0x16f   : > { %v4237_v9 = vadd.f32 %v2871_v56, %v739_v6  ;;  %v847_v10 = vsel %vm842_vm1, %v4220_v60, %v837_v3  ;;  %v834_v11 = vsel %vm829_vm2, %v4223_v61, %v824_v4  ;;  %v853_v19 = vrot.slane %v4229_v2, 1 }
 0x170   : > { %v876_v12 = vpack.c.bf16 %v847_v10, %v4220_v60  ;;  %v875_v13 = vpack.c.bf16 %v834_v11, %v4223_v61  ;;  %v860_v20 = vsel %vm855_vm3, %v4234_v7, %v850_v8  ;;  %v840_v22 = vrot.slane %v4229_v2, 7 }
 0x171   : > { %v838_v16 = vrot.slane %v4237_v9, 7  ;;  %v851_v17 = vrot.slane %v4237_v9, 1  ;;  %v825_v21 = vrot.slane %v4237_v9, 6  ;;  %v857_v32 = vsel %vm855_vm3, %v852_v18, %v853_v19 }
 0x172   : > { %1249 = vmatprep.mubr.bf16.mxu1 %v876_v12  ;;  %v843_v36 = vsel %vm842_vm1, %v840_v22, %v4220_v60  ;;  %v844_v37 = vsel %vm842_vm1, %v839_v15, %v840_v22  ;;  %v827_v41 = vrot.slane %v4229_v2, 6  ;;  %v856_v42 = vsel %vm855_vm3, %v853_v19, %v4234_v7  ;;  %v3580_v19 = vld [vmem:[#allocation11 + $0xf0] sm:$0xff]   ;;  %v3582_v22 = vld [vmem:[#allocation11 + $0x60] sm:$0xff]  }
 0x173   : > { %1250 = vmatmul.mubr.bf16.vlgmr.msra.gmra.mxu1 %v875_v13  ;;  %v845_v23 = vsel %vm842_vm1, %v838_v16, %v839_v15  ;;  %v846_v24 = vsel %vm842_vm1, %v837_v3, %v838_v16  ;;  %v859_v25 = vsel %vm855_vm3, %v850_v8, %v851_v17  ;;  %v858_v26 = vsel %vm855_vm3, %v851_v17, %v852_v18  ;;  %v3575_v15 = vld [vmem:[#allocation11 + $0x30] sm:$0xff]   ;;  %v3576_v16 = vld [vmem:[#allocation11 + $0xf8] sm:$0xff]   ;;  %v3578_v18 = vld [vmem:[#allocation11 + $0x68] sm:$0xff]  }
 0x174   : > { %3327 = vmatpush3.bf16.msra.mxu1 %v3563_v14  ;;  %v881_v27 = vpack.c.bf16 %v845_v23, %v846_v24  ;;  %v878_v28 = vpack.c.bf16 %v859_v25, %v860_v20  ;;  %v883_v33 = vpack.c.bf16 %v857_v32, %v858_v26  ;;  %v832_v34 = vsel %vm829_vm2, %v825_v21, %v826_v30  ;;  %v3574_v14 = vld [vmem:[#allocation11 + $0x70] sm:$0xff]   ;;  %v3577_v17 = vld [vmem:[#allocation11 + $0xb8] sm:$0xff]   ;;  %v3579_v20 = vld [vmem:[#allocation11 + $0x28] sm:$0xff]  }
 0x175   : > { %3328 = vmatprep.subr.bf16.mxu1 %v3920_v1  ;;  %v833_v35 = vsel %vm829_vm2, %v824_v4, %v825_v21  ;;  %v886_v40 = vpack.c.bf16 %v843_v36, %v844_v37  ;;  %v882_v44 = vpack.c.bf16 %v4225_v63, %v4237_v9  ;;  %v888_v45 = vpack.c.bf16 %v4234_v7, %v856_v42  ;;  %v3572_v63 = vld [vmem:[#allocation11 + $0x78] sm:$0xff]   ;;  %v3581_v21 = vld [vmem:[#allocation11 + $0xb0] sm:$0xff]   ;;  %v3584_v23 = vld [vmem:[#allocation11 + $0xe8] sm:$0xff]  }
 0x176   : > { %1257 = vmatprep.mubr.bf16.mxu1 %v881_v27  ;;  %1306 = vmatprep.mubr.bf16.mxu0 %v878_v28  ;;  %v880_v39 = vpack.c.bf16 %v832_v34, %v833_v35  ;;  %v830_v46 = vsel %vm829_vm2, %v827_v41, %v4223_v61  ;;  %v831_v47 = vsel %vm829_vm2, %v826_v30, %v827_v41  ;;  %v864_v56 = vrot.slane %v4237_v9, 2  ;;  %v3583_v24 = vld [vmem:[#allocation11 + $0x20] sm:$0xff]   ;;  %v3585_v25 = vld [vmem:[#allocation11 + $0xa8] sm:$0xff]   ;;  %v3586_v26 = vld [vmem:[#allocation11 + $0x58] sm:$0xff]  }
 0x177   : > { %1307 = vmatmul.mubr.bf16.vlgmr.msra.gmra.mxu0 %v877_v31  ;;  %v885_v49 = vpack.c.bf16 %v830_v46, %v831_v47  ;;  %v887_v51 = vpack.c.bf16 %v3920_v1, %v4229_v2  ;;  %v873_v5 = vsel %vm868_vm4, %v4305_v0, %v863_v58  ;;  %v866_v8 = vrot.slane %v4229_v2, 2  ;;  %v3573_v2 = vld [vmem:[#allocation11 + $0x38] sm:$0xff]   ;;  %3108 = vmatprep.subr.bf16.mxu0 %v3572_v63  ;;  %v3588_v28 = vld [vmem:[#allocation11 + $0xe0] sm:$0xff]   ;;  %v3590_v30 = vld [vmem:[#allocation11 + $0x50] sm:$0xff]  }
 0x178   : > { %3329 = vmatpush3.bf16.msra.mxu1 %v3565_v29  ;;  %1314 = vmatprep.mubr.bf16.mxu0 %v883_v33  ;;  %v872_v4 = vsel %vm868_vm4, %v863_v58, %v864_v56  ;;  %v871_v9 = vsel %vm868_vm4, %v864_v56, %v865_v59  ;;  %v3587_v27 = vld [vmem:[#allocation11 + $0x18] sm:$0xff]   ;;  %v3589_v29 = vld [vmem:[#allocation11 + $0xa0] sm:$0xff]   ;;  %v3591_v31 = vld [vmem:[#allocation11 + $0x10] sm:$0xff]  }
 0x179   : > { %3330 = vmatprep.subr.bf16.mxu1 %v3920_v1  ;;  %v879_v6 = vpack.c.bf16 %v872_v4, %v873_v5  ;;  %v870_v10 = vsel %vm868_vm4, %v865_v59, %v866_v8  ;;  %v869_v12 = vsel %vm868_vm4, %v866_v8, %v4305_v0  ;;  %3109 = vmatpush3.bf16.msra.mxu0 %v3573_v2  ;;  %v3592_v32 = vld [vmem:[#allocation11 + $0xd8] sm:$0xff]   ;;  %v3594_v34 = vld [vmem:[#allocation11 + $0x48] sm:$0xff]   ;;  %v3596_v36 = vld [vmem:[#allocation11 + $0xd0] sm:$0xff]  }
 0x17a   : > { %v884_v11 = vpack.c.bf16 %v870_v10, %v871_v9  ;;  %v889_v13 = vpack.c.bf16 %v4305_v0, %v869_v12  ;;  %3110 = vmatprep.subr.bf16.mxu0 %v3574_v14  ;;  %v3593_v33 = vld [vmem:[#allocation11 + $0x98] sm:$0xff]   ;;  %v3595_v35 = vld [vmem:[#allocation11 + $0x8] sm:$0xff]   ;;  %v3597_v37 = vld [vmem:[#allocation11 + $0x90] sm:$0xff]  }
 0x17b   : > { %1258 = vmatmul.mubr.bf16.gmra.mxu1 %v880_v39  ;;  %v3599_v39 = vld [vmem:[#allocation11] sm:$0xff]   ;;  %v3601_v41 = vld [vmem:[#allocation11 + $0x88] sm:$0xff]  }
 0x17c   : > { %3331 = vmatpush3.bf16.msra.mxu1 %v3566_v38  ;;  %1265 = vmatprep.mubr.bf16.mxu1 %v886_v40  ;;  %v3598_v38 = vld [vmem:[#allocation11 + $0x40] sm:$0xff]   ;;  %v3600_v40 = vld [vmem:[#allocation11 + $0xc8] sm:$0xff]  }
 0x17d   : > { %3332 = vmatprep.subr.bf16.mxu1 %v3920_v1  ;;  %3111 = vmatpush3.bf16.msra.mxu0 %v3575_v15  ;;  %v3602_v42 = vld [vmem:[#allocation11 + $0xc0] sm:$0xff]  }
 0x17e   : > { %3112 = vmatprep.subr.bf16.mxu0 %v3578_v18 }
 0x17f   : > { %1315 = vmatmul.mubr.bf16.gmra.mxu0 %v882_v44 }
 0x180   : > { %3333 = vmatpush3.bf16.msra.mxu1 %v3567_v43  ;;  %1322 = vmatprep.mubr.bf16.mxu0 %v888_v45  ;;  %v3604_v43 = vld [vmem:[#allocation11 + $0x80] sm:$0xff]  }
 0x181   : > { %3334 = vmatprep.subr.bf16.mxu1 %v3920_v1  ;;  %3113 = vmatpush3.bf16.msra.mxu0 %v3579_v20 }
 0x182   : > { %3114 = vmatprep.subr.bf16.mxu0 %v3582_v22 }
 0x183   : > { %1266 = vmatmul.mubr.bf16.gmra.mxu1 %v885_v49 }
 0x184   : > { %3335 = vmatpush3.bf16.msra.mxu1 %v3568_v48  ;;  %3342 = vmatprep.mubr.msk.bf16.mxu1 %vm3921_vm0, %v3920_v1 }
 0x185   : > { %3336 = vmatprep.subr.bf16.mxu1 %v3920_v1  ;;  %3115 = vmatpush3.bf16.msra.mxu0 %v3583_v24 }
 0x186   : > { %3116 = vmatprep.subr.bf16.mxu0 %v3586_v26 }
 0x187   : > { %1323 = vmatmul.mubr.bf16.gmra.mxu0 %v887_v51  ;;  %v786_v52 = vpop.f32.mrf.mxu0 }
 0x188   : > { %3337 = vmatpush3.bf16.msra.mxu1 %v3569_v50 }
 0x189   : > { %3338 = vmatprep.subr.bf16.mxu1 %v3920_v1  ;;  %v3324_v54 = vpop.f32.mrf.mxu0  ;;  %3117 = vmatpush3.bf16.msra.mxu0 %v3587_v27 }
 0x18a   : > { %3118 = vmatprep.subr.bf16.mxu0 %v3590_v30 }
 0x18b   : > { %v789_v57 = vpop.f32.mrf.mxu0 }
 0x18c   : > { %3339 = vmatpush3.bf16.msra.mxu1 %v3570_v53 }
 0x18d   : > { %3340 = vmatprep.subr.bf16.mxu1 %v3920_v1  ;;  %v3325_v3 = vpop.f32.mrf.mxu0  ;;  %3119 = vmatpush3.bf16.msra.mxu0 %v3591_v31 }
 0x18e   : > { %3120 = vmatprep.subr.bf16.mxu0 %v3594_v34 }
 0x190   : > { %3341 = vmatpush3.bf16.msra.mxu1 %v3571_v62 }
 0x191   : > { %3142 = vmatprep.subr.bf16.mxu1 %v3576_v16  ;;  %3121 = vmatpush3.bf16.msra.mxu0 %v3595_v35 }
 0x192   : > { %3122 = vmatprep.subr.bf16.mxu0 %v3598_v38 }
 0x193   : > { %3343 = vmatmul.mubr.bf16.vlgmr.msra.gmra.mxu1 %v879_v6 }
 0x194   : > { %3346 = vmatprep.mubr.msk.bf16.mxu1 %vm3921_vm0, %v3920_v1  ;;  %3143 = vmatpush3.bf16.msra.mxu1 %v3577_v17 }
 0x195   : > { %3144 = vmatprep.subr.bf16.mxu1 %v3580_v19  ;;  %3123 = vmatpush3.bf16.msra.mxu0 %v3599_v39 }
 0x196   : > { %3354 = vmatprep.subr.bf16.mxu0 %v3920_v1 }
 0x198   : > { %3145 = vmatpush3.bf16.msra.mxu1 %v3581_v21 }
 0x199   : > { %3146 = vmatprep.subr.bf16.mxu1 %v3584_v23 }
 0x19b   : > { %3347 = vmatmul.mubr.bf16.gmra.mxu1 %v884_v11 }
 0x19c   : > { %3350 = vmatprep.mubr.msk.bf16.mxu1 %vm3921_vm0, %v3920_v1  ;;  %3147 = vmatpush3.bf16.msra.mxu1 %v3585_v25 }
 0x19d   : > { %3148 = vmatprep.subr.bf16.mxu1 %v3588_v28 }
 0x1a0   : > { %3149 = vmatpush3.bf16.msra.mxu1 %v3589_v29 }
 0x1a1   : > { %3150 = vmatprep.subr.bf16.mxu1 %v3592_v32 }
 0x1a3   : > { %3351 = vmatmul.mubr.bf16.gmra.mxu1 %v889_v13  ;;  %v2872_v13 = vld [vmem:[%s4605_s5] ss:$0 sm:$0xff] }
 0x1a4   : > { %3151 = vmatpush3.bf16.msra.mxu1 %v3593_v33 }
 0x1a5   : > { %3152 = vmatprep.subr.bf16.mxu1 %v3596_v36 }
 0x1a8   : > { %3153 = vmatpush3.bf16.msra.mxu1 %v3597_v37 }
 0x1a9   : > { %3154 = vmatprep.subr.bf16.mxu1 %v3600_v40 }
 0x1ac   : > { %3155 = vmatpush3.bf16.msra.mxu1 %v3601_v41 }
 0x1ad   : > { %3156 = vmatprep.subr.bf16.mxu1 %v3602_v42 }
 0x1b0   : > { %3157 = vmatpush3.bf16.msra.mxu1 %v3604_v43 }
 0x233   : > { %v3045_v44 = vpop.f32.mrf.mxu1 }
 0x235   : > { %v3046_v45 = vpop.f32.mrf.mxu1 }
 0x237   : > { %v3048_v46 = vpop.f32.mrf.mxu1  ;;  %v3079_v47 = vpop.f32.mrf.mxu0 }
 0x238   : > { %v3603_v47 = vld [vmem:[#allocation11 + $0x138] sm:$0xff]  }
 0x239   : > { %v3049_v48 = vpop.f32.mrf.mxu1  ;;  %v3080_v49 = vpop.f32.mrf.mxu0 }
 0x23a   : > { %v3050_v12 = vadd.f32 %v3049_v48, %v3048_v46 }
 0x23b   : > { %v3051_v50 = vpop.f32.mrf.mxu1  ;;  %v3082_v51 = vpop.f32.mrf.mxu0 }
 0x23c   : > { %v1255_v14 = vadd.f32 %v3050_v12, %v2872_v13 }
 0x23d   : > { %v3052_v52 = vpop.f32.mrf.mxu1  ;;  %v3083_v53 = vpop.f32.mrf.mxu0 }
 0x23e   : > { %v3084_v63 = vadd.f32 %v3083_v53, %v3082_v51  ;;  %v3053_v15 = vadd.f32 %v3052_v52, %v3051_v50 }
 0x23f   : > { %v3054_v54 = vpop.f32.mrf.mxu1  ;;  %v3085_v56 = vpop.f32.mrf.mxu0 }
 0x240   : > { %v1312_v18 = vadd.f32 %v3084_v63, %v1255_v14  ;;  %v1260_v20 = vadd.f32 %v3053_v15, %v2872_v13 }
 0x241   : > { %v3055_v57 = vpop.f32.mrf.mxu1  ;;  %v3086_v58 = vpop.f32.mrf.mxu0 }
 0x242   : > { %v3087_v17 = vadd.f32 %v3086_v58, %v3085_v56  ;;  %v3056_v21 = vadd.f32 %v3055_v57, %v3054_v54 }
 0x243   : > { %v3057_v62 = vpop.f32.mrf.mxu1  ;;  %v3088_v3 = vpop.f32.mrf.mxu0 }
 0x244   : > { %v1317_v26 = vadd.f32 %v3087_v17, %v1260_v20  ;;  %v1263_v29 = vadd.f32 %v3056_v21, %v2872_v13  ;;  %v3606_v17 = vld [vmem:[#allocation11 + $0x128] sm:$0xff]  }
 0x245   : > { %v3058_v4 = vpop.f32.mrf.mxu1  ;;  %v3089_v5 = vpop.f32.mrf.mxu0 }
 0x246   : > { %v3090_v24 = vadd.f32 %v3089_v5, %v3088_v3  ;;  %v3059_v27 = vadd.f32 %v3058_v4, %v3057_v62  ;;  %v3605_v4 = vld [vmem:[#allocation11 + $0x130] sm:$0xff]  }
 0x247   : > { %v3060_v6 = vpop.f32.mrf.mxu1  ;;  %v3091_v59 = vpop.f32.mrf.mxu0 }
 0x248   : > { %v1320_v37 = vadd.f32 %v3090_v24, %v1263_v29  ;;  %v1268_v38 = vadd.f32 %v3059_v27, %v2872_v13  ;;  %v3607_v29 = vld [vmem:[#allocation11 + $0x120] sm:$0xff]  }
 0x249   : > { %v3061_v8 = vpop.f32.mrf.mxu1  ;;  %v3092_v9 = vpop.f32.mrf.mxu0 }
 0x24a   : > { %v3093_v35 = vadd.f32 %v3092_v9, %v3091_v59 }
 0x24b   : > { %v3094_v10 = vpop.f32.mrf.mxu0 }
 0x24c   : > { %v1325_v51 = vadd.f32 %v3093_v35, %v1268_v38  ;;  %v3608_v35 = vld [vmem:[#allocation11 + $0x118] sm:$0xff]  }
 0x24d   : > { %v3095_v11 = vpop.f32.mrf.mxu0 }
 0x253   : > { %v1365_v2 = vpop.f32.mrf.mxu1 }
 0x255   : > { %v3344_v16 = vpop.f32.mrf.mxu1 }
 0x257   : > { %v1368_v19 = vpop.f32.mrf.mxu1 }
 0x258   : > { %v1369_v22 = vadd.f32 %v1368_v19, %v1312_v18 }
 0x259   : > { %v3345_v23 = vpop.f32.mrf.mxu1 }
 0x25a   : > { %vm1395_vm5 = vcmp.ge.f32.partialorder %v1369_v22, 0.0  ;;  %v1401_v25 = vmul.f32 0.1, %v1369_v22 }
 0x25b   : > { %v1373_v28 = vpop.f32.mrf.mxu1 }
 0x25c   : > { %v4332_v30 = vsel %vm1395_vm5, %v1369_v22, %v1401_v25  ;;  %v1374_v31 = vadd.f32 %v1373_v28, %v1317_v26 }
 0x25d   : > { %v1413_v32 = vrot.slane %v4332_v30, 6  ;;  %v3348_v33 = vpop.f32.mrf.mxu1  ;;  %v1425_v34 = vrot.slane %v4332_v30, 7  ;;  %v1437_v42 = vrot.slane %v4332_v30, 1  ;;  %v1462_v5 = vpack.c.bf16 %v4332_v30, %v3920_v1 }
 0x25e   : > { %vm1396_vm6 = vcmp.ge.f32.partialorder %v1374_v31, 0.0  ;;  %v1402_v36 = vmul.f32 0.1, %v1374_v31 }
 0x25f   : > { %v1376_v39 = vpop.f32.mrf.mxu1  ;;  %v1434_v40 = vsel %vm842_vm1, %v4220_v60, %v1425_v34  ;;  %v1422_v41 = vsel %vm829_vm2, %v4223_v61, %v1413_v32  ;;  %v1446_v54 = vsel %vm855_vm3, %v4234_v7, %v1437_v42 }
 0x260   : > { %v4343_v43 = vsel %vm1396_vm6, %v1374_v31, %v1402_v36  ;;  %v1377_v44 = vadd.f32 %v1376_v39, %v1320_v37  ;;  %v1461_v45 = vpack.c.bf16 %v1434_v40, %v4220_v60  ;;  %v1460_v46 = vpack.c.bf16 %v1422_v41, %v4223_v61  ;;  %v3609_v37 = vld [vmem:[#allocation11 + $0x110] sm:$0xff]   ;;  %v3610_v39 = vld [vmem:[#allocation11 + $0x108] sm:$0xff]  }
 0x261   : > { %v3349_v48 = vpop.f32.mrf.mxu1  ;;  %v1438_v49 = vrot.slane %v4343_v43, 1  ;;  %v1426_v56 = vrot.slane %v4343_v43, 7  ;;  %v1414_v57 = vrot.slane %v4343_v43, 6  ;;  %v1450_v40 = vrot.slane %v4343_v43, 2 }
 0x262   : > { %vm1397_vm7 = vcmp.ge.f32.partialorder %v1377_v44, 0.0  ;;  %v1403_v50 = vmul.f32 0.1, %v1377_v44  ;;  %1834 = vmatprep.mubr.bf16.mxu0 %v1461_v45  ;;  %v1449_v41 = vrot.slane %v4332_v30, 2 }
 0x263   : > { %v1381_v52 = vpop.f32.mrf.mxu1  ;;  %1835 = vmatmul.mubr.bf16.vlgmr.msra.gmra.mxu0 %v1460_v46  ;;  %v1445_v53 = vsel %vm855_vm3, %v1437_v42, %v1438_v49  ;;  %v1433_v13 = vsel %vm842_vm1, %v1425_v34, %v1426_v56  ;;  %v1421_v2 = vsel %vm829_vm2, %v1413_v32, %v1414_v57  ;;  %v3611_v42 = vld [vmem:[#allocation11 + $0x100] sm:$0xff]  }
 0x264   : > { %v4355_v58 = vsel %vm1397_vm7, %v1377_v44, %v1403_v50  ;;  %v1382_v62 = vadd.f32 %v1381_v52, %v1325_v51  ;;  %3355 = vmatpush3.bf16.msra.mxu0 %v3603_v47  ;;  %v1463_v3 = vpack.c.bf16 %v1445_v53, %v1446_v54  ;;  %v1457_v44 = vsel %vm868_vm4, %v1449_v41, %v1450_v40  ;;  %v3612_v52 = vld [vmem:[#allocation12 + $0x78] sm:$0xff]   ;;  %v3614_v54 = vld [vmem:[#allocation12 + $0x70] sm:$0xff]  }
 0x265   : > { %v3352_v6 = vpop.f32.mrf.mxu1  ;;  %3356 = vmatprep.subr.bf16.mxu0 %v3920_v1  ;;  %v1427_v59 = vrot.slane %v4355_v58, 7  ;;  %v1415_v8 = vrot.slane %v4355_v58, 6  ;;  %v1439_v10 = vrot.slane %v4355_v58, 1  ;;  %v1467_v31 = vpack.c.bf16 %v4355_v58, %v4343_v43  ;;  %v3613_v53 = vld [vmem:[#allocation12 + $0x38] sm:$0xff]   ;;  %3187 = vmatprep.subr.bf16.mxu1 %v3612_v52 }
 0x266   : > { %vm1398_vm8 = vcmp.ge.f32.partialorder %v1382_v62, 0.0  ;;  %v1404_v9 = vmul.f32 0.1, %v1382_v62  ;;  %1891 = vmatprep.mubr.bf16.mxu1 %v1463_v3  ;;  %v1458_v45 = vsel %vm868_vm4, %v4305_v0, %v1449_v41  ;;  %v1451_v30 = vrot.slane %v4355_v58, 2  ;;  %v3617_v58 = vld [vmem:[#allocation12 + $0xb8] sm:$0xff]   ;;  %v3620_v3 = vld [vmem:[#allocation12 + $0xf0] sm:$0xff]  }
 0x267   : > { %v1384_v11 = vpop.f32.mrf.mxu1  ;;  %1892 = vmatmul.mubr.bf16.vlgmr.msra.gmra.mxu1 %v1462_v5  ;;  %v1432_v12 = vsel %vm842_vm1, %v1426_v56, %v1427_v59  ;;  %v1420_v63 = vsel %vm829_vm2, %v1414_v57, %v1415_v8  ;;  %v1444_v21 = vsel %vm855_vm3, %v1438_v49, %v1439_v10  ;;  %v1464_v46 = vpack.c.bf16 %v1457_v44, %v1458_v45  ;;  %v3615_v56 = vld [vmem:[#allocation12 + $0x30] sm:$0xff]   ;;  %v3616_v57 = vld [vmem:[#allocation12 + $0xf8] sm:$0xff]   ;;  %v3622_v6 = vld [vmem:[#allocation12 + $0x60] sm:$0xff]  }
 0x268   : > { %v4371_v14 = vsel %vm1398_vm8, %v1382_v62, %v1404_v9  ;;  %3357 = vmatpush3.bf16.msra.mxu0 %v3605_v4  ;;  %v1466_v15 = vpack.c.bf16 %v1432_v12, %v1433_v13  ;;  %v1465_v16 = vpack.c.bf16 %v1420_v63, %v1421_v2  ;;  %v1456_v48 = vsel %vm868_vm4, %v1450_v40, %v1451_v30  ;;  %v3618_v62 = vld [vmem:[#allocation12 + $0x68] sm:$0xff]   ;;  %v3621_v5 = vld [vmem:[#allocation12 + $0xb0] sm:$0xff]   ;;  %v3627_v11 = vld [vmem:[#allocation12 + $0x18] sm:$0xff]  }
 0x269   : > { %v3353_v18 = vpop.f32.mrf.mxu1  ;;  %3358 = vmatprep.subr.bf16.mxu0 %v3920_v1  ;;  %v1428_v19 = vrot.slane %v4371_v14, 7  ;;  %v1440_v20 = vrot.slane %v4371_v14, 1  ;;  %v1416_v22 = vrot.slane %v4371_v14, 6  ;;  %v1472_v38 = vpack.c.bf16 %v3920_v1, %v4371_v14  ;;  %3188 = vmatpush3.bf16.msra.mxu1 %v3613_v53  ;;  %v3619_v4 = vld [vmem:[#allocation12 + $0x28] sm:$0xff]   ;;  %v3628_v12 = vld [vmem:[#allocation12 + $0xe0] sm:$0xff]   ;;  %v3630_v63 = vld [vmem:[#allocation12 + $0x50] sm:$0xff]  }
 0x26a   : > { %1842 = vmatprep.mubr.bf16.mxu0 %v1466_v15  ;;  %v1452_v47 = vrot.slane %v4371_v14, 2  ;;  %3189 = vmatprep.subr.bf16.mxu1 %v3614_v54  ;;  %v3625_v9 = vld [vmem:[#allocation12 + $0xa8] sm:$0xff]   ;;  %v3629_v13 = vld [vmem:[#allocation12 + $0xa0] sm:$0xff]   ;;  %v3631_v2 = vld [vmem:[#allocation12 + $0x10] sm:$0xff]  }
 0x26b   : > { %1843 = vmatmul.mubr.bf16.gmra.mxu0 %v1465_v16  ;;  %v1430_v23 = vsel %vm842_vm1, %v1428_v19, %v4220_v60  ;;  %v1431_v24 = vsel %vm842_vm1, %v1427_v59, %v1428_v19  ;;  %v1443_v25 = vsel %vm855_vm3, %v1439_v10, %v1440_v20  ;;  %v1442_v26 = vsel %vm855_vm3, %v1440_v20, %v4234_v7  ;;  %v3624_v59 = vld [vmem:[#allocation12 + $0xe8] sm:$0xff]   ;;  %v3626_v10 = vld [vmem:[#allocation12 + $0x58] sm:$0xff]   ;;  %v3636_v18 = vld [vmem:[#allocation12 + $0xd0] sm:$0xff]  }
 0x26c   : > { %3359 = vmatpush3.bf16.msra.mxu0 %v3606_v17  ;;  %v1471_v27 = vpack.c.bf16 %v1430_v23, %v1431_v24  ;;  %v1468_v28 = vpack.c.bf16 %v1443_v25, %v1444_v21  ;;  %v1473_v32 = vpack.c.bf16 %v4234_v7, %v1442_v26  ;;  %v1418_v33 = vsel %vm829_vm2, %v1416_v22, %v4223_v61  ;;  %v3632_v14 = vld [vmem:[#allocation12 + $0xd8] sm:$0xff]   ;;  %v3634_v16 = vld [vmem:[#allocation12 + $0x48] sm:$0xff]   ;;  %v3637_v19 = vld [vmem:[#allocation12 + $0x90] sm:$0xff]  }
 0x26d   : > { %3360 = vmatprep.subr.bf16.mxu0 %v3920_v1  ;;  %v1419_v34 = vsel %vm829_vm2, %v1415_v8, %v1416_v22  ;;  %v1455_v43 = vsel %vm868_vm4, %v1451_v30, %v1452_v47  ;;  %v1454_v50 = vsel %vm868_vm4, %v1452_v47, %v4305_v0  ;;  %3190 = vmatpush3.bf16.msra.mxu1 %v3615_v56  ;;  %v3623_v8 = vld [vmem:[#allocation12 + $0x20] sm:$0xff]   ;;  %v3633_v15 = vld [vmem:[#allocation12 + $0x98] sm:$0xff]   ;;  %v3635_v17 = vld [vmem:[#allocation12 + $0x8] sm:$0xff]  }
 0x26e   : > { %1850 = vmatprep.mubr.bf16.mxu0 %v1471_v27  ;;  %1899 = vmatprep.mubr.bf16.mxu1 %v1468_v28  ;;  %v1470_v36 = vpack.c.bf16 %v1418_v33, %v1419_v34  ;;  %v1469_v49 = vpack.c.bf16 %v1455_v43, %v1456_v48  ;;  %v1474_v51 = vpack.c.bf16 %v4305_v0, %v1454_v50  ;;  %v3638_v20 = vld [vmem:[#allocation12 + $0x40] sm:$0xff]   ;;  %v3640_v22 = vld [vmem:[#allocation12 + $0xc8] sm:$0xff]  }
 0x26f   : > { %1900 = vmatmul.mubr.bf16.gmra.mxu1 %v1467_v31  ;;  %3191 = vmatprep.subr.bf16.mxu1 %v3618_v62  ;;  %v3639_v21 = vld [vmem:[#allocation12] sm:$0xff]   ;;  %v3641_v23 = vld [vmem:[#allocation12 + $0x88] sm:$0xff]  }
 0x270   : > { %3361 = vmatpush3.bf16.msra.mxu0 %v3607_v29  ;;  %1907 = vmatprep.mubr.bf16.mxu1 %v1473_v32  ;;  %v3642_v24 = vld [vmem:[#allocation12 + $0xc0] sm:$0xff]  }
 0x271   : > { %3362 = vmatprep.subr.bf16.mxu0 %v3920_v1  ;;  %3192 = vmatpush3.bf16.msra.mxu1 %v3619_v4  ;;  %v3644_v25 = vld [vmem:[#allocation12 + $0x80] sm:$0xff]  }
 0x272   : > { %3193 = vmatprep.subr.bf16.mxu1 %v3622_v6 }
 0x273   : > { %1851 = vmatmul.mubr.bf16.gmra.mxu0 %v1470_v36 }
 0x274   : > { %3363 = vmatpush3.bf16.msra.mxu0 %v3608_v35  ;;  %3370 = vmatprep.mubr.msk.bf16.mxu0 %vm3921_vm0, %v3920_v1 }
 0x275   : > { %3364 = vmatprep.subr.bf16.mxu0 %v3920_v1  ;;  %3194 = vmatpush3.bf16.msra.mxu1 %v3623_v8 }
 0x276   : > { %3195 = vmatprep.subr.bf16.mxu1 %v3626_v10 }
 0x277   : > { %1908 = vmatmul.mubr.bf16.gmra.mxu1 %v1472_v38 }
 0x278   : > { %3365 = vmatpush3.bf16.msra.mxu0 %v3609_v37 }
 0x279   : > { %3366 = vmatprep.subr.bf16.mxu0 %v3920_v1  ;;  %3196 = vmatpush3.bf16.msra.mxu1 %v3627_v11 }
 0x27a   : > { %3197 = vmatprep.subr.bf16.mxu1 %v3630_v63 }
 0x27c   : > { %3367 = vmatpush3.bf16.msra.mxu0 %v3610_v39 }
 0x27d   : > { %3368 = vmatprep.subr.bf16.mxu0 %v3920_v1  ;;  %3198 = vmatpush3.bf16.msra.mxu1 %v3631_v2 }
 0x27e   : > { %3199 = vmatprep.subr.bf16.mxu1 %v3634_v16 }
 0x280   : > { %3369 = vmatpush3.bf16.msra.mxu0 %v3611_v42 }
 0x281   : > { %3221 = vmatprep.subr.bf16.mxu0 %v3616_v57  ;;  %3200 = vmatpush3.bf16.msra.mxu1 %v3635_v17 }
 0x282   : > { %3201 = vmatprep.subr.bf16.mxu1 %v3638_v20 }
 0x283   : > { %3371 = vmatmul.mubr.bf16.vlgmr.msra.gmra.mxu0 %v1464_v46 }
 0x284   : > { %3374 = vmatprep.mubr.msk.bf16.mxu0 %vm3921_vm0, %v3920_v1  ;;  %3222 = vmatpush3.bf16.msra.mxu0 %v3617_v58 }
 0x285   : > { %3223 = vmatprep.subr.bf16.mxu0 %v3620_v3  ;;  %3202 = vmatpush3.bf16.msra.mxu1 %v3639_v21 }
 0x286   : > { %3382 = vmatprep.subr.bf16.mxu1 %v3920_v1 }
 0x288   : > { %3224 = vmatpush3.bf16.msra.mxu0 %v3621_v5 }
 0x289   : > { %3225 = vmatprep.subr.bf16.mxu0 %v3624_v59 }
 0x28b   : > { %3375 = vmatmul.mubr.bf16.gmra.mxu0 %v1469_v49 }
 0x28c   : > { %3378 = vmatprep.mubr.msk.bf16.mxu0 %vm3921_vm0, %v3920_v1  ;;  %3226 = vmatpush3.bf16.msra.mxu0 %v3625_v9 }
 0x28d   : > { %3227 = vmatprep.subr.bf16.mxu0 %v3628_v12 }
 0x290   : > { %3228 = vmatpush3.bf16.msra.mxu0 %v3629_v13 }
 0x291   : > { %3229 = vmatprep.subr.bf16.mxu0 %v3632_v14 }
 0x293   : > { %3379 = vmatmul.mubr.bf16.gmra.mxu0 %v1474_v51  ;;  %v2913_v51 = vld [vmem:[%s4607_s7] ss:$0 sm:$0xff] }
 0x294   : > { %3230 = vmatpush3.bf16.msra.mxu0 %v3633_v15 }
 0x295   : > { %3231 = vmatprep.subr.bf16.mxu0 %v3636_v18 }
 0x298   : > { %3232 = vmatpush3.bf16.msra.mxu0 %v3637_v19 }
 0x299   : > { %3233 = vmatprep.subr.bf16.mxu0 %v3640_v22 }
 0x29c   : > { %3234 = vmatpush3.bf16.msra.mxu0 %v3641_v23 }
 0x29d   : > { %3235 = vmatprep.subr.bf16.mxu0 %v3642_v24 }
 0x2a0   : > { %3236 = vmatpush3.bf16.msra.mxu0 %v3644_v25 }
 0x323   : > { %v3124_v26 = vpop.f32.mrf.mxu0 }
 0x325   : > { %v3125_v27 = vpop.f32.mrf.mxu0 }
 0x327   : > { %v3127_v28 = vpop.f32.mrf.mxu0  ;;  %v3158_v29 = vpop.f32.mrf.mxu1 }
 0x328   : > { %v3643_v29 = vld [vmem:[#allocation12 + $0x138] sm:$0xff]  }
 0x329   : > { %v3128_v31 = vpop.f32.mrf.mxu0  ;;  %v3159_v32 = vpop.f32.mrf.mxu1 }
 0x32a   : > { %v3129_v50 = vadd.f32 %v3128_v31, %v3127_v28 }
 0x32b   : > { %v3130_v33 = vpop.f32.mrf.mxu0  ;;  %v3161_v34 = vpop.f32.mrf.mxu1 }
 0x32c   : > { %v1840_v54 = vadd.f32 %v3129_v50, %v2913_v51 }
 0x32d   : > { %v3131_v35 = vpop.f32.mrf.mxu0  ;;  %v3162_v36 = vpop.f32.mrf.mxu1 }
 0x32e   : > { %v3163_v52 = vadd.f32 %v3162_v36, %v3161_v34  ;;  %v3132_v56 = vadd.f32 %v3131_v35, %v3130_v33 }
 0x32f   : > { %v3133_v37 = vpop.f32.mrf.mxu0  ;;  %v3164_v38 = vpop.f32.mrf.mxu1 }
 0x330   : > { %v1897_v62 = vadd.f32 %v3163_v52, %v1840_v54  ;;  %v1845_v4 = vadd.f32 %v3132_v56, %v2913_v51 }
 0x331   : > { %v3134_v39 = vpop.f32.mrf.mxu0  ;;  %v3165_v40 = vpop.f32.mrf.mxu1 }
 0x332   : > { %v3166_v58 = vadd.f32 %v3165_v40, %v3164_v38  ;;  %v3135_v5 = vadd.f32 %v3134_v39, %v3133_v37 }
 0x333   : > { %v3136_v41 = vpop.f32.mrf.mxu0  ;;  %v3167_v42 = vpop.f32.mrf.mxu1 }
 0x334   : > { %v1902_v10 = vadd.f32 %v3166_v58, %v1845_v4  ;;  %v1848_v13 = vadd.f32 %v3135_v5, %v2913_v51  ;;  %v3646_v58 = vld [vmem:[#allocation12 + $0x128] sm:$0xff]  }
 0x335   : > { %v3137_v44 = vpop.f32.mrf.mxu0  ;;  %v3168_v45 = vpop.f32.mrf.mxu1 }
 0x336   : > { %v3169_v8 = vadd.f32 %v3168_v45, %v3167_v42  ;;  %v3138_v11 = vadd.f32 %v3137_v44, %v3136_v41  ;;  %v3645_v44 = vld [vmem:[#allocation12 + $0x130] sm:$0xff]  }
 0x337   : > { %v3139_v46 = vpop.f32.mrf.mxu0  ;;  %v3170_v47 = vpop.f32.mrf.mxu1 }
 0x338   : > { %v1905_v19 = vadd.f32 %v3169_v8, %v1848_v13  ;;  %v1853_v20 = vadd.f32 %v3138_v11, %v2913_v51  ;;  %v3647_v13 = vld [vmem:[#allocation12 + $0x120] sm:$0xff]  }
 0x339   : > { %v3140_v30 = vpop.f32.mrf.mxu0  ;;  %v3171_v43 = vpop.f32.mrf.mxu1 }
 0x33a   : > { %v3172_v17 = vadd.f32 %v3171_v43, %v3170_v47 }
 0x33b   : > { %v3173_v48 = vpop.f32.mrf.mxu1 }
 0x33c   : > { %v1910_v34 = vadd.f32 %v3172_v17, %v1853_v20  ;;  %v3648_v17 = vld [vmem:[#allocation12 + $0x118] sm:$0xff]   ;;  %v3650_v20 = vld [vmem:[#allocation12 + $0x108] sm:$0xff]  }
 0x33d   : > { %v3174_v49 = vpop.f32.mrf.mxu1 }
 0x343   : > { %v1950_v53 = vpop.f32.mrf.mxu0 }
 0x345   : > { %v3372_v57 = vpop.f32.mrf.mxu0 }
 0x347   : > { %v1953_v3 = vpop.f32.mrf.mxu0 }
 0x348   : > { %v1954_v6 = vadd.f32 %v1953_v3, %v1897_v62 }
 0x349   : > { %v3373_v59 = vpop.f32.mrf.mxu0 }
 0x34a   : > { %vm1980_vm9 = vcmp.ge.f32.partialorder %v1954_v6, 0.0  ;;  %v1986_v9 = vmul.f32 0.1, %v1954_v6 }
 0x34b   : > { %v1958_v12 = vpop.f32.mrf.mxu0 }
 0x34c   : > { %v4431_v63 = vsel %vm1980_vm9, %v1954_v6, %v1986_v9  ;;  %v1959_v2 = vadd.f32 %v1958_v12, %v1902_v10 }
 0x34d   : > { %v1998_v14 = vrot.slane %v4431_v63, 6  ;;  %v3376_v15 = vpop.f32.mrf.mxu0  ;;  %v2010_v16 = vrot.slane %v4431_v63, 7  ;;  %v2022_v24 = vrot.slane %v4431_v63, 1  ;;  %v2047_v45 = vpack.c.bf16 %v4431_v63, %v3920_v1 }
 0x34e   : > { %vm1981_vm10 = vcmp.ge.f32.partialorder %v1959_v2, 0.0  ;;  %v1987_v18 = vmul.f32 0.1, %v1959_v2 }
 0x34f   : > { %v1961_v21 = vpop.f32.mrf.mxu0  ;;  %v2019_v22 = vsel %vm842_vm1, %v4220_v60, %v2010_v16  ;;  %v2007_v23 = vsel %vm829_vm2, %v4223_v61, %v1998_v14  ;;  %v2031_v37 = vsel %vm855_vm3, %v4234_v7, %v2022_v24 }
 0x350   : > { %v4442_v25 = vsel %vm1981_vm10, %v1959_v2, %v1987_v18  ;;  %v1962_v26 = vadd.f32 %v1961_v21, %v1905_v19  ;;  %v2046_v27 = vpack.c.bf16 %v2019_v22, %v4220_v60  ;;  %v2045_v28 = vpack.c.bf16 %v2007_v23, %v4223_v61  ;;  %v3649_v19 = vld [vmem:[#allocation12 + $0x110] sm:$0xff]   ;;  %v3651_v23 = vld [vmem:[#allocation12 + $0x100] sm:$0xff]  }
 0x351   : > { %v3377_v31 = vpop.f32.mrf.mxu0  ;;  %v2023_v32 = vrot.slane %v4442_v25, 1  ;;  %v2011_v38 = vrot.slane %v4442_v25, 7  ;;  %v1999_v39 = vrot.slane %v4442_v25, 6  ;;  %v2035_v21 = vrot.slane %v4442_v25, 2 }
 0x352   : > { %vm1982_vm11 = vcmp.ge.f32.partialorder %v1962_v26, 0.0  ;;  %v1988_v33 = vmul.f32 0.1, %v1962_v26  ;;  %2419 = vmatprep.mubr.bf16.mxu1 %v2046_v27  ;;  %v2034_v22 = vrot.slane %v4431_v63, 2 }
 0x353   : > { %v1966_v35 = vpop.f32.mrf.mxu0  ;;  %2420 = vmatmul.mubr.bf16.vlgmr.msra.gmra.mxu1 %v2045_v28  ;;  %v2030_v36 = vsel %vm855_vm3, %v2022_v24, %v2023_v32  ;;  %v2018_v51 = vsel %vm842_vm1, %v2010_v16, %v2011_v38  ;;  %v2006_v53 = vsel %vm829_vm2, %v1998_v14, %v1999_v39 }
 0x354   : > { %v4454_v40 = vsel %vm1982_vm11, %v1962_v26, %v1988_v33  ;;  %v1967_v41 = vadd.f32 %v1966_v35, %v1910_v34  ;;  %3383 = vmatpush3.bf16.msra.mxu1 %v3643_v29  ;;  %v2048_v42 = vpack.c.bf16 %v2030_v36, %v2031_v37  ;;  %v2042_v24 = vsel %vm868_vm4, %v2034_v22, %v2035_v21 }
 0x355   : > { %v3380_v46 = vpop.f32.mrf.mxu0  ;;  %3384 = vmatprep.subr.bf16.mxu1 %v3920_v1  ;;  %v2012_v47 = vrot.slane %v4454_v40, 7  ;;  %v2000_v30 = vrot.slane %v4454_v40, 6  ;;  %v2024_v48 = vrot.slane %v4454_v40, 1  ;;  %v2052_v2 = vpack.c.bf16 %v4454_v40, %v4442_v25 }
 0x356   : > { %vm1983_vm12 = vcmp.ge.f32.partialorder %v1967_v41, 0.0  ;;  %v1989_v43 = vmul.f32 0.1, %v1967_v41  ;;  %2476 = vmatprep.mubr.bf16.mxu0 %v2048_v42  ;;  %v2043_v26 = vsel %vm868_vm4, %v4305_v0, %v2034_v22  ;;  %v2036_v63 = vrot.slane %v4454_v40, 2 }
 0x357   : > { %v1969_v49 = vpop.f32.mrf.mxu0  ;;  %2477 = vmatmul.mubr.bf16.vlgmr.msra.gmra.mxu0 %v2047_v45  ;;  %v2017_v50 = vsel %vm842_vm1, %v2011_v38, %v2012_v47  ;;  %v2005_v52 = vsel %vm829_vm2, %v1999_v39, %v2000_v30  ;;  %v2029_v5 = vsel %vm855_vm3, %v2023_v32, %v2024_v48  ;;  %v2049_v27 = vpack.c.bf16 %v2042_v24, %v2043_v26 }
 0x358   : > { %v4470_v54 = vsel %vm1983_vm12, %v1967_v41, %v1989_v43  ;;  %3385 = vmatpush3.bf16.msra.mxu1 %v3645_v44  ;;  %v2051_v56 = vpack.c.bf16 %v2017_v50, %v2018_v51  ;;  %v2050_v57 = vpack.c.bf16 %v2005_v52, %v2006_v53  ;;  %v2041_v29 = vsel %vm868_vm4, %v2035_v21, %v2036_v63 }
 0x359   : > { %v3381_v62 = vpop.f32.mrf.mxu0  ;;  %3386 = vmatprep.subr.bf16.mxu1 %v3920_v1  ;;  %v2013_v3 = vrot.slane %v4470_v54, 7  ;;  %v2025_v4 = vrot.slane %v4470_v54, 1  ;;  %v2001_v6 = vrot.slane %v4470_v54, 6  ;;  %v2037_v28 = vrot.slane %v4470_v54, 2 }
 0x35a   : > { %2427 = vmatprep.mubr.bf16.mxu1 %v2051_v56 }
 0x35b   : > { %2428 = vmatmul.mubr.bf16.gmra.mxu1 %v2050_v57  ;;  %v2015_v59 = vsel %vm842_vm1, %v2013_v3, %v4220_v60  ;;  %v2016_v8 = vsel %vm842_vm1, %v2012_v47, %v2013_v3  ;;  %v2028_v9 = vsel %vm855_vm3, %v2024_v48, %v2025_v4  ;;  %v2027_v10 = vsel %vm855_vm3, %v2025_v4, %v4234_v7  ;;  %v2954_v57 = vld [vmem:[%s4609_s9] ss:$0 sm:$0xff] }
 0x35c   : > { %3387 = vmatpush3.bf16.msra.mxu1 %v3646_v58  ;;  %v2056_v11 = vpack.c.bf16 %v2015_v59, %v2016_v8  ;;  %v2053_v12 = vpack.c.bf16 %v2028_v9, %v2029_v5  ;;  %v2058_v14 = vpack.c.bf16 %v4234_v7, %v2027_v10  ;;  %v2003_v15 = vsel %vm829_vm2, %v2001_v6, %v4223_v61 }
 0x35d   : > { %3388 = vmatprep.subr.bf16.mxu1 %v3920_v1  ;;  %v2004_v16 = vsel %vm829_vm2, %v2000_v30, %v2001_v6  ;;  %v2057_v61 = vpack.c.bf16 %v3920_v1, %v4470_v54  ;;  %v2040_v25 = vsel %vm868_vm4, %v2036_v63, %v2037_v28  ;;  %v2039_v32 = vsel %vm868_vm4, %v2037_v28, %v4305_v0 }
 0x35e   : > { %2435 = vmatprep.mubr.bf16.mxu1 %v2056_v11  ;;  %2484 = vmatprep.mubr.bf16.mxu0 %v2053_v12  ;;  %v2055_v18 = vpack.c.bf16 %v2003_v15, %v2004_v16  ;;  %v2054_v31 = vpack.c.bf16 %v2040_v25, %v2041_v29  ;;  %v2059_v33 = vpack.c.bf16 %v4305_v0, %v2039_v32  ;;  %v2594_v9 = vsub.s32 0, %v4212_v55 }
 0x35f   : > { %2485 = vmatmul.mubr.bf16.gmra.mxu0 %v2052_v2  ;;  %v2602_v2 = vsub.s32 1, %v4212_v55 }
 0x360   : > { %3389 = vmatpush3.bf16.msra.mxu1 %v3647_v13  ;;  %2492 = vmatprep.mubr.bf16.mxu0 %v2058_v14 }
 0x361   : > { %3390 = vmatprep.subr.bf16.mxu1 %v3920_v1 }
 0x363   : > { %2436 = vmatmul.mubr.bf16.gmra.mxu1 %v2055_v18 }
 0x364   : > { %3391 = vmatpush3.bf16.msra.mxu1 %v3648_v17  ;;  %3398 = vmatprep.mubr.msk.bf16.mxu1 %vm3921_vm0, %v3920_v1  ;;  %v2582_v17 = vld [vmem:[%s4610_s10] sm:$0x7] }
 0x365   : > { %3392 = vmatprep.subr.bf16.mxu1 %v3920_v1 }
 0x367   : > { %2493 = vmatmul.mubr.bf16.gmra.mxu0 %v2057_v61  ;;  %v2623_v61 = vsub.s32 2, %v4212_v55 }
 0x368   : > { %3393 = vmatpush3.bf16.msra.mxu1 %v3649_v19  ;;  %v2595_v19 = vrot.slane %v2582_v17, %v2594_v9 }
 0x369   : > { %3394 = vmatprep.subr.bf16.mxu1 %v3920_v1  ;;  %v2624_v32 = vrot.slane %v2582_v17, %v2623_v61 }
 0x36c   : > { %3395 = vmatpush3.bf16.msra.mxu1 %v3650_v20 }
 0x36d   : > { %3396 = vmatprep.subr.bf16.mxu1 %v3920_v1 }
 0x370   : > { %3397 = vmatpush3.bf16.msra.mxu1 %v3651_v23 }
 0x373   : > { %3399 = vmatmul.mubr.bf16.vlgmr.msra.gmra.mxu1 %v2049_v27  ;;  %v2603_v27 = vrot.slane %v2582_v17, %v2602_v2 }
 0x374   : > { %3402 = vmatprep.mubr.msk.bf16.mxu1 %vm3921_vm0, %v3920_v1 }
 0x37b   : > { %3403 = vmatmul.mubr.bf16.gmra.mxu1 %v2054_v31 }
 0x37c   : > { %3406 = vmatprep.mubr.msk.bf16.mxu1 %vm3921_vm0, %v3920_v1 }
 0x383   : > { %3407 = vmatmul.mubr.bf16.gmra.mxu1 %v2059_v33 }
 0x413   : > { %v3203_v34 = vpop.f32.mrf.mxu1 }
 0x415   : > { %v3204_v35 = vpop.f32.mrf.mxu1 }
 0x417   : > { %v3206_v36 = vpop.f32.mrf.mxu1  ;;  %v3237_v37 = vpop.f32.mrf.mxu0 }
 0x419   : > { %v3207_v38 = vpop.f32.mrf.mxu1  ;;  %v3238_v39 = vpop.f32.mrf.mxu0 }
 0x41a   : > { %v3208_v56 = vadd.f32 %v3207_v38, %v3206_v36 }
 0x41b   : > { %v3209_v40 = vpop.f32.mrf.mxu1  ;;  %v3240_v41 = vpop.f32.mrf.mxu0 }
 0x41c   : > { %v2425_v3 = vadd.f32 %v3208_v56, %v2954_v57 }
 0x41d   : > { %v3210_v42 = vpop.f32.mrf.mxu1  ;;  %v3241_v44 = vpop.f32.mrf.mxu0 }
 0x41e   : > { %v3242_v58 = vadd.f32 %v3241_v44, %v3240_v41  ;;  %v3211_v4 = vadd.f32 %v3210_v42, %v3209_v40 }
 0x41f   : > { %v3212_v45 = vpop.f32.mrf.mxu1  ;;  %v3243_v46 = vpop.f32.mrf.mxu0 }
 0x420   : > { %v2482_v59 = vadd.f32 %v3242_v58, %v2425_v3  ;;  %v2430_v10 = vadd.f32 %v3211_v4, %v2954_v57 }
 0x421   : > { %v3213_v1 = vpop.f32.mrf.mxu1  ;;  %v3244_v47 = vpop.f32.mrf.mxu0 }
 0x422   : > { %v3245_v6 = vadd.f32 %v3244_v47, %v3243_v46  ;;  %v3214_v11 = vadd.f32 %v3213_v1, %v3212_v45 }
 0x423   : > { %v3215_v30 = vpop.f32.mrf.mxu1  ;;  %v3246_v43 = vpop.f32.mrf.mxu0 }
 0x424   : > { %v2487_v16 = vadd.f32 %v3245_v6, %v2430_v10  ;;  %v2433_v20 = vadd.f32 %v3214_v11, %v2954_v57 }
 0x425   : > { %v3216_v48 = vpop.f32.mrf.mxu1  ;;  %v3247_v49 = vpop.f32.mrf.mxu0 }
 0x426   : > { %v3248_v14 = vadd.f32 %v3247_v49, %v3246_v43  ;;  %v3217_v21 = vadd.f32 %v3216_v48, %v3215_v30 }
 0x427   : > { %v3218_v0 = vpop.f32.mrf.mxu1  ;;  %v3249_v50 = vpop.f32.mrf.mxu0 }
 0x428   : > { %v2490_v25 = vadd.f32 %v3248_v14, %v2433_v20  ;;  %v2438_v33 = vadd.f32 %v3217_v21, %v2954_v57  ;;  %v2995_v20 = vld [vmem:[#allocation2] ss:$0 sm:$0xff] }
 0x429   : > { %v3219_v51 = vpop.f32.mrf.mxu1  ;;  %v3250_v52 = vpop.f32.mrf.mxu0 }
 0x42a   : > { %v3251_v28 = vadd.f32 %v3250_v52, %v3249_v50 }
 0x42b   : > { %v3252_v53 = vpop.f32.mrf.mxu0 }
 0x42c   : > { %v2495_v44 = vadd.f32 %v3251_v28, %v2438_v33 }
 0x42d   : > { %v3253_v54 = vpop.f32.mrf.mxu0 }
 0x433   : > { %v2535_v62 = vpop.f32.mrf.mxu1 }
 0x435   : > { %v3400_v5 = vpop.f32.mrf.mxu1 }
 0x437   : > { %v2538_v8 = vpop.f32.mrf.mxu1 }
 0x438   : > { %v2539_v12 = vadd.f32 %v2538_v8, %v2482_v59 }
 0x439   : > { %v3401_v13 = vpop.f32.mrf.mxu1 }
 0x43a   : > { %vm2565_vm13 = vcmp.ge.f32.partialorder %v2539_v12, 0.0  ;;  %v2571_v15 = vmul.f32 0.1, %v2539_v12 }
 0x43b   : > { %v2543_v18 = vpop.f32.mrf.mxu1 }
 0x43c   : > { %v2577_v22 = vsel %vm2565_vm13, %v2539_v12, %v2571_v15  ;;  %v2544_v23 = vadd.f32 %v2543_v18, %v2487_v16 }
 0x43d   : > { %v2584_v24 = vrot.slane %v2577_v22, 7  ;;  %v3404_v26 = vpop.f32.mrf.mxu1  ;;  %v2612_v37 = vrot.slane %v2577_v22, 1  ;;  %v2604_v41 = vmul.f32 %v2603_v27, %v2577_v22 }
 0x43e   : > { %vm2566_vm14 = vcmp.ge.f32.partialorder %v2544_v23, 0.0  ;;  %v2572_v63 = vmul.f32 0.1, %v2544_v23 }
 0x43f   : > { %v2546_v29 = vpop.f32.mrf.mxu1  ;;  %v2591_v31 = vsel %vm842_vm1, %v4220_v60, %v2584_v24 }
 0x440   : > { %v2578_v34 = vsel %vm2566_vm14, %v2544_v23, %v2572_v63  ;;  %v2547_v35 = vadd.f32 %v2546_v29, %v2490_v25  ;;  %v2596_v36 = vmul.f32 %v2595_v19, %v2591_v31 }
 0x441   : > { %v2585_v38 = vrot.slane %v2578_v34, 7  ;;  %v2613_v39 = vrot.slane %v2578_v34, 1  ;;  %v3405_v40 = vpop.f32.mrf.mxu1  ;;  %v2605_v53 = vmul.f32 %v2603_v27, %v2578_v34 }
 0x442   : > { %vm2567_vm15 = vcmp.ge.f32.partialorder %v2547_v35, 0.0  ;;  %v2573_v42 = vmul.f32 0.1, %v2547_v35  ;;  %v2608_v46 = vadd.f32 %v2604_v41, %v2596_v36 }
 0x443   : > { %v2551_v45 = vpop.f32.mrf.mxu1  ;;  %v2620_v1 = vsel %vm855_vm3, %v2612_v37, %v2613_v39  ;;  %v2590_v60 = vsel %vm842_vm1, %v2584_v24, %v2585_v38 }
 0x444   : > { %v2579_v47 = vsel %vm2567_vm15, %v2547_v35, %v2573_v42  ;;  %v2552_v30 = vadd.f32 %v2551_v45, %v2495_v44  ;;  %v2625_v43 = vmul.f32 %v2624_v32, %v2620_v1  ;;  %v2597_v48 = vmul.f32 %v2595_v19, %v2590_v60 }
 0x445   : > { %v2586_v49 = vrot.slane %v2579_v47, 7  ;;  %v2614_v0 = vrot.slane %v2579_v47, 1  ;;  %v3408_v50 = vpop.f32.mrf.mxu1  ;;  %v2606_v9 = vmul.f32 %v2603_v27, %v2579_v47 }
 0x446   : > { %vm2568_vm0 = vcmp.ge.f32.partialorder %v2552_v30, 0.0  ;;  %v2574_v51 = vmul.f32 0.1, %v2552_v30  ;;  %v2629_v52 = vadd.f32 %v2625_v43, %v2608_v46  ;;  %v2609_v62 = vadd.f32 %v2605_v53, %v2597_v48 }
 0x447   : > { %v2554_v54 = vpop.f32.mrf.mxu1  ;;  %v2619_v56 = vsel %vm855_vm3, %v2613_v39, %v2614_v0  ;;  %v2589_v57 = vsel %vm842_vm1, %v2585_v38, %v2586_v49 }
 0x448   : > { %v2580_v58 = vsel %vm2568_vm0, %v2552_v30, %v2574_v51  ;;  %2633 = vadd.xlane.f32.xlu0 %v2629_v52  ;;  %v2626_v3 = vmul.f32 %v2624_v32, %v2619_v56  ;;  %v2598_v4 = vmul.f32 %v2595_v19, %v2589_v57 }
 0x449   : > { %v2587_v5 = vrot.slane %v2580_v58, 7  ;;  %v2615_v6 = vrot.slane %v2580_v58, 1  ;;  %v3409_v59 = vpop.f32.mrf.mxu1  ;;  %v2607_v14 = vmul.f32 %v2603_v27, %v2580_v58 }
 0x44a   : > { %v2630_v8 = vadd.f32 %v2626_v3, %v2609_v62  ;;  %v2610_v12 = vadd.f32 %v2606_v9, %v2598_v4 }
 0x44b   : > { %v2618_v10 = vsel %vm855_vm3, %v2614_v0, %v2615_v6  ;;  %v2588_v11 = vsel %vm842_vm1, %v2586_v49, %v2587_v5  ;;  %v2617_v15 = vsel %vm855_vm3, %v2615_v6, %v4234_v7  ;;  %vm2684_vm1 = vcmask 253952  }
 0x44c   : > { %2635 = vadd.xlane.f32.xlu0 %v2630_v8  ;;  %v2627_v13 = vmul.f32 %v2624_v32, %v2618_v10  ;;  %v2599_v2 = vmul.f32 %v2595_v19, %v2588_v11  ;;  %v2628_v18 = vmul.f32 %v2624_v32, %v2617_v15 }
 0x44e   : > { %v2631_v16 = vadd.f32 %v2627_v13, %v2610_v12  ;;  %v2611_v17 = vadd.f32 %v2607_v14, %v2599_v2 }
 0x450   : > { %2637 = vadd.xlane.f32.xlu1 %v2631_v16  ;;  %v2632_v61 = vadd.f32 %v2628_v18, %v2611_v17 }
 0x454   : > { %2639 = vadd.xlane.f32.xlu1 %v2632_v61 }
 0x4d1   : > { %v2634_v21 = vpop.xlane.xlu0 %2633 }
 0x4d2   : > { %v2648_v22 = vadd.f32 %v2995_v20, %v2634_v21 }
 0x4d4   : > { %2652 = vxpose.xlu0.b32.start [1/4] (short) (narrow) %v2648_v22, 8 }
 0x4d5   : > { %v2636_v23 = vpop.xlane.xlu0 %2635 }
 0x4d6   : > { %v2649_v24 = vadd.f32 %v2995_v20, %v2636_v23 }
 0x4d8   : > { %2653 = vxpose.xlu0.b32.cont [2/4] (short) (narrow) %v2649_v24, 8 }
 0x4d9   : > { %v2638_v19 = vpop.xlane.xlu1 %2637 }
 0x4da   : > { %v2650_v26 = vadd.f32 %v2995_v20, %v2638_v19 }
 0x4dc   : > { %2654 = vxpose.xlu0.b32.cont [3/4] (short) (narrow) %v2650_v26, 8 }
 0x4dd   : > { %v2640_v55 = vpop.xlane.xlu1 %2639 }
 0x4de   : > { %v2651_v7 = vadd.f32 %v2995_v20, %v2640_v55 }
 0x4e0   : > { %2655 = vxpose.xlu0.b32.end [4/4] (short) (narrow) %v2651_v7, 8 }
 0x550   : > { %v2668_v27 = vpop.trf.xlu0 }
 0x551   : > { %2685 = vst.msk [vmem:[%s552_s4] sm:$0x1] %vm2684_vm1, %v2668_v27 }
 0x552   : > { %3825 = shalt.err (!%p3822_p8)
}
 0x553   : > { %s3826_s19 = scalar_lea.hbm %s4558_s12, 16  ;;  %s3830_s22 = scalar_lea.hbm %s4653_s6, 32 }
 0x554   : > { %p3827_p2 = scmp.ne.s32.totalorder %s4558_s12, %s3826_s19  ;;  %p3831_p11 = scmp.lt.s32.totalorder %s4558_s12, %s4653_s6 }
 0x555   : > { %p3832_p5 = scmp.lt.s32.totalorder %s3830_s22, %s3826_s19 }
 0x556   : > { %p3828_p3 = pnand %p3827_p2, %p4110_p0 }
 0x557   : > { %p3833_p4 = por %p3832_p5, %p3831_p11 }
 0x558   : > { %p3829_p13 = pneg %p3828_p3 }
 0x55a   : > { %p3834_p10 = pnand %p3833_p4, %p3829_p13 }
 0x55c   : > { %3837 = shalt.err (!%p3834_p10)
}
 0x55d   : > { %3430 = dma.vmem_to_hbm [thread:$0]  (%p4110_p0), %s2701_s8, 16, %s4558_s12, %s2687_s26  }
 0x55e PF: > { %s4654_s21 = sld [smem:[#allocation21_spill]]  ;;  %p4656_p12 = scmp.ge.s32.totalorder %s3908_s11, 2 }
 0x560   : > { %p3453_p7 = pnand %p4656_p12, %p4036_p6 }
 0x562   : > { %p3454_p1 = pneg %p3453_p7 }
 0x564   : > { %s2712_s29 = sand.u32 1, %s4654_s21  }
 0x565   : > { %s2713_s2 = scalar_lea.sflag [#allocation5], %s2712_s29 }
 0x566   : > { %3883 = dma.done.wait (%p3454_p1), %s2713_s2, 16  }
 0x567   : > { %3885 = vsyncadd (%p3454_p1), %s2713_s2, 4294967280  ;;  %s35_s11 = sadd.s32 1, %s3908_s11   ;;  %s4657_s4 = sld [smem:[#allocation22_spill]] }
 0x568   : > { %p32_p9 = scmp.ge.s32.totalorder %s35_s11, 4   ;;  %s4658_s25 = sld [smem:[#allocation27_spill]] }
 0x569   : > { %s4659_s13 = sld [smem:[#allocation25_spill]]  ;;  %s4660_s23 = smov %s3892_s24 }
 0x56a   : > { %s4662_s26 = smov %s3904_s27 }
 0x56b   :  { %34 = sbr.rel (!%p32_p9) target bundleno = 17 (0x11), region = 142 }
 0x56d   : > { %s4661_s24 = smov %s4657_s4 }
 0x56f   : > { %s4663_s27 = smov %s4659_s13 }
 0x570   :  { %2717 = vsyncpa [#allocation4], 1 }
 0x571   :  { %2719 = vsyncpa [#allocation4 + $0x1], 1 }
 0x572   :  { %2720 = vsyncpa [#allocation7], 1 }
 0x573   :  { %2722 = vsyncpa [#allocation7 + $0x1], 1 }
 0x574   :  { %2723 = vsyncpa [#allocation10], 1 }
 0x575   :  { %2724 = vsyncpa [#allocation13], 1 }
 0x576   :  { %2725 = vsyncpa [#allocation5], 1 }
 0x577   :  { %2727 = vsyncpa [#allocation5 + $0x1], 1 }

</bundles_post_ra>
